<compile_context>
chip_gen: v5e
topology: v5e:2x2
jax: 0.10.0
libtpu: 0.0.40
codegen_flags: <defaults>
</compile_context>

<pallas_src>
import functools

import jax
import jax.numpy as jnp
from jax.experimental import pallas as pl
from jax.experimental.pallas import tpu as pltpu


def _round_up(x, m):
    return ((x + m - 1) // m) * m


def _num_tensorcores():
    """One tile per TensorCore: 1 on v5e/v6e, 2 on v7x (dual-TC chips)."""
    try:
        kind = jax.devices()[0].device_kind.lower()
    except Exception:
        return 1
    return 2 if ("v7" in kind or "7x" in kind) else 1


def _ncf_fused_kernel(uid_ref, iid_ref, ut_ref, it_ref,
                      w1u_ref, w1i_ref, b1_ref, w2_ref, b2_ref,
                      w3_ref, b3_ref, o_ref):
    # uid/iid: (TB, 1) int32; tables/weights bf16; b1/b2 f32 rows;
    # b3: (1,1) f32 in SMEM; o_ref: (1, TB) f32 (lane-dense over batch).
    cd = ut_ref.dtype
    tb = uid_ref.shape[0]
    nu = ut_ref.shape[0]
    ni = it_ref.shape[0]

    # Fused embedding gather: one-hot @ table on the MXU. Exact (0/1 weights,
    # f32 accumulation of bf16 rows), so identical to table[ids].
    u_cols = jax.lax.broadcasted_iota(jnp.int32, (tb, nu), 1)
    u_oh = jnp.where(u_cols == uid_ref[...], 1.0, 0.0).astype(cd)      # (TB, NU)
    u = jnp.dot(u_oh, ut_ref[...], preferred_element_type=jnp.float32).astype(cd)

    i_cols = jax.lax.broadcasted_iota(jnp.int32, (tb, ni), 1)
    i_oh = jnp.where(i_cols == iid_ref[...], 1.0, 0.0).astype(cd)      # (TB, NI)
    it = jnp.dot(i_oh, it_ref[...], preferred_element_type=jnp.float32).astype(cd)

    # layer 1: h1 = relu(u @ W1_u + i @ W1_i + b1)  (split W1 -> no concat tensor)
    h1 = (jnp.dot(u, w1u_ref[...], preferred_element_type=jnp.float32)
          + jnp.dot(it, w1i_ref[...], preferred_element_type=jnp.float32)
          + b1_ref[...])
    h1 = jnp.maximum(h1, 0.0)

    # layer 2: h2 = relu(h1 @ W2 + b2)
    h2 = jnp.dot(h1.astype(cd), w2_ref[...],
                 preferred_element_type=jnp.float32) + b2_ref[...]
    h2 = jnp.maximum(h2, 0.0)

    # final projection: contract on H2 via dot_general -> (1, TB) lane-dense,
    # no explicit transpose of the (TB, H2) tile. b3 read as an SMEM scalar.
    logits_t = jax.lax.dot_general(
        w3_ref[...], h2.astype(cd),
        dimension_numbers=(((1,), (1,)), ((), ())),
        preferred_element_type=jnp.float32) + b3_ref[0, 0]

    # sigmoid in f32 (EUP); BCELoss expects scores in [0, 1].
    o_ref[...] = jax.nn.sigmoid(logits_t).astype(o_ref.dtype)


def ncf_forward(user_ids, item_ids, user_table, item_table,
                w1u, w1i, b1, w2, b2, w3, b3, *, num_tiles=None):
    """ids: (B,) int32; tables (N, E) bf16. Returns (B, 1) f32 sigmoid scores."""
    B = user_ids.shape[0]
    NU, E = user_table.shape
    NI = item_table.shape[0]
    H1 = w1u.shape[1]
    H2 = w2.shape[1]

    if num_tiles is None:
        num_tiles = _num_tensorcores()
    n_tiles = max(1, int(num_tiles))
    # Regime: ~6 MFLOP total -> step-overhead / latency bound. Fewest possible
    # grid steps: one tile per TensorCore. Per-tile VMEM use is < 1 MiB, far
    # below every generation's limit, so the big tile is free.
    tile_b = _round_up(pl.cdiv(B, n_tiles), 128)
    B_pad = n_tiles * tile_b

    # Pad the cheap int32 id vectors (not (B, E) embeddings). id 0 is a valid
    # row; padded outputs are computed and discarded.
    uid = jnp.pad(user_ids.astype(jnp.int32), (0, B_pad - B)).reshape(B_pad, 1)
    iid = jnp.pad(item_ids.astype(jnp.int32), (0, B_pad - B)).reshape(B_pad, 1)

    # Batch tiled along the grid; tables/weights fully resident (block (0, 0)).
    in_specs = [
        pl.BlockSpec((tile_b, 1), lambda i: (i, 0)),        # user ids
        pl.BlockSpec((tile_b, 1), lambda i: (i, 0)),        # item ids
        pl.BlockSpec((NU, E), lambda i: (0, 0)),            # user table
        pl.BlockSpec((NI, E), lambda i: (0, 0)),            # item table
        pl.BlockSpec((E, H1), lambda i: (0, 0)),            # w1_u
        pl.BlockSpec((E, H1), lambda i: (0, 0)),            # w1_i
        pl.BlockSpec((1, H1), lambda i: (0, 0)),            # b1
        pl.BlockSpec((H1, H2), lambda i: (0, 0)),           # w2
        pl.BlockSpec((1, H2), lambda i: (0, 0)),            # b2
        pl.BlockSpec((1, H2), lambda i: (0, 0)),            # w3 (row vector)
        pl.BlockSpec(memory_space=pltpu.MemorySpace.SMEM),  # b3 scalar
    ]
    # Lane-dense output: one row of tile_b scores per grid step.
    out_spec = pl.BlockSpec((1, tile_b), lambda i: (0, i))

    weight_bytes = ((NU + NI) * E + 2 * E * H1 + H1 * H2 + H2) * 2 \
        + (H1 + H2 + 1) * 4
    cost = pl.CostEstimate(
        flops=2 * B_pad * (NU * E + NI * E + 2 * E * H1 + H1 * H2 + H2),
        transcendentals=B_pad,                       # sigmoid
        bytes_accessed=2 * B_pad * 4 + weight_bytes + B_pad * 4,
    )

    out = pl.pallas_call(
        _ncf_fused_kernel,
        out_shape=jax.ShapeDtypeStruct((1, B_pad), jnp.float32),
        grid_spec=pltpu.PrefetchScalarGridSpec(
            num_scalar_prefetch=0,
            grid=(n_tiles,),
            in_specs=in_specs,
            out_specs=out_spec,
        ),
        compiler_params=pltpu.CompilerParams(
            dimension_semantics=("parallel",),
        ),
        cost_estimate=cost,
    )(uid, iid, user_table, item_table, w1u, w1i, b1, w2, b2, w3, b3)

    return out.reshape(B_pad, 1)[:B]


@jax.jit
def recommender_forward(params, user_ids, item_ids):
    """Fully fused forward: in-kernel gather + bf16 MLP + sigmoid. Returns (B, 1)."""
    cd = jnp.bfloat16
    return ncf_forward(
        user_ids, item_ids,
        params["user_table"].astype(cd), params["item_table"].astype(cd),
        params["w1_u"].astype(cd), params["w1_i"].astype(cd), params["b1"],
        params["w2"].astype(cd), params["b2"],
        params["w3"].astype(cd), params["b3"],
    )


def reference_forward(params, user_ids, item_ids):
    """Plain-JAX reference mirroring the kernel's cast points."""
    cd = jnp.bfloat16
    u = params["user_table"].astype(cd)[user_ids]
    it = params["item_table"].astype(cd)[item_ids]
    h1 = (jnp.dot(u, params["w1_u"].astype(cd), preferred_element_type=jnp.float32)
          + jnp.dot(it, params["w1_i"].astype(cd), preferred_element_type=jnp.float32)
          + params["b1"])
    h1 = jnp.maximum(h1, 0.0).astype(cd)
    h2 = jnp.dot(h1, params["w2"].astype(cd),
                 preferred_element_type=jnp.float32) + params["b2"]
    h2 = jnp.maximum(h2, 0.0).astype(cd)
    logits = jnp.dot(h2, params["w3"].astype(cd).T,
                     preferred_element_type=jnp.float32) + params["b3"]
    return jax.nn.sigmoid(logits)   # (B, 1)


def init_params(key, num_users, num_items, emb_dim, h1, h2):
    """Deterministic synthetic parameters (PyTorch-like fan-in scaling)."""
    ks = jax.random.split(key, 9)

    def uniform(k, shape, fan_in):
        bound = 1.0 / jnp.sqrt(jnp.float32(fan_in))
        return jax.random.uniform(k, shape, jnp.float32, -bound, bound)

    return {
        # nn.Embedding default init ~ N(0, 1)
        "user_table": jax.random.normal(ks[0], (num_users, emb_dim), jnp.float32),
        "item_table": jax.random.normal(ks[1], (num_items, emb_dim), jnp.float32),
        # nn.Linear(2E, H1) split into user/item halves (fan_in = 2E)
        "w1_u": uniform(ks[2], (emb_dim, h1), 2 * emb_dim),
        "w1_i": uniform(ks[3], (emb_dim, h1), 2 * emb_dim),
        "b1": uniform(ks[4], (1, h1), 2 * emb_dim),
        "w2": uniform(ks[5], (h1, h2), h1),
        "b2": uniform(ks[6], (1, h2), h1),
        # final projection stored as a (1, H2) row vector
        "w3": uniform(ks[7], (1, h2), h2),
        "b3": uniform(ks[8], (1, 1), h2),
    }


if __name__ == "__main__":
    key = jax.random.PRNGKey(0)
    k_param, k_user, k_item = jax.random.split(key, 3)

    NUM_USERS, NUM_ITEMS = 64, 128
    EMB_DIM, H1, H2 = 32, 64, 32
    BATCH = 512    # e.g. 256 positive pairs + 256 negatives from the data generator

    params = init_params(k_param, NUM_USERS, NUM_ITEMS, EMB_DIM, H1, H2)

    user_ids = jax.random.randint(k_user, (BATCH,), 0, NUM_USERS, dtype=jnp.int32)
    item_ids = jax.random.randint(k_item, (BATCH,), 0, NUM_ITEMS, dtype=jnp.int32)

    preds = recommender_forward(params, user_ids, item_ids)
    preds = jax.block_until_ready(preds)

    ref = reference_forward(params, user_ids, item_ids)
    ref = jax.block_until_ready(ref)

    assert preds.shape == (BATCH, 1)
    assert bool(jnp.all((preds >= 0.0) & (preds <= 1.0)))
    max_err = float(jnp.max(jnp.abs(preds - ref)))
    assert bool(jnp.allclose(preds, ref, atol=1e-3, rtol=1e-3)), max_err

    print("KERNEL_OK")
</pallas_src>

<mosaic_0001>
module attributes {stable_mosaic.version = 11 : i64} {
  func.func @_ncf_fused_kernel(%arg0: i32, %arg1: memref<512x1xi32, #tpu.memory_space<vmem>>, %arg2: memref<512x1xi32, #tpu.memory_space<vmem>>, %arg3: memref<64x32xbf16, #tpu.memory_space<vmem>>, %arg4: memref<128x32xbf16, #tpu.memory_space<vmem>>, %arg5: memref<32x64xbf16, #tpu.memory_space<vmem>>, %arg6: memref<32x64xbf16, #tpu.memory_space<vmem>>, %arg7: memref<1x64xf32, #tpu.memory_space<vmem>>, %arg8: memref<64x32xbf16, #tpu.memory_space<vmem>>, %arg9: memref<1x32xf32, #tpu.memory_space<vmem>>, %arg10: memref<1x32xbf16, #tpu.memory_space<vmem>>, %arg11: memref<1x1xf32, #tpu.memory_space<smem>>, %arg12: memref<1x512xf32, #tpu.memory_space<vmem>>) attributes {dimension_semantics = [#tpu.dimension_semantics<parallel>], iteration_bounds = array<i64: 1>, scalar_prefetch = 0 : i64, scratch_operands = 0 : i64, tpu.core_type = #tpu.core_type<tc>, window_params = [{transform_indices = @transform_0, window_bounds = array<i64: 512, 1>}, {transform_indices = @transform_1, window_bounds = array<i64: 512, 1>}, {pipeline_mode = #tpu.pipeline_mode<synchronous>, transform_indices = @transform_2, window_bounds = array<i64: 64, 32>}, {pipeline_mode = #tpu.pipeline_mode<synchronous>, transform_indices = @transform_3, window_bounds = array<i64: 128, 32>}, {pipeline_mode = #tpu.pipeline_mode<synchronous>, transform_indices = @transform_4, window_bounds = array<i64: 32, 64>}, {pipeline_mode = #tpu.pipeline_mode<synchronous>, transform_indices = @transform_5, window_bounds = array<i64: 32, 64>}, {pipeline_mode = #tpu.pipeline_mode<synchronous>, transform_indices = @transform_6, window_bounds = array<i64: 1, 64>}, {pipeline_mode = #tpu.pipeline_mode<synchronous>, transform_indices = @transform_7, window_bounds = array<i64: 64, 32>}, {pipeline_mode = #tpu.pipeline_mode<synchronous>, transform_indices = @transform_8, window_bounds = array<i64: 1, 32>}, {pipeline_mode = #tpu.pipeline_mode<synchronous>, transform_indices = @transform_9, window_bounds = array<i64: 1, 32>}, {transform_indices = @transform_10, window_bounds = array<i64: 1, 1>}, {transform_indices = @transform_11, window_bounds = array<i64: 1, 512>}]} {
    %0 = tpu.iota {dimensions = array<i32: 1>} : vector<512x64xi32>
    %c0 = arith.constant 0 : index
    %c0_0 = arith.constant 0 : index
    %1 = vector.load %arg1[%c0, %c0_0] : memref<512x1xi32, #tpu.memory_space<vmem>>, vector<512x1xi32>
    %2 = vector.broadcast %1 : vector<512x1xi32> to vector<512x64xi32>
    %3 = arith.cmpi eq, %0, %2 : vector<512x64xi32>
    %cst = arith.constant 1.000000e+00 : f32
    %cst_1 = arith.constant 0.000000e+00 : f32
    %4 = vector.broadcast %cst : f32 to vector<512x64xf32>
    %5 = vector.broadcast %cst_1 : f32 to vector<512x64xf32>
    %6 = arith.select %3, %4, %5 : vector<512x64xi1>, vector<512x64xf32>
    %7 = arith.truncf %6 : vector<512x64xf32> to vector<512x64xbf16>
    %c0_2 = arith.constant 0 : index
    %c0_3 = arith.constant 0 : index
    %8 = vector.load %arg3[%c0_2, %c0_3] : memref<64x32xbf16, #tpu.memory_space<vmem>>, vector<64x32xbf16>
    %cst_4 = arith.constant dense<0.000000e+00> : vector<512x32xf32>
    %9 = tpu.matmul %7, %8, %cst_4 {dimension_numbers = #tpu.dot_dimension_numbers<[1], [0], [0], [1], [0, 0, 1, 1], [], []>} : vector<512x64xbf16>, vector<64x32xbf16>, vector<512x32xf32> -> vector<512x32xf32>
    %10 = arith.truncf %9 : vector<512x32xf32> to vector<512x32xbf16>
    %11 = tpu.iota {dimensions = array<i32: 1>} : vector<512x128xi32>
    %c0_5 = arith.constant 0 : index
    %c0_6 = arith.constant 0 : index
    %12 = vector.load %arg2[%c0_5, %c0_6] : memref<512x1xi32, #tpu.memory_space<vmem>>, vector<512x1xi32>
    %13 = vector.broadcast %12 : vector<512x1xi32> to vector<512x128xi32>
    %14 = arith.cmpi eq, %11, %13 : vector<512x128xi32>
    %cst_7 = arith.constant 1.000000e+00 : f32
    %cst_8 = arith.constant 0.000000e+00 : f32
    %15 = vector.broadcast %cst_7 : f32 to vector<512x128xf32>
    %16 = vector.broadcast %cst_8 : f32 to vector<512x128xf32>
    %17 = arith.select %14, %15, %16 : vector<512x128xi1>, vector<512x128xf32>
    %18 = arith.truncf %17 : vector<512x128xf32> to vector<512x128xbf16>
    %c0_9 = arith.constant 0 : index
    %c0_10 = arith.constant 0 : index
    %19 = vector.load %arg4[%c0_9, %c0_10] : memref<128x32xbf16, #tpu.memory_space<vmem>>, vector<128x32xbf16>
    %cst_11 = arith.constant dense<0.000000e+00> : vector<512x32xf32>
    %20 = tpu.matmul %18, %19, %cst_11 {dimension_numbers = #tpu.dot_dimension_numbers<[1], [0], [0], [1], [0, 0, 1, 1], [], []>} : vector<512x128xbf16>, vector<128x32xbf16>, vector<512x32xf32> -> vector<512x32xf32>
    %21 = arith.truncf %20 : vector<512x32xf32> to vector<512x32xbf16>
    %c0_12 = arith.constant 0 : index
    %c0_13 = arith.constant 0 : index
    %22 = vector.load %arg5[%c0_12, %c0_13] : memref<32x64xbf16, #tpu.memory_space<vmem>>, vector<32x64xbf16>
    %cst_14 = arith.constant dense<0.000000e+00> : vector<512x64xf32>
    %23 = tpu.matmul %10, %22, %cst_14 {dimension_numbers = #tpu.dot_dimension_numbers<[1], [0], [0], [1], [0, 0, 1, 1], [], []>} : vector<512x32xbf16>, vector<32x64xbf16>, vector<512x64xf32> -> vector<512x64xf32>
    %c0_15 = arith.constant 0 : index
    %c0_16 = arith.constant 0 : index
    %24 = vector.load %arg6[%c0_15, %c0_16] : memref<32x64xbf16, #tpu.memory_space<vmem>>, vector<32x64xbf16>
    %cst_17 = arith.constant dense<0.000000e+00> : vector<512x64xf32>
    %25 = tpu.matmul %21, %24, %cst_17 {dimension_numbers = #tpu.dot_dimension_numbers<[1], [0], [0], [1], [0, 0, 1, 1], [], []>} : vector<512x32xbf16>, vector<32x64xbf16>, vector<512x64xf32> -> vector<512x64xf32>
    %26 = arith.addf %23, %25 : vector<512x64xf32>
    %c0_18 = arith.constant 0 : index
    %c0_19 = arith.constant 0 : index
    %27 = vector.load %arg7[%c0_18, %c0_19] : memref<1x64xf32, #tpu.memory_space<vmem>>, vector<1x64xf32>
    %28 = vector.broadcast %27 : vector<1x64xf32> to vector<512x64xf32>
    %29 = arith.addf %26, %28 : vector<512x64xf32>
    %cst_20 = arith.constant 0.000000e+00 : f32
    %30 = vector.broadcast %cst_20 : f32 to vector<512x64xf32>
    %31 = arith.maximumf %29, %30 : vector<512x64xf32>
    %32 = arith.truncf %31 : vector<512x64xf32> to vector<512x64xbf16>
    %c0_21 = arith.constant 0 : index
    %c0_22 = arith.constant 0 : index
    %33 = vector.load %arg8[%c0_21, %c0_22] : memref<64x32xbf16, #tpu.memory_space<vmem>>, vector<64x32xbf16>
    %cst_23 = arith.constant dense<0.000000e+00> : vector<512x32xf32>
    %34 = tpu.matmul %32, %33, %cst_23 {dimension_numbers = #tpu.dot_dimension_numbers<[1], [0], [0], [1], [0, 0, 1, 1], [], []>} : vector<512x64xbf16>, vector<64x32xbf16>, vector<512x32xf32> -> vector<512x32xf32>
    %c0_24 = arith.constant 0 : index
    %c0_25 = arith.constant 0 : index
    %35 = vector.load %arg9[%c0_24, %c0_25] : memref<1x32xf32, #tpu.memory_space<vmem>>, vector<1x32xf32>
    %36 = vector.broadcast %35 : vector<1x32xf32> to vector<512x32xf32>
    %37 = arith.addf %34, %36 : vector<512x32xf32>
    %cst_26 = arith.constant 0.000000e+00 : f32
    %38 = vector.broadcast %cst_26 : f32 to vector<512x32xf32>
    %39 = arith.maximumf %37, %38 : vector<512x32xf32>
    %c0_27 = arith.constant 0 : index
    %c0_28 = arith.constant 0 : index
    %40 = vector.load %arg10[%c0_27, %c0_28] : memref<1x32xbf16, #tpu.memory_space<vmem>>, vector<1x32xbf16>
    %41 = arith.truncf %39 : vector<512x32xf32> to vector<512x32xbf16>
    %cst_29 = arith.constant dense<0.000000e+00> : vector<1x512xf32>
    %42 = tpu.matmul %40, %41, %cst_29 {dimension_numbers = #tpu.dot_dimension_numbers<[1], [1], [0], [0], [0, 0, 1, 0], [], []>} : vector<1x32xbf16>, vector<512x32xbf16>, vector<1x512xf32> -> vector<1x512xf32>
    %c0_30 = arith.constant 0 : index
    %c0_31 = arith.constant 0 : index
    %43 = memref.load %arg11[%c0_30, %c0_31] : memref<1x1xf32, #tpu.memory_space<smem>>
    %44 = vector.broadcast %43 : f32 to vector<1x512xf32>
    %45 = arith.addf %42, %44 : vector<1x512xf32>
    %46 = arith.negf %45 : vector<1x512xf32>
    %47 = math.exp %46 : vector<1x512xf32>
    %cst_32 = arith.constant 1.000000e+00 : f32
    %48 = vector.broadcast %cst_32 : f32 to vector<1x512xf32>
    %49 = arith.addf %48, %47 : vector<1x512xf32>
    %50 = arith.divf %48, %49 : vector<1x512xf32>
    %c0_33 = arith.constant 0 : index
    %c0_34 = arith.constant 0 : index
    %51 = vector.load %arg12[%c0_33, %c0_34] : memref<1x512xf32, #tpu.memory_space<vmem>>, vector<1x512xf32>
    tpu.vector_store %arg12[%c0_33, %c0_34], %50 {strides = array<i32>} : memref<1x512xf32, #tpu.memory_space<vmem>>, vector<1x512xf32>,
    return
  }
  func.func @transform_0(%arg0: i32) -> (i32, i32) {
    %c0_i32 = arith.constant 0 : i32
    %c0_i32_0 = arith.constant 0 : i32
    return %arg0, %c0_i32 : i32, i32
  }
  func.func @transform_1(%arg0: i32) -> (i32, i32) {
    %c0_i32 = arith.constant 0 : i32
    %c0_i32_0 = arith.constant 0 : i32
    return %arg0, %c0_i32 : i32, i32
  }
  func.func @transform_2(%arg0: i32) -> (i32, i32) {
    %c0_i32 = arith.constant 0 : i32
    %c0_i32_0 = arith.constant 0 : i32
    %c0_i32_1 = arith.constant 0 : i32
    return %c0_i32, %c0_i32_0 : i32, i32
  }
  func.func @transform_3(%arg0: i32) -> (i32, i32) {
    %c0_i32 = arith.constant 0 : i32
    %c0_i32_0 = arith.constant 0 : i32
    %c0_i32_1 = arith.constant 0 : i32
    return %c0_i32, %c0_i32_0 : i32, i32
  }
  func.func @transform_4(%arg0: i32) -> (i32, i32) {
    %c0_i32 = arith.constant 0 : i32
    %c0_i32_0 = arith.constant 0 : i32
    %c0_i32_1 = arith.constant 0 : i32
    return %c0_i32, %c0_i32_0 : i32, i32
  }
  func.func @transform_5(%arg0: i32) -> (i32, i32) {
    %c0_i32 = arith.constant 0 : i32
    %c0_i32_0 = arith.constant 0 : i32
    %c0_i32_1 = arith.constant 0 : i32
    return %c0_i32, %c0_i32_0 : i32, i32
  }
  func.func @transform_6(%arg0: i32) -> (i32, i32) {
    %c0_i32 = arith.constant 0 : i32
    %c0_i32_0 = arith.constant 0 : i32
    %c0_i32_1 = arith.constant 0 : i32
    return %c0_i32, %c0_i32_0 : i32, i32
  }
  func.func @transform_7(%arg0: i32) -> (i32, i32) {
    %c0_i32 = arith.constant 0 : i32
    %c0_i32_0 = arith.constant 0 : i32
    %c0_i32_1 = arith.constant 0 : i32
    return %c0_i32, %c0_i32_0 : i32, i32
  }
  func.func @transform_8(%arg0: i32) -> (i32, i32) {
    %c0_i32 = arith.constant 0 : i32
    %c0_i32_0 = arith.constant 0 : i32
    %c0_i32_1 = arith.constant 0 : i32
    return %c0_i32, %c0_i32_0 : i32, i32
  }
  func.func @transform_9(%arg0: i32) -> (i32, i32) {
    %c0_i32 = arith.constant 0 : i32
    %c0_i32_0 = arith.constant 0 : i32
    %c0_i32_1 = arith.constant 0 : i32
    return %c0_i32, %c0_i32_0 : i32, i32
  }
  func.func @transform_10(%arg0: i32) -> (i32, i32) {
    %c0_i32 = arith.constant 0 : i32
    %c0_i32_0 = arith.constant 0 : i32
    %c0_i32_1 = arith.constant 0 : i32
    return %c0_i32, %c0_i32_0 : i32, i32
  }
  func.func @transform_11(%arg0: i32) -> (i32, i32) {
    %c0_i32 = arith.constant 0 : i32
    %c0_i32_0 = arith.constant 0 : i32
    return %c0_i32, %arg0 : i32, i32
  }
}

</mosaic_0001>

<bundles_post_ra>
// kernel: recommender_forward.1
= control target key start
LH: loop header
LB: loop body
LE: loop exit
PB: predicated region body
PF: predicated region fallthrough
CT: control target
= control target key end

     0   :  { %v3221_v3 = vmov 0   ;;  %s5300_s0 = inlined_call_operand.vmem [shape: s32[512,1], index: 0, kind: input, shape index: {}]   ;;  %s5301_s1 = inlined_call_operand.vmem [shape: s32[512,1], index: 1, kind: input, shape index: {}]   ;;  %s5302_s2 = inlined_call_operand.vmem [shape: bf16[64,32], index: 2, kind: input, shape index: {}]   ;;  %s5303_s3 = inlined_call_operand.vmem [shape: bf16[128,32], index: 3, kind: input, shape index: {}]   ;;  %s5304_s4 = inlined_call_operand.vmem [shape: bf16[32,64], index: 4, kind: input, shape index: {}]   ;;  %s5305_s5 = inlined_call_operand.vmem [shape: bf16[32,64], index: 5, kind: input, shape index: {}]   ;;  %s5306_s6 = inlined_call_operand.vmem [shape: f32[1,64], index: 6, kind: input, shape index: {}]   ;;  %s5307_s7 = inlined_call_operand.vmem [shape: bf16[64,32], index: 7, kind: input, shape index: {}]   ;;  %s5308_s8 = inlined_call_operand.vmem [shape: f32[1,32], index: 8, kind: input, shape index: {}]   ;;  %s5309_s9 = inlined_call_operand.vmem [shape: bf16[1,32], index: 9, kind: input, shape index: {}]   ;;  %s5310_s10 = inlined_call_operand.<no memory space> [shape: f32[1,1], index: 10, kind: input, shape index: {}]   ;;  %s5311_s11 = inlined_call_operand.hbm [shape: f32[1,512], index: 11, kind: output, shape index: {}]  }
   0x1   :  { %v87_v0 = vld [vmem:[%s5300_s0 + $0x160] sm:$0xff]  ;;  %v85_v1 = vld [vmem:[%s5300_s0 + $0x150] sm:$0xff]  ;;  %3175 = vset.pattern.permute.xlu2 %v3221_v3  ;;  %3174 = vset.pattern.permute.xlu1 %v3221_v3 }
   0x2   :  { %v83_v2 = vld [vmem:[%s5300_s0 + $0x140] sm:$0xff]  ;;  %3173 = vset.pattern.permute.xlu0 %v3221_v3  ;;  %240 = vperm.xlu2 %3175, %v87_v0  }
   0x3   :  { %234 = vperm.xlu1 %3174, %v85_v1   ;;  %228 = vperm.xlu0 %3173, %v83_v2  }
   0x4   :  { %17 = vsyncpa [#allocation4], 0  ;;  %v88_v4 = vld [vmem:[%s5300_s0 + $0x168] sm:$0xff]  ;;  %v86_v5 = vld [vmem:[%s5300_s0 + $0x158] sm:$0xff]  ;;  %v5313_v53 = vlaneseq  ;;  %v5314_v0 = vmov 0.0   ;;  %vm5312_vm2 = vcmask 523264  }
   0x5   :  { %v84_v6 = vld [vmem:[%s5300_s0 + $0x148] sm:$0xff]  ;;  %v91_v7 = vld [vmem:[%s5300_s0 + $0x180] sm:$0xff]  ;;  %v90_v8 = vld [vmem:[%s5300_s0 + $0x178] sm:$0xff] }
   0x6   :  { %v89_v9 = vld [vmem:[%s5300_s0 + $0x170] sm:$0xff]  ;;  %v94_v10 = vld [vmem:[%s5300_s0 + $0x198] sm:$0xff]  ;;  %v92_v12 = vld [vmem:[%s5300_s0 + $0x188] sm:$0xff]  ;;  %v3444_v58 = vand.u32 127, %v5313_v53 }
   0x7   :  { %v93_v11 = vld [vmem:[%s5300_s0 + $0x190] sm:$0xff]  ;;  %v96_v14 = vld [vmem:[%s5300_s0 + $0x1a8] sm:$0xff]  ;;  %v95_v15 = vld [vmem:[%s5300_s0 + $0x1a0] sm:$0xff] }
   0x8   :  { %v97_v13 = vld [vmem:[%s5300_s0 + $0x1b0] sm:$0xff]  ;;  %v100_v16 = vld [vmem:[%s5300_s0 + $0x1c8] sm:$0xff]  ;;  %v99_v17 = vld [vmem:[%s5300_s0 + $0x1c0] sm:$0xff] }
   0x9   :  { %v98_v18 = vld [vmem:[%s5300_s0 + $0x1b8] sm:$0xff]  ;;  %v791_v19 = vld [vmem:[%s5301_s1 + $0x10] sm:$0xff]  ;;  %v790_v20 = vld [vmem:[%s5301_s1 + $0x8] sm:$0xff] }
   0xa   :  { %243 = vperm.xlu2 %3175, %v88_v4   ;;  %v789_v21 = vld [vmem:[%s5301_s1] sm:$0xff]  ;;  %v794_v22 = vld [vmem:[%s5301_s1 + $0x28] sm:$0xff]  ;;  %v792_v24 = vld [vmem:[%s5301_s1 + $0x18] sm:$0xff] }
   0xb   :  { %237 = vperm.xlu1 %3174, %v86_v5   ;;  %231 = vperm.xlu0 %3173, %v84_v6   ;;  %v793_v23 = vld [vmem:[%s5301_s1 + $0x20] sm:$0xff]  ;;  %v796_v26 = vld [vmem:[%s5301_s1 + $0x38] sm:$0xff]  ;;  %v795_v27 = vld [vmem:[%s5301_s1 + $0x30] sm:$0xff] }
   0xc   :  { %v797_v25 = vld [vmem:[%s5301_s1 + $0x40] sm:$0xff]  ;;  %v800_v28 = vld [vmem:[%s5301_s1 + $0x58] sm:$0xff]  ;;  %v799_v29 = vld [vmem:[%s5301_s1 + $0x50] sm:$0xff] }
   0xd   :  { %v798_v30 = vld [vmem:[%s5301_s1 + $0x48] sm:$0xff]  ;;  %v3142_v31 = vld [vmem:[%s5302_s2 + $0x18] sm:$0xff]  ;;  %v803_v32 = vld [vmem:[%s5301_s1 + $0x70] sm:$0xff] }
   0xe   :  { %v802_v33 = vld [vmem:[%s5301_s1 + $0x68] sm:$0xff]  ;;  %v801_v34 = vld [vmem:[%s5301_s1 + $0x60] sm:$0xff]  ;;  %3159 = vmatpush.bf16.msra.mxu1 %v3142_v31  ;;  %592 = vmatpush.bf16.msra.mxu0 %v3142_v31  ;;  %v3141_v35 = vld [vmem:[%s5302_s2 + $0x10] sm:$0xff] }
   0xf   :  { %3160 = vmatpush.bf16.msra.mxu3 %v3142_v31  ;;  %v806_v36 = vld [vmem:[%s5301_s1 + $0x88] sm:$0xff]  ;;  %v805_v37 = vld [vmem:[%s5301_s1 + $0x80] sm:$0xff]  ;;  %v804_v38 = vld [vmem:[%s5301_s1 + $0x78] sm:$0xff] }
  0x10   :  { %v3140_v39 = vld [vmem:[%s5302_s2 + $0x8] sm:$0xff]  ;;  %v3139_v41 = vld [vmem:[%s5302_s2] sm:$0xff]  ;;  %v808_v43 = vld [vmem:[%s5301_s1 + $0x98] sm:$0xff] }
  0x11   :  { %v809_v42 = vld [vmem:[%s5301_s1 + $0xa0] sm:$0xff]  ;;  %v807_v44 = vld [vmem:[%s5301_s1 + $0x90] sm:$0xff]  ;;  %v812_v46 = vld [vmem:[%s5301_s1 + $0xb8] sm:$0xff] }
  0x12   :  { %252 = vperm.xlu2 %3175, %v91_v7   ;;  %3161 = vmatpush.bf16.msra.mxu1 %v3141_v35  ;;  %v811_v47 = vld [vmem:[%s5301_s1 + $0xb0] sm:$0xff]  ;;  %v810_v48 = vld [vmem:[%s5301_s1 + $0xa8] sm:$0xff]  ;;  %v813_v50 = vld [vmem:[%s5301_s1 + $0xc0] sm:$0xff] }
  0x13   :  { %249 = vperm.xlu1 %3174, %v90_v8   ;;  %246 = vperm.xlu0 %3173, %v89_v9   ;;  %v44_v51 = vld [vmem:[%s5300_s0 + $0x8] sm:$0xff]  ;;  %v43_v52 = vld [vmem:[%s5300_s0] sm:$0xff]  ;;  %v46_v57 = vld [vmem:[%s5300_s0 + $0x18] sm:$0xff] }
  0x14   :  { %593 = vmatpush.bf16.msra.mxu0 %v3141_v35  ;;  %3162 = vmatpush.bf16.msra.mxu3 %v3141_v35  ;;  %v45_v59 = vld [vmem:[%s5300_s0 + $0x10] sm:$0xff]  ;;  %v814_v60 = vld [vmem:[%s5301_s1 + $0xc8] sm:$0xff]  ;;  %v47_v3 = vld [vmem:[%s5300_s0 + $0x20] sm:$0xff] }
  0x15   :  { %v816_v5 = vld [vmem:[%s5301_s1 + $0xd8] sm:$0xff]  ;;  %v815_v6 = vld [vmem:[%s5301_s1 + $0xd0] sm:$0xff] }
  0x16   :  { %3163 = vmatpush.bf16.msra.mxu1 %v3140_v39 }
  0x18   :  { %594 = vmatpush.bf16.msra.mxu0 %v3140_v39  ;;  %3164 = vmatpush.bf16.msra.mxu3 %v3140_v39 }
  0x1a   :  { %261 = vperm.xlu2 %3175, %v94_v10   ;;  %3165 = vmatpush.bf16.msra.mxu1 %v3139_v41  ;;  %v818_v10 = vld [vmem:[%s5301_s1 + $0xe8] sm:$0xff] }
  0x1b   :  { %258 = vperm.xlu1 %3174, %v93_v11   ;;  %255 = vperm.xlu0 %3173, %v92_v12   ;;  %v817_v11 = vld [vmem:[%s5301_s1 + $0xe0] sm:$0xff]  ;;  %v48_v12 = vld [vmem:[%s5300_s0 + $0x28] sm:$0xff] }
  0x1c   :  { %595 = vmatpush.bf16.msra.mxu0 %v3139_v41  ;;  %3166 = vmatpush.bf16.msra.mxu3 %v3139_v41 }
  0x22   :  { %270 = vperm.xlu2 %3175, %v97_v13  }
  0x23   :  { %267 = vperm.xlu1 %3174, %v96_v14   ;;  %264 = vperm.xlu0 %3173, %v95_v15  }
  0x2a   :  { %279 = vperm.xlu2 %3175, %v100_v16  }
  0x2b   :  { %276 = vperm.xlu1 %3174, %v99_v17   ;;  %273 = vperm.xlu0 %3173, %v98_v18   ;;  %v819_v18 = vld [vmem:[%s5301_s1 + $0xf0] sm:$0xff] }
  0x32   :  { %860 = vperm.xlu2 %3175, %v791_v19  }
  0x33   :  { %857 = vperm.xlu1 %3174, %v790_v20   ;;  %854 = vperm.xlu0 %3173, %v789_v21   ;;  %v50_v20 = vld [vmem:[%s5300_s0 + $0x38] sm:$0xff]  ;;  %v49_v21 = vld [vmem:[%s5300_s0 + $0x30] sm:$0xff] }
  0x3a   :  { %869 = vperm.xlu2 %3175, %v794_v22  }
  0x3b   :  { %866 = vperm.xlu1 %3174, %v793_v23   ;;  %863 = vperm.xlu0 %3173, %v792_v24  }
  0x42   :  { %878 = vperm.xlu2 %3175, %v797_v25  }
  0x43   :  { %875 = vperm.xlu1 %3174, %v796_v26   ;;  %872 = vperm.xlu0 %3173, %v795_v27   ;;  %v52_v27 = vld [vmem:[%s5300_s0 + $0x48] sm:$0xff] }
  0x4a   :  { %887 = vperm.xlu2 %3175, %v800_v28  }
  0x4b   :  { %884 = vperm.xlu1 %3174, %v799_v29   ;;  %881 = vperm.xlu0 %3173, %v798_v30   ;;  %v51_v29 = vld [vmem:[%s5300_s0 + $0x40] sm:$0xff]  ;;  %v820_v30 = vld [vmem:[%s5301_s1 + $0xf8] sm:$0xff] }
  0x52   :  { %896 = vperm.xlu2 %3175, %v803_v32  }
  0x53   :  { %893 = vperm.xlu1 %3174, %v802_v33   ;;  %890 = vperm.xlu0 %3173, %v801_v34  }
  0x5a   :  { %905 = vperm.xlu2 %3175, %v806_v36  }
  0x5b   :  { %902 = vperm.xlu1 %3174, %v805_v37   ;;  %899 = vperm.xlu0 %3173, %v804_v38  }
  0x5c   :  { %v3402_v40 = vpop.permute.xlu2 %240 }
  0x5d   :  { %vm343_vm7 = vcmp.eq.s32.totalorder %v3444_v58, %v3402_v40  ;;  %v53_v40 = vld [vmem:[%s5300_s0 + $0x50] sm:$0xff] }
  0x5e   :  { %v407_v32 = vsel %vm343_vm7, 1.0, %v5314_v0 }
  0x62   :  { %914 = vperm.xlu2 %3175, %v809_v42  }
  0x63   :  { %911 = vperm.xlu1 %3174, %v808_v43   ;;  %908 = vperm.xlu0 %3173, %v807_v44   ;;  %v822_v44 = vld [vmem:[%s5301_s1 + $0x108] sm:$0xff] }
  0x64   :  { %v3416_v45 = vpop.permute.xlu2 %243 }
  0x65   :  { %vm344_vm8 = vcmp.eq.s32.totalorder %v3444_v58, %v3416_v45  ;;  %v821_v45 = vld [vmem:[%s5301_s1 + $0x100] sm:$0xff] }
  0x66   :  { %v408_v33 = vsel %vm344_vm8, 1.0, %v5314_v0 }
  0x67   :  { %v449_v41 = vpack.c.bf16 %v408_v33, %v407_v32  ;;  %v60_v32 = vld [vmem:[%s5300_s0 + $0x88] sm:$0xff] }
  0x6a   :  { %923 = vperm.xlu2 %3175, %v812_v46  }
  0x6b   :  { %920 = vperm.xlu1 %3174, %v811_v47   ;;  %917 = vperm.xlu0 %3173, %v810_v48  }
  0x6c   :  { %v3427_v49 = vpop.permute.xlu2 %252 }
  0x72   :  { %926 = vperm.xlu2 %3175, %v813_v50  }
  0x73   :  { %111 = vperm.xlu1 %3174, %v44_v51   ;;  %108 = vperm.xlu0 %3173, %v43_v52   ;;  %v824_v51 = vld [vmem:[%s5301_s1 + $0x118] sm:$0xff]  ;;  %v823_v52 = vld [vmem:[%s5301_s1 + $0x110] sm:$0xff] }
  0x74   :  { %v3438_v54 = vpop.permute.xlu2 %261 }
  0x75   :  { %v235_v55 = vpop.permute.xlu1 %234  ;;  %v229_v56 = vpop.permute.xlu0 %228 }
  0x76   :  { %vm339_vm0 = vcmp.eq.s32.totalorder %v3444_v58, %v229_v56  ;;  %vm341_vm3 = vcmp.eq.s32.totalorder %v3444_v58, %v235_v55  ;;  %v54_v55 = vld [vmem:[%s5300_s0 + $0x58] sm:$0xff] }
  0x77   :  { %v403_v1 = vsel %vm339_vm0, 1.0, %v5314_v0  ;;  %v405_v14 = vsel %vm341_vm3, 1.0, %v5314_v0 }
  0x7a   :  { %117 = vperm.xlu2 %3175, %v46_v57  }
  0x7b   :  { %114 = vperm.xlu1 %3174, %v45_v59   ;;  %929 = vperm.xlu0 %3173, %v814_v60  }
  0x7c   :  { %v3453_v61 = vpop.permute.xlu2 %270 }
  0x7d   :  { %v238_v62 = vpop.permute.xlu1 %237  ;;  %v232_v63 = vpop.permute.xlu0 %231  ;;  %vm353_vm9 = vcmp.eq.s32.totalorder %v3444_v58, %v3453_v61 }
  0x7e   :  { %vm340_vm1 = vcmp.eq.s32.totalorder %v3444_v58, %v232_v63  ;;  %vm342_vm4 = vcmp.eq.s32.totalorder %v3444_v58, %v238_v62  ;;  %v3534_v36 = vsel %vm353_vm9, 1.0, %v5314_v0  ;;  %v825_v63 = vld [vmem:[%s5301_s1 + $0x120] sm:$0xff] }
  0x7f   :  { %v404_v2 = vsel %vm340_vm1, 1.0, %v5314_v0  ;;  %v406_v15 = vsel %vm342_vm4, 1.0, %v5314_v0 }
  0x80   :  { %v447_v4 = vpack.c.bf16 %v404_v2, %v403_v1  ;;  %v448_v19 = vpack.c.bf16 %v406_v15, %v405_v14  ;;  %v78_v2 = vld [vmem:[%s5300_s0 + $0x118] sm:$0xff] }
  0x82   :  { %2895 = vmatmul.msk.bf16.vlgmr.msra.gmra.mxu1 %vm5312_vm2, %v447_v4  ;;  %120 = vperm.xlu2 %3175, %v47_v3   ;;  %v56_v3 = vld [vmem:[%s5300_s0 + $0x68] sm:$0xff]  ;;  %v55_v4 = vld [vmem:[%s5300_s0 + $0x60] sm:$0xff] }
  0x83   :  { %935 = vperm.xlu1 %3174, %v816_v5   ;;  %932 = vperm.xlu0 %3173, %v815_v6  }
  0x84   :  { %v280_v7 = vpop.permute.xlu2 %279 }
  0x85   :  { %v3468_v8 = vpop.permute.xlu1 %249  ;;  %v3470_v9 = vpop.permute.xlu0 %246  ;;  %vm356_vm10 = vcmp.eq.s32.totalorder %v3444_v58, %v280_v7 }
  0x86   :  { %v3537_v37 = vsel %vm356_vm10, 1.0, %v5314_v0  ;;  %vm346_vm0 = vcmp.eq.s32.totalorder %v3444_v58, %v3468_v8  ;;  %vm345_vm1 = vcmp.eq.s32.totalorder %v3444_v58, %v3470_v9  ;;  %v58_v9 = vld [vmem:[%s5300_s0 + $0x78] sm:$0xff] }
  0x87   :  { %v410_v57 = vsel %vm346_vm0, 1.0, %v5314_v0  ;;  %v409_v59 = vsel %vm345_vm1, 1.0, %v5314_v0 }
  0x88   :  { %v450_v1 = vpack.c.bf16 %v410_v57, %v409_v59  ;;  %v64_v59 = vld [vmem:[%s5300_s0 + $0xa8] sm:$0xff] }
  0x8a   :  { %941 = vperm.xlu2 %3175, %v818_v10   ;;  %v57_v10 = vld [vmem:[%s5300_s0 + $0x70] sm:$0xff] }
  0x8b   :  { %938 = vperm.xlu1 %3174, %v817_v11   ;;  %123 = vperm.xlu0 %3173, %v48_v12   ;;  %v826_v11 = vld [vmem:[%s5301_s1 + $0x128] sm:$0xff] }
  0x8c   :  { %v3483_v13 = vpop.permute.xlu2 %860 }
  0x8d   :  { %v3487_v16 = vpop.permute.xlu1 %258  ;;  %v3489_v17 = vpop.permute.xlu0 %255 }
  0x92   :  { %2896 = vmatmul.msk.bf16.gmra.mxu1 %vm5312_vm2, %v448_v19  ;;  %944 = vperm.xlu2 %3175, %v819_v18  }
  0x93   :  { %129 = vperm.xlu1 %3174, %v50_v20   ;;  %126 = vperm.xlu0 %3173, %v49_v21   ;;  %v828_v21 = vld [vmem:[%s5301_s1 + $0x138] sm:$0xff] }
  0x94   :  { %v870_v22 = vpop.permute.xlu2 %869 }
  0x95   :  { %v268_v23 = vpop.permute.xlu1 %267  ;;  %v265_v24 = vpop.permute.xlu0 %264  ;;  %vm1050_vm3 = vcmp.eq.s32.totalorder %v3444_v58, %v870_v22  ;;  %v827_v22 = vld [vmem:[%s5301_s1 + $0x130] sm:$0xff] }
  0x96   :  { %vm352_vm5 = vcmp.eq.s32.totalorder %v3444_v58, %v268_v23  ;;  %vm351_vm6 = vcmp.eq.s32.totalorder %v3444_v58, %v265_v24 }
  0x97   :  { %v3504_v25 = vsel %vm352_vm5, 1.0, %v5314_v0  ;;  %v3507_v26 = vsel %vm351_vm6, 1.0, %v5314_v0  ;;  %vm1047_vm6 = vcmp.eq.s32.totalorder %v3444_v58, %v3483_v13 }
  0x98   :  { %v453_v28 = vpack.c.bf16 %v3504_v25, %v3507_v26  ;;  %v3145_v25 = vld [vmem:[%s5303_s3 + $0x10] sm:$0xff] }
  0x9a   :  { %135 = vperm.xlu2 %3175, %v52_v27  }
  0x9b   :  { %132 = vperm.xlu1 %3174, %v51_v29   ;;  %947 = vperm.xlu0 %3173, %v820_v30   ;;  %v830_v30 = vld [vmem:[%s5301_s1 + $0x148] sm:$0xff] }
  0x9c   :  { %v3527_v31 = vpop.permute.xlu2 %878 }
  0x9d   :  { %v277_v34 = vpop.permute.xlu1 %276  ;;  %v274_v35 = vpop.permute.xlu0 %273 }
  0x9e   :  { %vm355_vm11 = vcmp.eq.s32.totalorder %v3444_v58, %v277_v34  ;;  %vm354_vm12 = vcmp.eq.s32.totalorder %v3444_v58, %v274_v35 }
  0x9f   :  { %v3540_v38 = vsel %vm355_vm11, 1.0, %v5314_v0  ;;  %v3543_v39 = vsel %vm354_vm12, 1.0, %v5314_v0  ;;  %vm347_vm12 = vcmp.eq.s32.totalorder %v3444_v58, %v3427_v49 }
  0xa0   :  { %v455_v42 = vpack.c.bf16 %v3537_v37, %v3540_v38  ;;  %v454_v43 = vpack.c.bf16 %v3543_v39, %v3534_v36  ;;  %v411_v13 = vsel %vm347_vm12, 1.0, %v5314_v0  ;;  %vm350_vm12 = vcmp.eq.s32.totalorder %v3444_v58, %v3438_v54  ;;  %v842_v37 = vld [vmem:[%s5301_s1 + $0x1a8] sm:$0xff] }
  0xa1   :  { %v414_v34 = vsel %vm350_vm12, 1.0, %v5314_v0 }
  0xa2   :  { %2897 = vmatmul.msk.bf16.gmra.mxu1 %vm5312_vm2, %v449_v41  ;;  %138 = vperm.xlu2 %3175, %v53_v40  }
  0xa3   :  { %953 = vperm.xlu1 %3174, %v822_v44   ;;  %950 = vperm.xlu0 %3173, %v821_v45  }
  0xa4   :  { %v888_v46 = vpop.permute.xlu2 %887 }
  0xa5   :  { %v858_v47 = vpop.permute.xlu1 %857  ;;  %v855_v48 = vpop.permute.xlu0 %854 }
  0xa6   :  { %vm1046_vm13 = vcmp.eq.s32.totalorder %v3444_v58, %v858_v47  ;;  %vm1045_vm14 = vcmp.eq.s32.totalorder %v3444_v58, %v855_v48  ;;  %v61_v47 = vld [vmem:[%s5300_s0 + $0x90] sm:$0xff]  ;;  %v3150_v48 = vld [vmem:[%s5303_s3 + $0x38] sm:$0xff] }
  0xa7   :  { %vm3561_vm15 = vmpackc.low %vm1046_vm13, %vm1045_vm14  ;;  %vm348_vm13 = vcmp.eq.s32.totalorder %v3444_v58, %v3489_v17  ;;  %vm1056_vm14 = vcmp.eq.s32.totalorder %v3444_v58, %v888_v46  ;;  %v59_v17 = vld [vmem:[%s5300_s0 + $0x80] sm:$0xff]  ;;  %v62_v46 = vld [vmem:[%s5300_s0 + $0x98] sm:$0xff]  ;;  %1269 = vmatpush.bf16.msrb.mxu1 %v3150_v48 }
  0xa8   :  { %v412_v14 = vsel %vm348_vm13, 1.0, %v5314_v0  ;;  %vm349_vm13 = vcmp.eq.s32.totalorder %v3444_v58, %v3487_v16  ;;  %v831_v16 = vld [vmem:[%s5301_s1 + $0x150] sm:$0xff] }
  0xa9   :  { %v451_v19 = vpack.c.bf16 %v412_v14, %v411_v13  ;;  %v413_v35 = vsel %vm349_vm13, 1.0, %v5314_v0 }
  0xaa   :  { %959 = vperm.xlu2 %3175, %v824_v51   ;;  %v452_v44 = vpack.c.bf16 %v414_v34, %v413_v35  ;;  %v68_v34 = vld [vmem:[%s5300_s0 + $0xc8] sm:$0xff] }
  0xab   :  { %956 = vperm.xlu1 %3174, %v823_v52   ;;  %141 = vperm.xlu0 %3173, %v54_v55  }
  0xac   :  { %v3578_v56 = vpop.permute.xlu2 %896 }
  0xad   :  { %v867_v60 = vpop.permute.xlu1 %866  ;;  %v864_v61 = vpop.permute.xlu0 %863 }
  0xae   :  { %vm1049_vm4 = vcmp.eq.s32.totalorder %v3444_v58, %v867_v60  ;;  %vm1048_vm5 = vcmp.eq.s32.totalorder %v3444_v58, %v864_v61  ;;  %v63_v60 = vld [vmem:[%s5300_s0 + $0xa0] sm:$0xff]  ;;  %v832_v61 = vld [vmem:[%s5301_s1 + $0x158] sm:$0xff] }
  0xaf   :  { %vm3587_vm7 = vmpackc.low %vm1050_vm3, %vm1049_vm4  ;;  %vm1053_vm3 = vcmp.eq.s32.totalorder %v3444_v58, %v3527_v31  ;;  %v829_v31 = vld [vmem:[%s5301_s1 + $0x140] sm:$0xff] }
  0xb0   :  { %vm3594_vm8 = vmpackc.low %vm1048_vm5, %vm1047_vm6 }
  0xb2   :  { %2898 = vmatmul.msk.bf16.gmra.mxu1 %vm5312_vm2, %v450_v1  ;;  %962 = vperm.xlu2 %3175, %v825_v63   ;;  %v3148_v63 = vld [vmem:[%s5303_s3 + $0x28] sm:$0xff] }
  0xb3   :  { %147 = vperm.xlu1 %3174, %v56_v3   ;;  %144 = vperm.xlu0 %3173, %v55_v4  }
  0xb4   :  { %v906_v5 = vpop.permute.xlu2 %905 }
  0xb5   :  { %v876_v6 = vpop.permute.xlu1 %875  ;;  %v873_v7 = vpop.permute.xlu0 %872 }
  0xb6   :  { %vm1052_vm9 = vcmp.eq.s32.totalorder %v3444_v58, %v876_v6  ;;  %vm1051_vm10 = vcmp.eq.s32.totalorder %v3444_v58, %v873_v7  ;;  %v5359_v6 = vmov 0  ;;  %v65_v7 = vld [vmem:[%s5300_s0 + $0xb0] sm:$0xff] }
  0xb7   :  { %vm3607_vm11 = vmpackc.low %vm1052_vm9, %vm1051_vm10 }
  0xba   :  { %153 = vperm.xlu2 %3175, %v58_v9   ;;  %v5361_v9 = vmov 0 }
  0xbb   :  { %150 = vperm.xlu1 %3174, %v57_v10   ;;  %965 = vperm.xlu0 %3173, %v826_v11   ;;  %v834_v10 = vld [vmem:[%s5301_s1 + $0x168] sm:$0xff]  ;;  %v833_v11 = vld [vmem:[%s5301_s1 + $0x160] sm:$0xff] }
  0xbc   :  { %v3624_v12 = vpop.permute.xlu2 %914 }
  0xbd   :  { %v885_v15 = vpop.permute.xlu1 %884  ;;  %v882_v18 = vpop.permute.xlu0 %881 }
  0xbe   :  { %vm1055_vm0 = vcmp.eq.s32.totalorder %v3444_v58, %v885_v15  ;;  %vm1054_vm1 = vcmp.eq.s32.totalorder %v3444_v58, %v882_v18  ;;  %v836_v18 = vld [vmem:[%s5301_s1 + $0x178] sm:$0xff] }
  0xbf   :  { %vm3633_vm4 = vmpackc.low %vm1056_vm14, %vm1055_vm0  ;;  %vm1062_vm14 = vcmp.eq.s32.totalorder %v3444_v58, %v906_v5  ;;  %v3147_v5 = vld [vmem:[%s5303_s3 + $0x20] sm:$0xff] }
  0xc0   :  { %vm3640_vm5 = vmpackc.low %vm1054_vm1, %vm1053_vm3  ;;  %vm1059_vm3 = vcmp.eq.s32.totalorder %v3444_v58, %v3578_v56  ;;  %v3149_v56 = vld [vmem:[%s5303_s3 + $0x30] sm:$0xff] }
  0xc1   :  { %1270 = vmatpush.bf16.msrb.mxu1 %v3149_v56 }
  0xc2   :  { %2899 = vmatmul.msk.bf16.gmra.mxu1 %vm5312_vm2, %v451_v19  ;;  %156 = vperm.xlu2 %3175, %v59_v17   ;;  %v835_v19 = vld [vmem:[%s5301_s1 + $0x170] sm:$0xff] }
  0xc3   :  { %971 = vperm.xlu1 %3174, %v828_v21   ;;  %968 = vperm.xlu0 %3173, %v827_v22   ;;  %v66_v21 = vld [vmem:[%s5300_s0 + $0xb8] sm:$0xff]  ;;  %v3144_v22 = vld [vmem:[%s5303_s3 + $0x8] sm:$0xff] }
  0xc4   :  { %v924_v23 = vpop.permute.xlu2 %923 }
  0xc5   :  { %v894_v24 = vpop.permute.xlu1 %893  ;;  %v891_v27 = vpop.permute.xlu0 %890  ;;  %1271 = vmatpush.bf16.msrb.mxu1 %v3148_v63 }
  0xc6   :  { %vm1058_vm6 = vcmp.eq.s32.totalorder %v3444_v58, %v894_v24  ;;  %vm1057_vm9 = vcmp.eq.s32.totalorder %v3444_v58, %v891_v27 }
  0xc7   :  { %vm3653_vm10 = vmpackc.low %vm1058_vm6, %vm1057_vm9 }
  0xc9   :  { %1272 = vmatpush.bf16.msrb.mxu1 %v3147_v5 }
  0xca   :  { %977 = vperm.xlu2 %3175, %v830_v30   ;;  %v3143_v30 = vld [vmem:[%s5303_s3] sm:$0xff] }
  0xcb   :  { %974 = vperm.xlu1 %3174, %v829_v31   ;;  %159 = vperm.xlu0 %3173, %v60_v32   ;;  %v5365_v31 = vmov 0  ;;  %v837_v32 = vld [vmem:[%s5301_s1 + $0x180] sm:$0xff] }
  0xcc   :  { %v3670_v33 = vpop.permute.xlu2 %926 }
  0xcd   :  { %v903_v40 = vpop.permute.xlu1 %902  ;;  %v900_v41 = vpop.permute.xlu0 %899 }
  0xce   :  { %vm1061_vm0 = vcmp.eq.s32.totalorder %v3444_v58, %v903_v40  ;;  %vm1060_vm1 = vcmp.eq.s32.totalorder %v3444_v58, %v900_v41 }
  0xcf   :  { %vm3679_vm6 = vmpackc.low %vm1062_vm14, %vm1061_vm0  ;;  %vm1068_vm0 = vcmp.eq.s32.totalorder %v3444_v58, %v924_v23 }
  0xd0   :  { %vm3686_vm9 = vmpackc.low %vm1060_vm1, %vm1059_vm3 }
  0xd2   :  { %2900 = vmatmul.msk.bf16.gmra.mxu1 %vm5312_vm2, %v452_v44  ;;  %980 = vperm.xlu2 %3175, %v831_v16  }
  0xd3   :  { %165 = vperm.xlu1 %3174, %v62_v46   ;;  %162 = vperm.xlu0 %3173, %v61_v47   ;;  %v69_v46 = vld [vmem:[%s5300_s0 + $0xd0] sm:$0xff]  ;;  %v838_v47 = vld [vmem:[%s5301_s1 + $0x188] sm:$0xff] }
  0xd4   :  { %v3700_v51 = vpop.permute.xlu2 %117 }
  0xd5   :  { %v912_v52 = vpop.permute.xlu1 %911  ;;  %v909_v55 = vpop.permute.xlu0 %908 }
  0xd6   :  { %vm1064_vm12 = vcmp.eq.s32.totalorder %v3444_v58, %v912_v52  ;;  %vm1063_vm13 = vcmp.eq.s32.totalorder %v3444_v58, %v909_v55  ;;  %v5371_v55 = vmov 0 }
  0xd7   :  { %vm3707_vm14 = vmpackc.low %vm1064_vm12, %vm1063_vm13  ;;  %vm1065_vm12 = vcmp.eq.s32.totalorder %v3444_v58, %v3624_v12  ;;  %v3146_v12 = vld [vmem:[%s5303_s3 + $0x18] sm:$0xff] }
  0xd8   :  { %1273 = vmatpush.bf16.msrb.mxu1 %v3146_v12 }
  0xda   :  { %171 = vperm.xlu2 %3175, %v64_v59   ;;  %v71_v59 = vld [vmem:[%s5300_s0 + $0xe0] sm:$0xff] }
  0xdb   :  { %168 = vperm.xlu1 %3174, %v63_v60   ;;  %983 = vperm.xlu0 %3173, %v832_v61   ;;  %v840_v60 = vld [vmem:[%s5301_s1 + $0x198] sm:$0xff]  ;;  %v839_v61 = vld [vmem:[%s5301_s1 + $0x190] sm:$0xff] }
  0xdc   :  { %v3723_v1 = vpop.permute.xlu2 %120  ;;  %1274 = vmatpush.bf16.msrb.mxu1 %v3145_v25 }
  0xdd   :  { %v921_v3 = vpop.permute.xlu1 %920  ;;  %v918_v4 = vpop.permute.xlu0 %917 }
  0xde   :  { %vm1067_vm1 = vcmp.eq.s32.totalorder %v3444_v58, %v921_v3  ;;  %vm1066_vm3 = vcmp.eq.s32.totalorder %v3444_v58, %v918_v4 }
  0xdf   :  { %vm3733_vm13 = vmpackc.low %vm1068_vm0, %vm1067_vm1  ;;  %vm5363_vm0 = vcmask 523264  }
  0xe0   :  { %v5360_v6 = vsel %vm3733_vm13, 4294967295, %v5359_v6  ;;  %vm3740_vm2 = vmpackc.low %vm1066_vm3, %vm1065_vm12  ;;  %1275 = vmatpush.bf16.msrb.mxu1 %v3144_v22 }
  0xe1   :  { %v5362_v9 = vsel %vm3740_vm2, 4294967295, %v5361_v9  ;;  %vm5364_vm12 = vmmov %vm5363_vm0 }
  0xe2   :  { %2901 = vmatmul.msk.bf16.gmra.mxu1 %vm5363_vm0, %v453_v28  ;;  %174 = vperm.xlu2 %3175, %v65_v7   ;;  %vm1069_vm0 = vcmp.eq.s32.totalorder %v3444_v58, %v3670_v33  ;;  %v67_v33 = vld [vmem:[%s5300_s0 + $0xc0] sm:$0xff] }
  0xe3   :  { %989 = vperm.xlu1 %3174, %v834_v10   ;;  %986 = vperm.xlu0 %3173, %v833_v11   ;;  %v72_v11 = vld [vmem:[%s5300_s0 + $0xe8] sm:$0xff] }
  0xe4   :  { %v942_v13 = vpop.permute.xlu2 %941  ;;  %1276 = vmatpush.bf16.msrb.mxu1 %v3143_v30  ;;  %v76_v30 = vld [vmem:[%s5300_s0 + $0x108] sm:$0xff] }
  0xe5   :  { %v112_v14 = vpop.permute.xlu1 %111  ;;  %v109_v15 = vpop.permute.xlu0 %108 }
  0xe6   :  { %vm300_vm1 = vcmp.eq.s32.totalorder %v3444_v58, %v112_v14  ;;  %vm299_vm3 = vcmp.eq.s32.totalorder %v3444_v58, %v109_v15  ;;  %v5374_v15 = vmov 0 }
  0xe7   :  { %v364_v26 = vsel %vm300_vm1, 1.0, %v5314_v0  ;;  %v363_v28 = vsel %vm299_vm3, 1.0, %v5314_v0 }
  0xe8   :  { %v427_v17 = vpack.c.bf16 %v364_v26, %v363_v28  ;;  %v843_v26 = vld [vmem:[%s5301_s1 + $0x1b0] sm:$0xff]  ;;  %v74_v28 = vld [vmem:[%s5300_s0 + $0xf8] sm:$0xff] }
  0xea   :  { %2875 = vmatmul.msk.bf16.vlgmr.msra.gmra.mxu0 %vm5364_vm12, %v427_v17  ;;  %995 = vperm.xlu2 %3175, %v836_v18   ;;  %v73_v18 = vld [vmem:[%s5300_s0 + $0xf0] sm:$0xff]  ;;  %v5316_v17 = vmov 1.0|1.0  }
  0xeb   :  { %992 = vperm.xlu1 %3174, %v835_v19   ;;  %177 = vperm.xlu0 %3173, %v66_v21  }
  0xec   :  { %v3777_v23 = vpop.permute.xlu2 %944 }
  0xed   :  { %v115_v24 = vpop.permute.xlu1 %114  ;;  %v930_v27 = vpop.permute.xlu0 %929 }
  0xee   :  { %vm1070_vm1 = vcmp.eq.s32.totalorder %v3444_v58, %v930_v27  ;;  %vm301_vm12 = vcmp.eq.s32.totalorder %v3444_v58, %v115_v24 }
  0xef   :  { %vm3785_vm3 = vmpackc.low %vm1070_vm1, %vm1069_vm0  ;;  %vm5367_vm0 = vcmask 523264   ;;  %vm302_vm1 = vcmp.eq.s32.totalorder %v3444_v58, %v3700_v51  ;;  %v365_v40 = vsel %vm301_vm12, 1.0, %v5314_v0 }
  0xf0   :  { %v5366_v31 = vsel %vm3785_vm3, 4294967295, %v5365_v31  ;;  %v366_v36 = vsel %vm302_vm1, 1.0, %v5314_v0  ;;  %vm5370_vm12 = vmmov %vm5367_vm0 }
  0xf1   :  { %v428_v44 = vpack.c.bf16 %v366_v36, %v365_v40  ;;  %v844_v40 = vld [vmem:[%s5301_s1 + $0x1b8] sm:$0xff] }
  0xf2   :  { %2902 = vmatmul.msk.bf16.gmra.mxu1 %vm5367_vm0, %v454_v43  ;;  %998 = vperm.xlu2 %3175, %v837_v32   ;;  %v70_v43 = vld [vmem:[%s5300_s0 + $0xd8] sm:$0xff] }
  0xf3   :  { %183 = vperm.xlu1 %3174, %v68_v34   ;;  %180 = vperm.xlu0 %3173, %v67_v33   ;;  %v75_v33 = vld [vmem:[%s5300_s0 + $0x100] sm:$0xff] }
  0xf4   :  { %v3805_v35 = vpop.permute.xlu2 %135 }
  0xf5   :  { %v936_v41 = vpop.permute.xlu1 %935  ;;  %v933_v16 = vpop.permute.xlu0 %932 }
  0xf6   :  { %vm1072_vm3 = vcmp.eq.s32.totalorder %v3444_v58, %v936_v41  ;;  %vm1071_vm13 = vcmp.eq.s32.totalorder %v3444_v58, %v933_v16 }
  0xf7   :  { %vm3811_vm2 = vmpackc.low %vm1072_vm3, %vm1071_vm13  ;;  %vm1074_vm13 = vcmp.eq.s32.totalorder %v3444_v58, %v942_v13 }
  0xfa   :  { %2876 = vmatmul.msk.bf16.gmra.mxu0 %vm5370_vm12, %v428_v44  ;;  %189 = vperm.xlu2 %3175, %v70_v43  }
  0xfb   :  { %186 = vperm.xlu1 %3174, %v69_v46   ;;  %1001 = vperm.xlu0 %3173, %v838_v47   ;;  %v101_v46 = vld [vmem:[%s5300_s0 + $0x1d0] sm:$0xff]  ;;  %v846_v47 = vld [vmem:[%s5301_s1 + $0x1c8] sm:$0xff] }
  0xfc   :  { %v3825_v48 = vpop.permute.xlu2 %138 }
  0xfd   :  { %v939_v51 = vpop.permute.xlu1 %938  ;;  %v124_v52 = vpop.permute.xlu0 %123 }
  0xfe   :  { %vm1073_vm3 = vcmp.eq.s32.totalorder %v3444_v58, %v939_v51  ;;  %vm304_vm1 = vcmp.eq.s32.totalorder %v3444_v58, %v124_v52  ;;  %v845_v51 = vld [vmem:[%s5301_s1 + $0x1c0] sm:$0xff] }
  0xff   :  { %vm3829_vm0 = vmpackc.low %vm1074_vm13, %vm1073_vm3  ;;  %v3833_v56 = vpop.f32.mrf.mxu1  ;;  %vm303_vm13 = vcmp.eq.s32.totalorder %v3444_v58, %v3723_v1  ;;  %v368_v3 = vsel %vm304_vm1, 1.0, %v5314_v0  ;;  %v841_v1 = vld [vmem:[%s5301_s1 + $0x1a0] sm:$0xff]  ;;  %vm1075_vm1 = vcmp.eq.s32.totalorder %v3444_v58, %v3777_v23 }
 0x100   :  { %v5372_v55 = vsel %vm3829_vm0, 4294967295, %v5371_v55  ;;  %v367_v7 = vsel %vm303_vm13, 1.0, %v5314_v0  ;;  %vm5373_vm3 = vmmov %vm5370_vm12 }
 0x101   :  { %v429_v38 = vpack.c.bf16 %v368_v3, %v367_v7  ;;  %v102_v7 = vld [vmem:[%s5300_s0 + $0x1d8] sm:$0xff] }
 0x102   :  { %2903 = vmatmul.msk.bf16.gmra.mxu1 %vm5370_vm12, %v455_v42  ;;  %192 = vperm.xlu2 %3175, %v71_v59  }
 0x103   :  { %1007 = vperm.xlu1 %3174, %v840_v60   ;;  %1004 = vperm.xlu0 %3173, %v839_v61  }
 0x104   :  { %v960_v63 = vpop.permute.xlu2 %959 }
 0x105   :  { %v130_v4 = vpop.permute.xlu1 %129  ;;  %v127_v5 = vpop.permute.xlu0 %126 }
 0x107   :  { %v3853_v10 = vpop.f32.mrf.mxu1 }
 0x10a   :  { %2877 = vmatmul.msk.bf16.gmra.mxu0 %vm5373_vm3, %v429_v38  ;;  %1013 = vperm.xlu2 %3175, %v842_v37   ;;  %vm306_vm3 = vcmp.eq.s32.totalorder %v3444_v58, %v130_v4 }
 0x10b   :  { %1010 = vperm.xlu1 %3174, %v841_v1   ;;  %195 = vperm.xlu0 %3173, %v72_v11   ;;  %v370_v21 = vsel %vm306_vm3, 1.0, %v5314_v0  ;;  %v5384_v11 = vmov 0 }
 0x10c   :  { %v3867_v12 = vpop.permute.xlu2 %962 }
 0x10d   :  { %v133_v13 = vpop.permute.xlu1 %132  ;;  %v948_v14 = vpop.permute.xlu0 %947 }
 0x10e   :  { %vm1076_vm12 = vcmp.eq.s32.totalorder %v3444_v58, %v948_v14  ;;  %v103_v14 = vld [vmem:[%s5300_s0 + $0x1e0] sm:$0xff] }
 0x10f   :  { %vm3872_vm13 = vmpackc.low %vm1076_vm12, %vm1075_vm1  ;;  %v3876_v25 = vpop.f32.mrf.mxu1  ;;  %vm305_vm1 = vcmp.eq.s32.totalorder %v3444_v58, %v127_v5 }
 0x110   :  { %v5375_v15 = vsel %vm3872_vm13, 4294967295, %v5374_v15  ;;  %v369_v22 = vsel %vm305_vm1, 1.0, %v5314_v0 }
 0x111   :  { %v430_v32 = vpack.c.bf16 %v370_v21, %v369_v22 }
 0x112   :  { %2940 = vmatmul.msk.bf16.vlgmr.msrb.gmra.mxu1 %vm3561_vm15, %v5316_v17  ;;  %1016 = vperm.xlu2 %3175, %v843_v26   ;;  %vm5378_vm15 = vcmask 523264   ;;  %v848_v26 = vld [vmem:[%s5301_s1 + $0x1d8] sm:$0xff] }
 0x113   :  { %201 = vperm.xlu1 %3174, %v74_v28   ;;  %198 = vperm.xlu0 %3173, %v73_v18  }
 0x114   :  { %v3892_v19 = vpop.permute.xlu2 %153 }
 0x115   :  { %v954_v23 = vpop.permute.xlu1 %953  ;;  %v951_v24 = vpop.permute.xlu0 %950 }
 0x116   :  { %vm1078_vm12 = vcmp.eq.s32.totalorder %v3444_v58, %v954_v23  ;;  %vm1077_vm13 = vcmp.eq.s32.totalorder %v3444_v58, %v951_v24 }
 0x117   :  { %vm3898_vm0 = vmpackc.low %vm1078_vm12, %vm1077_vm13  ;;  %v3902_v50 = vpop.f32.mrf.mxu1  ;;  %vm1080_vm13 = vcmp.eq.s32.totalorder %v3444_v58, %v960_v63  ;;  %vm307_vm12 = vcmp.eq.s32.totalorder %v3444_v58, %v133_v13 }
 0x118   :  { %v371_v59 = vsel %vm307_vm12, 1.0, %v5314_v0 }
 0x11a   :  { %2878 = vmatmul.msk.bf16.gmra.mxu0 %vm5378_vm15, %v430_v32  ;;  %207 = vperm.xlu2 %3175, %v76_v30   ;;  %vm308_vm15 = vcmp.eq.s32.totalorder %v3444_v58, %v3805_v35  ;;  %v77_v35 = vld [vmem:[%s5300_s0 + $0x110] sm:$0xff] }
 0x11b   :  { %204 = vperm.xlu1 %3174, %v75_v33   ;;  %1019 = vperm.xlu0 %3173, %v844_v40   ;;  %v372_v63 = vsel %vm308_vm15, 1.0, %v5314_v0  ;;  %v79_v33 = vld [vmem:[%s5300_s0 + $0x120] sm:$0xff]  ;;  %v104_v40 = vld [vmem:[%s5300_s0 + $0x1e8] sm:$0xff] }
 0x11c   :  { %v3916_v41 = vpop.permute.xlu2 %156  ;;  %v431_v4 = vpack.c.bf16 %v372_v63, %v371_v59  ;;  %v850_v63 = vld [vmem:[%s5301_s1 + $0x1e8] sm:$0xff] }
 0x11d   :  { %v957_v16 = vpop.permute.xlu1 %956  ;;  %v142_v36 = vpop.permute.xlu0 %141 }
 0x11e   :  { %vm1079_vm3 = vcmp.eq.s32.totalorder %v3444_v58, %v957_v16  ;;  %vm310_vm15 = vcmp.eq.s32.totalorder %v3444_v58, %v142_v36 }
 0x11f   :  { %vm3920_vm1 = vmpackc.low %vm1080_vm13, %vm1079_vm3  ;;  %v3924_v44 = vpop.f32.mrf.mxu1  ;;  %vm1081_vm13 = vcmp.eq.s32.totalorder %v3444_v58, %v3867_v12  ;;  %v847_v12 = vld [vmem:[%s5301_s1 + $0x1d0] sm:$0xff]  ;;  %v374_v28 = vsel %vm310_vm15, 1.0, %v5314_v0 }
 0x120   :  { %5381 = vst [vmem:[#allocation6_spill] sm:$0xff] %v3924_v44 }
 0x122   :  { %2942 = vmatmul.msk.bf16.gmra.mxu1 %vm3594_vm8, %v5316_v17  ;;  %282 = vperm.xlu2 %3175, %v101_v46   ;;  %vm5383_vm8 = vcmask 523264  }
 0x123   :  { %1025 = vperm.xlu1 %3174, %v846_v47   ;;  %1022 = vperm.xlu0 %3173, %v845_v51   ;;  %v105_v51 = vld [vmem:[%s5300_s0 + $0x1f0] sm:$0xff] }
 0x124   :  { %v978_v52 = vpop.permute.xlu2 %977 }
 0x125   :  { %v3942_v60 = vpop.permute.xlu1 %147  ;;  %v3944_v61 = vpop.permute.xlu0 %144  ;;  %vm1086_vm15 = vcmp.eq.s32.totalorder %v3444_v58, %v978_v52  ;;  %v849_v52 = vld [vmem:[%s5301_s1 + $0x1e0] sm:$0xff] }
 0x127   :  { %v3947_v3 = vpop.f32.mrf.mxu1 }
 0x128   :  { %5382 = vst [vmem:[#allocation7_spill] sm:$0xff] %v3947_v3 }
 0x12a   :  { %2879 = vmatmul.msk.bf16.gmra.mxu0 %vm5383_vm8, %v431_v4  ;;  %213 = vperm.xlu2 %3175, %v78_v2   ;;  %vm309_vm8 = vcmp.eq.s32.totalorder %v3444_v58, %v3825_v48  ;;  %v80_v48 = vld [vmem:[%s5300_s0 + $0x128] sm:$0xff] }
 0x12b   :  { %210 = vperm.xlu1 %3174, %v77_v35   ;;  %285 = vperm.xlu0 %3173, %v102_v7   ;;  %v373_v23 = vsel %vm309_vm8, 1.0, %v5314_v0 }
 0x12c   :  { %v3961_v37 = vpop.permute.xlu2 %980  ;;  %v432_v30 = vpack.c.bf16 %v374_v28, %v373_v23 }
 0x12d   :  { %v3963_v38 = vpop.permute.xlu1 %150  ;;  %v966_v1 = vpop.permute.xlu0 %965 }
 0x12e   :  { %vm1082_vm3 = vcmp.eq.s32.totalorder %v3444_v58, %v966_v1 }
 0x12f   :  { %vm3968_vm12 = vmpackc.low %vm1082_vm3, %vm1081_vm13  ;;  %v3972_v13 = vpop.f32.mrf.mxu1 }
 0x130   :  { %v5385_v11 = vsel %vm3968_vm12, 4294967295, %v5384_v11  ;;  %5386 = vst [vmem:[#allocation8_spill] sm:$0xff] %v3972_v13 }
 0x132   :  { %2944 = vmatmul.msk.bf16.gmra.mxu1 %vm3587_vm7, %v5316_v17  ;;  %288 = vperm.xlu2 %3175, %v103_v14   ;;  %vm5390_vm7 = vcmask 523264   ;;  %v81_v14 = vld [vmem:[%s5300_s0 + $0x130] sm:$0xff] }
 0x133   :  { %1031 = vperm.xlu1 %3174, %v848_v26   ;;  %1028 = vperm.xlu0 %3173, %v847_v12   ;;  %v106_v26 = vld [vmem:[%s5300_s0 + $0x1f8] sm:$0xff] }
 0x134   :  { %v3990_v22 = vpop.permute.xlu2 %171 }
 0x135   :  { %v972_v18 = vpop.permute.xlu1 %971  ;;  %v969_v21 = vpop.permute.xlu0 %968 }
 0x136   :  { %vm1084_vm13 = vcmp.eq.s32.totalorder %v3444_v58, %v972_v18  ;;  %vm1083_vm3 = vcmp.eq.s32.totalorder %v3444_v58, %v969_v21  ;;  %v5396_v21 = vmov 0 }
 0x137   :  { %vm3995_vm12 = vmpackc.low %vm1084_vm13, %vm1083_vm3  ;;  %v3999_v24 = vpop.f32.mrf.mxu1  ;;  %vm312_vm3 = vcmp.eq.s32.totalorder %v3444_v58, %v3942_v60  ;;  %v82_v60 = vld [vmem:[%s5300_s0 + $0x138] sm:$0xff] }
 0x138   :  { %5389 = vst [vmem:[#allocation9_spill] sm:$0xff] %v3999_v24  ;;  %v376_v2 = vsel %vm312_vm3, 1.0, %v5314_v0 }
 0x13a   :  { %2880 = vmatmul.msk.bf16.gmra.mxu0 %vm5390_vm7, %v432_v30  ;;  %219 = vperm.xlu2 %3175, %v80_v48   ;;  %vm311_vm7 = vcmp.eq.s32.totalorder %v3444_v58, %v3944_v61  ;;  %v852_v48 = vld [vmem:[%s5301_s1 + $0x1f8] sm:$0xff]  ;;  %v851_v30 = vld [vmem:[%s5301_s1 + $0x1f0] sm:$0xff]  ;;  %s2850_s1 = sshll.u32 %s5311_s11, 4  ;;  %s2851_s1 = int_to_ptr.hbm [resolvable:$true] %s2850_s1 }
 0x13b   :  { %216 = vperm.xlu1 %3174, %v79_v33   ;;  %291 = vperm.xlu0 %3173, %v104_v40   ;;  %v375_v4 = vsel %vm311_vm7, 1.0, %v5314_v0  ;;  %vm313_vm7 = vcmp.eq.s32.totalorder %v3444_v58, %v3963_v38 }
 0x13c   :  { %v4026_v59 = vpop.permute.xlu2 %174  ;;  %v433_v61 = vpack.c.bf16 %v376_v2, %v375_v4  ;;  %v377_v33 = vsel %vm313_vm7, 1.0, %v5314_v0 }
 0x13d   :  { %v975_v16 = vpop.permute.xlu1 %974  ;;  %v4013_v36 = vpop.permute.xlu0 %159 }
 0x13e   :  { %vm1085_vm8 = vcmp.eq.s32.totalorder %v3444_v58, %v975_v16 }
 0x13f   :  { %vm4017_vm13 = vmpackc.low %vm1086_vm15, %vm1085_vm8  ;;  %v4021_v47 = vpop.f32.mrf.mxu1  ;;  %vm1087_vm15 = vcmp.eq.s32.totalorder %v3444_v58, %v3961_v37 }
 0x140   :  { %5393 = vst [vmem:[#allocation10_spill] sm:$0xff] %v4021_v47 }
 0x142   :  { %2946 = vmatmul.msk.bf16.gmra.mxu1 %vm3607_vm11, %v5316_v17  ;;  %294 = vperm.xlu2 %3175, %v105_v51   ;;  %vm5395_vm11 = vcmask 523264  }
 0x143   :  { %1037 = vperm.xlu1 %3174, %v850_v63   ;;  %1034 = vperm.xlu0 %3173, %v849_v52  }
 0x144   :  { %v996_v12 = vpop.permute.xlu2 %995 }
 0x145   :  { %v4043_v35 = vpop.permute.xlu1 %165  ;;  %v4045_v7 = vpop.permute.xlu0 %162  ;;  %vm1092_vm7 = vcmp.eq.s32.totalorder %v3444_v58, %v996_v12 }
 0x147   :  { %v4047_v1 = vpop.f32.mrf.mxu1 }
 0x148   :  { %5394 = vst [vmem:[#allocation11_spill] sm:$0xff] %v4047_v1 }
 0x14a   :  { %2881 = vmatmul.msk.bf16.gmra.mxu0 %vm5395_vm11, %v433_v61  ;;  %225 = vperm.xlu2 %3175, %v82_v60   ;;  %vm314_vm11 = vcmp.eq.s32.totalorder %v3444_v58, %v3892_v19 }
 0x14b   :  { %222 = vperm.xlu1 %3174, %v81_v14   ;;  %297 = vperm.xlu0 %3173, %v106_v26   ;;  %v378_v38 = vsel %vm314_vm11, 1.0, %v5314_v0 }
 0x14c   :  { %v999_v37 = vpop.permute.xlu2 %998  ;;  %v434_v63 = vpack.c.bf16 %v378_v38, %v377_v33 }
 0x14d   :  { %v4061_v28 = vpop.permute.xlu1 %168  ;;  %v984_v18 = vpop.permute.xlu0 %983 }
 0x14e   :  { %vm1088_vm8 = vcmp.eq.s32.totalorder %v3444_v58, %v984_v18 }
 0x14f   :  { %vm4066_vm3 = vmpackc.low %vm1088_vm8, %vm1087_vm15  ;;  %v4070_v23 = vpop.f32.mrf.mxu1 }
 0x150   :  { %v5397_v21 = vsel %vm4066_vm3, 4294967295, %v5396_v21  ;;  %5398 = vst [vmem:[#allocation12_spill] sm:$0xff] %v4070_v23 }
 0x152   :  { %2948 = vmatmul.msk.bf16.gmra.mxu1 %vm3640_vm5, %v5316_v17  ;;  %vm5402_vm5 = vcmask 523264  }
 0x153   :  { %1043 = vperm.xlu1 %3174, %v852_v48   ;;  %1040 = vperm.xlu0 %3173, %v851_v30  }
 0x154   :  { %v4101_v4 = vpop.permute.xlu2 %189 }
 0x155   :  { %v990_v40 = vpop.permute.xlu1 %989  ;;  %v987_v16 = vpop.permute.xlu0 %986 }
 0x156   :  { %vm1090_vm15 = vcmp.eq.s32.totalorder %v3444_v58, %v990_v40  ;;  %vm1089_vm8 = vcmp.eq.s32.totalorder %v3444_v58, %v987_v16  ;;  %v5408_v16 = vmov 0 }
 0x157   :  { %vm4089_vm3 = vmpackc.low %vm1090_vm15, %vm1089_vm8  ;;  %v4093_v20 = vpop.f32.mrf.mxu1  ;;  %vm316_vm8 = vcmp.eq.s32.totalorder %v3444_v58, %v4013_v36 }
 0x158   :  { %5401 = vst [vmem:[#allocation13_spill] sm:$0xff] %v4093_v20  ;;  %v380_v14 = vsel %vm316_vm8, 1.0, %v5314_v0 }
 0x15a   :  { %2882 = vmatmul.msk.bf16.gmra.mxu0 %vm5402_vm5, %v434_v63  ;;  %vm315_vm5 = vcmp.eq.s32.totalorder %v3444_v58, %v3916_v41 }
 0x15b   :  { %v379_v18 = vsel %vm315_vm5, 1.0, %v5314_v0  ;;  %vm318_vm5 = vcmp.eq.s32.totalorder %v3444_v58, %v4043_v35  ;;  %v5411_v35 = vmov 0 }
 0x15c   :  { %v435_v36 = vpack.c.bf16 %v380_v14, %v379_v18  ;;  %v193_v33 = vpop.permute.xlu2 %192 }
 0x15d   :  { %v993_v52 = vpop.permute.xlu1 %992  ;;  %v4098_v2 = vpop.permute.xlu0 %177 }
 0x15e   :  { %vm1091_vm11 = vcmp.eq.s32.totalorder %v3444_v58, %v993_v52 }
 0x15f   :  { %vm4104_vm15 = vmpackc.low %vm1092_vm7, %vm1091_vm11  ;;  %v4108_v61 = vpop.f32.mrf.mxu1  ;;  %vm1093_vm7 = vcmp.eq.s32.totalorder %v3444_v58, %v999_v37  ;;  %v382_v37 = vsel %vm318_vm5, 1.0, %v5314_v0  ;;  %vm327_vm5 = vcmp.eq.s32.totalorder %v3444_v58, %v193_v33 }
 0x160   :  { %5405 = vst [vmem:[#allocation14_spill] sm:$0xff] %v4108_v61 }
 0x162   :  { %2950 = vmatmul.msk.bf16.gmra.mxu1 %vm3633_vm4, %v5316_v17  ;;  %vm5407_vm4 = vcmask 523264  }
 0x164   :  { %v1014_v52 = vpop.permute.xlu2 %1013 }
 0x165   :  { %v4118_v26 = vpop.permute.xlu1 %183  ;;  %v4120_v12 = vpop.permute.xlu0 %180 }
 0x167   :  { %v4123_v48 = vpop.f32.mrf.mxu0  ;;  %v4125_v30 = vpop.f32.mrf.mxu1 }
 0x168   :  { %5406 = vst [vmem:[#allocation15_spill] sm:$0xff] %v4125_v30 }
 0x16a   :  { %2883 = vmatmul.msk.bf16.gmra.mxu0 %vm5407_vm4, %v435_v36  ;;  %vm317_vm4 = vcmp.eq.s32.totalorder %v3444_v58, %v4045_v7 }
 0x16b   :  { %v381_v14 = vsel %vm317_vm4, 1.0, %v5314_v0  ;;  %vm1098_vm4 = vcmp.eq.s32.totalorder %v3444_v58, %v1014_v52 }
 0x16c   :  { %v436_v29 = vpack.c.bf16 %v382_v37, %v381_v14  ;;  %v1017_v49 = vpop.permute.xlu2 %1016 }
 0x16d   :  { %v4130_v41 = vpop.permute.xlu1 %186  ;;  %v1002_v40 = vpop.permute.xlu0 %1001 }
 0x16e   :  { %vm1094_vm11 = vcmp.eq.s32.totalorder %v3444_v58, %v1002_v40 }
 0x16f   :  { %vm4134_vm8 = vmpackc.low %vm1094_vm11, %vm1093_vm7  ;;  %v4138_v38 = vpop.f32.mrf.mxu0  ;;  %v4140_v63 = vpop.f32.mrf.mxu1 }
 0x170   :  { %v5409_v16 = vsel %vm4134_vm8, 4294967295, %v5408_v16  ;;  %5410 = vst [vmem:[#allocation16_spill] sm:$0xff] %v4140_v63 }
 0x172   :  { %2952 = vmatmul.msk.bf16.gmra.mxu1 %vm3653_vm10, %v5316_v17  ;;  %vm5414_vm10 = vcmask 523264  }
 0x174   :  { %v4196_v8 = vpop.permute.xlu2 %207 }
 0x175   :  { %v1008_v18 = vpop.permute.xlu1 %1007  ;;  %v1005_v36 = vpop.permute.xlu0 %1004 }
 0x176   :  { %vm1096_vm7 = vcmp.eq.s32.totalorder %v3444_v58, %v1008_v18  ;;  %vm1095_vm11 = vcmp.eq.s32.totalorder %v3444_v58, %v1005_v36  ;;  %v4169_v36 = vsel %vm327_vm5, 1.0, %v5314_v0  ;;  %vm320_vm5 = vcmp.eq.s32.totalorder %v3444_v58, %v3990_v22 }
 0x177   :  { %vm4153_vm8 = vmpackc.low %vm1096_vm7, %vm1095_vm11  ;;  %v4157_v7 = vpop.f32.mrf.mxu0  ;;  %v4159_v40 = vpop.f32.mrf.mxu1  ;;  %v384_v32 = vsel %vm320_vm5, 1.0, %v5314_v0  ;;  %vm321_vm5 = vcmp.eq.s32.totalorder %v3444_v58, %v4026_v59 }
 0x178   :  { %v5412_v35 = vsel %vm4153_vm8, 4294967295, %v5411_v35  ;;  %5413 = vst [vmem:[#allocation17_spill] sm:$0xff] %v4159_v40 }
 0x17a   :  { %2884 = vmatmul.msk.bf16.gmra.mxu0 %vm5414_vm10, %v436_v29  ;;  %vm319_vm10 = vcmp.eq.s32.totalorder %v3444_v58, %v4061_v28 }
 0x17d   :  { %v1011_v18 = vpop.permute.xlu1 %1010  ;;  %v196_v19 = vpop.permute.xlu0 %195 }
 0x17e   :  { %vm1097_vm7 = vcmp.eq.s32.totalorder %v3444_v58, %v1011_v18  ;;  %vm328_vm11 = vcmp.eq.s32.totalorder %v3444_v58, %v196_v19  ;;  %v383_v19 = vsel %vm319_vm10, 1.0, %v5314_v0  ;;  %vm322_vm10 = vcmp.eq.s32.totalorder %v3444_v58, %v4098_v2 }
 0x17f   :  { %vm4171_vm8 = vmpackc.low %vm1098_vm4, %vm1097_vm7  ;;  %v4176_v14 = vsel %vm328_vm11, 1.0, %v5314_v0  ;;  %v4178_v33 = vpop.f32.mrf.mxu0  ;;  %v4180_v29 = vpop.f32.mrf.mxu1  ;;  %v437_v34 = vpack.c.bf16 %v384_v32, %v383_v19  ;;  %vm1099_vm4 = vcmp.eq.s32.totalorder %v3444_v58, %v1017_v49 }
 0x180   :  { %5417 = vst [vmem:[#allocation18_spill] sm:$0xff] %v4180_v29  ;;  %v283_v32 = vpop.permute.xlu2 %282 }
 0x182   :  { %2954 = vmatmul.msk.bf16.gmra.mxu1 %vm3686_vm9, %v5316_v17  ;;  %vm5419_vm9 = vcmask 523264  }
 0x185   :  { %v4192_v18 = vpop.permute.xlu1 %201  ;;  %v4194_v53 = vpop.permute.xlu0 %198 }
 0x187   :  { %v4199_v5 = vpop.f32.mrf.mxu0  ;;  %v4201_v28 = vpop.f32.mrf.mxu1 }
 0x188   :  { %5418 = vst [vmem:[#allocation19_spill] sm:$0xff] %v4201_v28  ;;  %v5424_v28 = vmov 0  ;;  %v4239_v40 = vpop.permute.xlu2 %213 }
 0x18a   :  { %2885 = vmatmul.msk.bf16.gmra.mxu0 %vm5419_vm9, %v437_v34  ;;  %v5422_v34 = vmov 1.0|1.0  }
 0x18d   :  { %v4206_v22 = vpop.permute.xlu1 %204  ;;  %v1020_v42 = vpop.permute.xlu0 %1019 }
 0x18e   :  { %vm1100_vm7 = vcmp.eq.s32.totalorder %v3444_v58, %v1020_v42  ;;  %v5423_v42 = vmov 0.0  }
 0x18f   :  { %vm4210_vm11 = vmpackc.low %vm1100_vm7, %vm1099_vm4  ;;  %v4214_v0 = vpop.f32.mrf.mxu0  ;;  %v4216_v17 = vpop.f32.mrf.mxu1  ;;  %v386_v49 = vsel %vm322_vm10, 1.0, %v5423_v42  ;;  %v385_v29 = vsel %vm321_vm5, 1.0, %v5423_v42  ;;  %vm357_vm10 = vcmp.eq.s32.totalorder %v3444_v58, %v283_v32 }
 0x190   :  { %v438_v63 = vpack.c.bf16 %v386_v49, %v385_v29  ;;  %v421_v61 = vsel %vm357_vm10, 1.0, %v5423_v42 }
 0x192   :  { %2956 = vmatmul.msk.bf16.gmra.mxu1 %vm3679_vm6, %v5422_v34  ;;  %vm5426_vm6 = vcmask 523264  }
 0x195   :  { %v1026_v19 = vpop.permute.xlu1 %1025  ;;  %v1023_v45 = vpop.permute.xlu0 %1022 }
 0x196   :  { %vm1102_vm9 = vcmp.eq.s32.totalorder %v3444_v58, %v1026_v19  ;;  %vm1101_vm4 = vcmp.eq.s32.totalorder %v3444_v58, %v1023_v45 }
 0x197   :  { %vm4229_vm7 = vmpackc.low %vm1102_vm9, %vm1101_vm4  ;;  %v4233_v2 = vpop.f32.mrf.mxu0  ;;  %v4235_v54 = vpop.f32.mrf.mxu1  ;;  %vm324_vm9 = vcmp.eq.s32.totalorder %v3444_v58, %v4118_v26  ;;  %vm323_vm4 = vcmp.eq.s32.totalorder %v3444_v58, %v4120_v12 }
 0x198   :  { %v5425_v28 = vsel %vm4229_vm7, 4294967295, %v5424_v28  ;;  %v388_v32 = vsel %vm324_vm9, 1.0, %v5423_v42 }
 0x19a   :  { %2886 = vmatmul.msk.bf16.gmra.mxu0 %vm5426_vm6, %v438_v63  ;;  %v289_v63 = vpop.permute.xlu2 %288 }
 0x19b   :  { %vm359_vm9 = vcmp.eq.s32.totalorder %v3444_v58, %v289_v63 }
 0x19d   :  { %v4243_v45 = vpop.permute.xlu1 %210  ;;  %v286_v19 = vpop.permute.xlu0 %285 }
 0x19e   :  { %vm358_vm5 = vcmp.eq.s32.totalorder %v3444_v58, %v286_v19  ;;  %v387_v19 = vsel %vm323_vm4, 1.0, %v5423_v42 }
 0x19f   :  { %v422_v30 = vsel %vm358_vm5, 1.0, %v5423_v42  ;;  %v4248_v23 = vpop.f32.mrf.mxu0  ;;  %v4250_v29 = vpop.f32.mrf.mxu1  ;;  %v439_v57 = vpack.c.bf16 %v388_v32, %v387_v19  ;;  %v3151_v32 = vld [vmem:[%s5304_s4] sm:$0xff]  ;;  %v423_v19 = vsel %vm359_vm9, 1.0, %v5423_v42 }
 0x1a0   :  { %v456_v49 = vpack.c.bf16 %v422_v30, %v421_v61  ;;  %v5427_v61 = vmov 0 }
 0x1a2   :  { %2904 = vmatmul.msk.bf16.vlgmr.msra.gmra.mxu3 %vm5426_vm6, %v456_v49  ;;  %2958 = vmatmul.msk.bf16.gmra.mxu1 %vm3707_vm14, %v5422_v34  ;;  %vm5429_vm14 = vmmov %vm5426_vm6  ;;  %v4281_v47 = vpop.permute.xlu2 %219  ;;  %vm325_vm6 = vcmp.eq.s32.totalorder %v3444_v58, %v4130_v41 }
 0x1a5   :  { %v1032_v59 = vpop.permute.xlu1 %1031  ;;  %v1029_v20 = vpop.permute.xlu0 %1028 }
 0x1a6   :  { %vm1104_vm10 = vcmp.eq.s32.totalorder %v3444_v58, %v1032_v59  ;;  %vm1103_vm5 = vcmp.eq.s32.totalorder %v3444_v58, %v1029_v20  ;;  %v3152_v59 = vld [vmem:[%s5304_s4 + $0x8] sm:$0xff] }
 0x1a7   :  { %vm4264_vm7 = vmpackc.low %vm1104_vm10, %vm1103_vm5  ;;  %v4268_v26 = vpop.f32.mrf.mxu0  ;;  %v4270_v12 = vpop.f32.mrf.mxu1  ;;  %1870 = vmatpush.bf16.msrb.mxu3 %v3152_v59  ;;  %vm5431_vm5 = vnez %v5362_v9  ;;  %v389_v59 = vsel %vm325_vm6, 1.0, %v5423_v42 }
 0x1a8   :  { %v5428_v61 = vsel %vm4264_vm7, 4294967295, %v5427_v61  ;;  %vm5430_vm10 = vmmov %vm5429_vm14 }
 0x1a9   :  { %vm5434_vm6 = vmmov %vm5430_vm10 }
 0x1aa   :  { %2887 = vmatmul.msk.bf16.gmra.mxu0 %vm5429_vm14, %v439_v57  ;;  %vm326_vm14 = vcmp.eq.s32.totalorder %v3444_v58, %v4101_v4 }
 0x1ab   :  { %1871 = vmatpush.bf16.msrb.mxu3 %v3151_v32  ;;  %v390_v32 = vsel %vm326_vm14, 1.0, %v5423_v42  ;;  %vm5435_vm14 = vmmov %vm5434_vm6 }
 0x1ad   :  { %v4279_v20 = vpop.permute.xlu1 %216  ;;  %v292_v49 = vpop.permute.xlu0 %291 }
 0x1ae   :  { %vm360_vm4 = vcmp.eq.s32.totalorder %v3444_v58, %v292_v49 }
 0x1af   :  { %v424_v57 = vsel %vm360_vm4, 1.0, %v5423_v42  ;;  %v4289_v30 = vpop.f32.mrf.mxu0  ;;  %v4291_v1 = vpop.f32.mrf.mxu1 }
 0x1b0   :  { %v457_v63 = vpack.c.bf16 %v424_v57, %v423_v19  ;;  %v440_v57 = vpack.c.bf16 %v390_v32, %v389_v59 }
 0x1b2   :  { %2905 = vmatmul.msk.bf16.gmra.mxu3 %vm5430_vm10, %v457_v63  ;;  %2960 = vmatmul.msk.bf16.gmra.mxu1 %vm5431_vm5, %v5422_v34  ;;  %v295_v63 = vpop.permute.xlu2 %294 }
 0x1b3   :  { %vm361_vm10 = vcmp.eq.s32.totalorder %v3444_v58, %v295_v63 }
 0x1b5   :  { %v1038_v49 = vpop.permute.xlu1 %1037  ;;  %v1035_v13 = vpop.permute.xlu0 %1034 }
 0x1b6   :  { %vm1106_vm9 = vcmp.eq.s32.totalorder %v3444_v58, %v1038_v49  ;;  %vm1105_vm4 = vcmp.eq.s32.totalorder %v3444_v58, %v1035_v13  ;;  %v425_v49 = vsel %vm361_vm10, 1.0, %v5423_v42  ;;  %vm330_vm10 = vcmp.eq.s32.totalorder %v3444_v58, %v4192_v18 }
 0x1b7   :  { %vm4305_vm7 = vmpackc.low %vm1106_vm9, %vm1105_vm4  ;;  %v4309_v19 = vpop.f32.mrf.mxu0  ;;  %v4311_v9 = vpop.f32.mrf.mxu1  ;;  %vm5436_vm9 = vnez %v5360_v6  ;;  %v757_v6 = vpack.c.bf16 %v4138_v38, %v4123_v48  ;;  %v758_v18 = vpack.c.bf16 %v4178_v33, %v4157_v7 }
 0x1b8   :  { %vm5438_vm4 = vmmov %vm5434_vm6  ;;  %v5455_v43 = vpack.c.bf16 %v4311_v9, %v4291_v1 }
 0x1ba   :  { %2888 = vmatmul.msk.bf16.gmra.mxu0 %vm5434_vm6, %v440_v57  ;;  %vm1490_vm6 = vcmask 261120  }
 0x1bd   :  { %v298_v13 = vpop.permute.xlu0 %297 }
 0x1be   :  { %vm362_vm5 = vcmp.eq.s32.totalorder %v3444_v58, %v298_v13  ;;  %v5437_v13 = vpack.c.bf16 %v4176_v14, %v4169_v36  ;;  %v394_v36 = vsel %vm330_vm10, 1.0, %v5423_v42  ;;  %vm332_vm10 = vcmp.eq.s32.totalorder %v3444_v58, %v4196_v8 }
 0x1bf   :  { %v426_v24 = vsel %vm362_vm5, 1.0, %v5423_v42  ;;  %v4320_v44 = vpop.f32.mrf.mxu0  ;;  %v4322_v3 = vpop.f32.mrf.mxu1  ;;  %vm329_vm5 = vcmp.eq.s32.totalorder %v3444_v58, %v4194_v53  ;;  %v759_v8 = vpack.c.bf16 %v4214_v0, %v4199_v5 }
 0x1c0   :  { %v458_v59 = vpack.c.bf16 %v426_v24, %v425_v49  ;;  %v393_v14 = vsel %vm329_vm5, 1.0, %v5423_v42  ;;  %v226_v5 = vpop.permute.xlu2 %225 }
 0x1c1   :  { %v442_v48 = vpack.c.bf16 %v394_v36, %v393_v14 }
 0x1c2   :  { %2906 = vmatmul.msk.bf16.gmra.mxu3 %vm5435_vm14, %v458_v59  ;;  %2962 = vmatmul.msk.bf16.gmra.mxu1 %vm5436_vm9, %v5422_v34  ;;  %vm5439_vm14 = vnez %v5366_v31  ;;  %vm5440_vm9 = vmmov %vm5438_vm4 }
 0x1c3   :  { %vm5441_vm5 = vmmov %vm5440_vm9 }
 0x1c7   :  { %v4328_v32 = vpop.f32.mrf.mxu0  ;;  %v4330_v57 = vpop.f32.mrf.mxu1 }
 0x1c8   :  { %v1441_v63 = vpack.c.bf16 %v4330_v57, %v4322_v3 }
 0x1ca   :  { %2889 = vmatmul.msk.bf16.gmra.mxu0 %vm5438_vm4, %v5437_v13  ;;  %vm331_vm4 = vcmp.eq.s32.totalorder %v3444_v58, %v4206_v22 }
 0x1cb   :  { %v395_v13 = vsel %vm331_vm4, 1.0, %v5423_v42  ;;  %vm5443_vm4 = vmmov %vm5441_vm5 }
 0x1cf   :  { %v4338_v4 = vpop.f32.mrf.mxu0  ;;  %v4340_v24 = vpop.f32.mrf.mxu1 }
 0x1d2   :  { %2964 = vmatmul.msk.bf16.gmra.mxu1 %vm5439_vm14, %v5422_v34  ;;  %3051 = vmatmul.msk.bf16.vlgmr.msrb.gmra.mxu3 %vm1490_vm6, %v757_v6  ;;  %v396_v6 = vsel %vm332_vm10, 1.0, %v5423_v42  ;;  %vm5442_vm14 = vnez %v5372_v55  ;;  %vm335_vm10 = vcmp.eq.s32.totalorder %v3444_v58, %v4279_v20 }
 0x1d3   :  { %v443_v7 = vpack.c.bf16 %v396_v6, %v395_v13 }
 0x1d7   :  { %v4354_v49 = vpop.f32.mrf.mxu0  ;;  %v4356_v59 = vpop.f32.mrf.mxu1 }
 0x1d8   :  { %v1442_v38 = vpack.c.bf16 %v4356_v59, %v4340_v24 }
 0x1da   :  { %2890 = vmatmul.msk.bf16.gmra.mxu0 %vm5440_vm9, %v442_v48  ;;  %vm334_vm9 = vcmp.eq.s32.totalorder %v3444_v58, %v4239_v40  ;;  %v760_v40 = vpack.c.bf16 %v4248_v23, %v4233_v2  ;;  %v399_v23 = vsel %vm335_vm10, 1.0, %v5423_v42  ;;  %v3153_v2 = vld [vmem:[%s5305_s5] sm:$0xff] }
 0x1df   :  { %v4361_v53 = vpop.f32.mrf.mxu0  ;;  %v4363_v31 = vpop.f32.mrf.mxu1 }
 0x1e2   :  { %2966 = vmatmul.msk.bf16.gmra.mxu1 %vm3811_vm2, %v5422_v34  ;;  %3052 = vmatmul.msk.bf16.gmra.mxu3 %vm1490_vm6, %v758_v18  ;;  %vm333_vm2 = vcmp.eq.s32.totalorder %v3444_v58, %v4243_v45  ;;  %v398_v18 = vsel %vm334_vm9, 1.0, %v5423_v42 }
 0x1e3   :  { %v397_v48 = vsel %vm333_vm2, 1.0, %v5423_v42  ;;  %vm336_vm2 = vcmp.eq.s32.totalorder %v3444_v58, %v4281_v47  ;;  %v223_v47 = vpop.permute.xlu1 %222 }
 0x1e4   :  { %v444_v0 = vpack.c.bf16 %v398_v18, %v397_v48  ;;  %vm337_vm9 = vcmp.eq.s32.totalorder %v3444_v58, %v223_v47  ;;  %v764_v18 = vpack.c.bf16 %v4361_v53, %v4354_v49 }
 0x1e7   :  { %v4377_v36 = vpop.f32.mrf.mxu0  ;;  %v4379_v14 = vpop.f32.mrf.mxu1 }
 0x1e8   :  { %v5458_v57 = vpack.c.bf16 %v4379_v14, %v4363_v31 }
 0x1ea   :  { %2891 = vmatmul.msk.bf16.gmra.mxu0 %vm5441_vm5, %v443_v7  ;;  %vm5444_vm5 = vnez %v5375_v15  ;;  %v3154_v7 = vld [vmem:[%s5305_s5 + $0x8] sm:$0xff]  ;;  %v400_v15 = vsel %vm336_vm2, 1.0, %v5423_v42 }
 0x1eb   :  { %1593 = vmatpush.bf16.msrb.mxu0 %v3154_v7  ;;  %3167 = vmatpush.bf16.msra.mxu2 %v3154_v7  ;;  %v445_v48 = vpack.c.bf16 %v400_v15, %v399_v23  ;;  %v761_v7 = vpack.c.bf16 %v4289_v30, %v4268_v26  ;;  %v401_v23 = vsel %vm337_vm9, 1.0, %v5423_v42  ;;  %v763_v30 = vpack.c.bf16 %v4338_v4, %v4328_v32  ;;  %v1044_v41 = vpop.permute.xlu1 %1043 }
 0x1ef   :  { %v4384_v39 = vpop.f32.mrf.mxu0  ;;  %v4386_v22 = vpop.f32.mrf.mxu1  ;;  %1594 = vmatpush.bf16.msrb.mxu0 %v3153_v2  ;;  %3168 = vmatpush.bf16.msra.mxu2 %v3153_v2 }
 0x1f0   :  { %v765_v33 = vpack.c.bf16 %v4384_v39, %v4377_v36 }
 0x1f2   :  { %2968 = vmatmul.msk.bf16.gmra.mxu1 %vm5442_vm14, %v5422_v34  ;;  %3053 = vmatmul.msk.bf16.gmra.mxu3 %vm1490_vm6, %v759_v8  ;;  %vm5445_vm14 = vmmov %vm5443_vm4 }
 0x1f3   :  { %vm5446_vm10 = vmmov %vm5445_vm14 }
 0x1f7   :  { %v4400_v13 = vpop.f32.mrf.mxu0  ;;  %v4402_v6 = vpop.f32.mrf.mxu1 }
 0x1fa   :  { %2892 = vmatmul.msk.bf16.gmra.mxu0 %vm5443_vm4, %v444_v0  ;;  %vm338_vm4 = vcmp.eq.s32.totalorder %v3444_v58, %v226_v5  ;;  %v762_v5 = vpack.c.bf16 %v4320_v44, %v4309_v19 }
 0x1fb   :  { %v402_v2 = vsel %vm338_vm4, 1.0, %v5423_v42 }
 0x1fc   :  { %v446_v26 = vpack.c.bf16 %v402_v2, %v401_v23  ;;  %v5452_v2 = vpack.c.bf16 %v4270_v12, %v4250_v29 }
 0x1ff   :  { %v4407_v55 = vpop.f32.mrf.mxu0  ;;  %v4409_v45 = vpop.f32.mrf.mxu1 }
 0x202   :  { %2970 = vmatmul.msk.bf16.gmra.mxu1 %vm5444_vm5, %v5422_v34  ;;  %3054 = vmatmul.msk.bf16.gmra.mxu3 %vm1490_vm6, %v760_v40  ;;  %vm5500_vm5 = vmmov %vm5446_vm10 }
 0x203   :  { %vm5504_vm2 = vmmov %vm5500_vm5 }
 0x204   :  { %vm5512_vm9 = vmmov %vm5504_vm2 }
 0x205   :  { %vm5513_vm4 = vmmov %vm5504_vm2 }
 0x207   :  { %v4429_v20 = vpop.f32.mrf.mxu0  ;;  %v4431_v8 = vpop.f32.mrf.mxu1 }
 0x20a   :  { %2893 = vmatmul.msk.bf16.gmra.mxu0 %vm5445_vm14, %v445_v48  ;;  %vm5508_vm14 = vmmov %vm5504_vm2 }
 0x20f   :  { %v4436_v0 = vpop.f32.mrf.mxu0  ;;  %v4438_v40 = vpop.f32.mrf.mxu1 }
 0x212   :  { %2972 = vmatmul.msk.bf16.gmra.mxu1 %vm3898_vm0, %v5422_v34  ;;  %3055 = vmatmul.msk.bf16.gmra.mxu3 %vm1490_vm6, %v761_v7  ;;  %vm5450_vm0 = vnez %v5385_v11 }
 0x217   :  { %v4450_v15 = vpop.f32.mrf.mxu0  ;;  %v4452_v48 = vpop.f32.mrf.mxu1 }
 0x21a   :  { %2894 = vmatmul.msk.bf16.gmra.mxu0 %vm5446_vm10, %v446_v26  ;;  %v5448_v26 = vpack.c.bf16 %v4235_v54, %v4216_v17  ;;  %vm5514_vm10 = vmmov %vm5504_vm2 }
 0x21f   :  { %v4457_v27 = vpop.f32.mrf.mxu0  ;;  %v4459_v47 = vpop.f32.mrf.mxu1 }
 0x222   :  { %2974 = vmatmul.msk.bf16.gmra.mxu1 %vm3920_vm1, %v5422_v34  ;;  %3056 = vmatmul.msk.bf16.gmra.mxu3 %vm1490_vm6, %v762_v5  ;;  %vm5457_vm1 = vnez %v5397_v21 }
 0x225   :  { %v4467_v42 = vpop.f32.mrf.mxu3 }
 0x226   :  { %5447 = vst [vmem:[#allocation20_spill] sm:$0xff] %v4467_v42 }
 0x227   :  { %v4469_v7 = vpop.f32.mrf.mxu0  ;;  %v4471_v23 = vpop.f32.mrf.mxu1 }
 0x22a   :  { %3011 = vmatmul.msk.bf16.vlgmr.msrb.gmra.mxu0 %vm1490_vm6, %v5448_v26 }
 0x22d   :  { %v4479_v44 = vpop.f32.mrf.mxu3 }
 0x22e   :  { %5449 = vst [vmem:[#allocation21_spill] sm:$0xff] %v4479_v44 }
 0x22f   :  { %v4483_v19 = vpop.f32.mrf.mxu0  ;;  %v4485_v5 = vpop.f32.mrf.mxu1 }
 0x232   :  { %2976 = vmatmul.msk.bf16.gmra.mxu1 %vm5450_vm0, %v5422_v34  ;;  %3057 = vmatmul.msk.bf16.gmra.mxu3 %vm1490_vm6, %v763_v30  ;;  %vm5515_vm0 = vmmov %vm5504_vm2 }
 0x235   :  { %v4493_v17 = vpop.f32.mrf.mxu3 }
 0x236   :  { %5451 = vst [vmem:[#allocation22_spill] sm:$0xff] %v4493_v17  ;;  %v5464_v17 = vpack.c.bf16 %v4452_v48, %v4438_v40 }
 0x237   :  { %v4495_v54 = vpop.f32.mrf.mxu0  ;;  %v4497_v26 = vpop.f32.mrf.mxu1 }
 0x23a   :  { %3012 = vmatmul.msk.bf16.gmra.mxu0 %vm1490_vm6, %v5452_v2 }
 0x23d   :  { %v4505_v4 = vpop.f32.mrf.mxu3 }
 0x23e   :  { %5453 = vst [vmem:[#allocation23_spill] sm:$0xff] %v4505_v4 }
 0x23f   :  { %v4509_v32 = vpop.f32.mrf.mxu0  ;;  %v4511_v30 = vpop.f32.mrf.mxu1 }
 0x242   :  { %2978 = vmatmul.msk.bf16.gmra.mxu1 %vm3995_vm12, %v5422_v34  ;;  %3058 = vmatmul.msk.bf16.gmra.mxu3 %vm1490_vm6, %v764_v18  ;;  %vm5460_vm12 = vnez %v5409_v16 }
 0x245   :  { %v4519_v29 = vpop.f32.mrf.mxu3 }
 0x246   :  { %5454 = vst [vmem:[#allocation24_spill] sm:$0xff] %v4519_v29  ;;  %v5459_v29 = vpack.c.bf16 %v4402_v6, %v4386_v22 }
 0x247   :  { %v4521_v12 = vpop.f32.mrf.mxu0  ;;  %v4523_v2 = vpop.f32.mrf.mxu1 }
 0x24a   :  { %3013 = vmatmul.msk.bf16.gmra.mxu0 %vm1490_vm6, %v5455_v43 }
 0x24d   :  { %v4531_v49 = vpop.f32.mrf.mxu3 }
 0x24e   :  { %5456 = vst [vmem:[#allocation25_spill] sm:$0xff] %v4531_v49  ;;  %v5461_v49 = vpack.c.bf16 %v4431_v8, %v4409_v45 }
 0x24f   :  { %v4535_v53 = vpop.f32.mrf.mxu0  ;;  %v4537_v18 = vpop.f32.mrf.mxu1 }
 0x250   :  { %v771_v42 = vpack.c.bf16 %v4535_v53, %v4521_v12 }
 0x252   :  { %2980 = vmatmul.msk.bf16.gmra.mxu1 %vm4017_vm13, %v5422_v34  ;;  %3059 = vmatmul.msk.bf16.gmra.mxu3 %vm1490_vm6, %v765_v33  ;;  %v766_v33 = vpack.c.bf16 %v4407_v55, %v4400_v13  ;;  %v767_v55 = vpack.c.bf16 %v4436_v0, %v4429_v20  ;;  %vm5463_vm13 = vnez %v5412_v35  ;;  %v4674_v35 = vld [vmem:[%s5306_s6] ss:$0 sm:$0xff] }
 0x255   :  { %v1873_v1 = vpop.f32.mrf.mxu3 }
 0x257   :  { %v4545_v9 = vpop.f32.mrf.mxu0  ;;  %v4547_v43 = vpop.f32.mrf.mxu1 }
 0x25a   :  { %3014 = vmatmul.msk.bf16.gmra.mxu0 %vm1490_vm6, %v1441_v63 }
 0x25d   :  { %v1875_v36 = vpop.f32.mrf.mxu3 }
 0x25f   :  { %v4555_v39 = vpop.f32.mrf.mxu0  ;;  %v4557_v46 = vpop.f32.mrf.mxu1 }
 0x262   :  { %2982 = vmatmul.msk.bf16.gmra.mxu1 %vm5457_vm1, %v5422_v34  ;;  %3060 = vmatmul.msk.bf16.gmra.mxu3 %vm1490_vm6, %v766_v33  ;;  %vm5516_vm1 = vmmov %vm5515_vm0 }
 0x265   :  { %v4565_v62 = vpop.f32.mrf.mxu3 }
 0x267   :  { %v4567_v11 = vpop.f32.mrf.mxu0  ;;  %v4569_v3 = vpop.f32.mrf.mxu1 }
 0x26a   :  { %3015 = vmatmul.msk.bf16.gmra.mxu0 %vm1490_vm6, %v1442_v38 }
 0x26d   :  { %v4577_v63 = vpop.f32.mrf.mxu3 }
 0x26f   :  { %v4579_v21 = vpop.f32.mrf.mxu0  ;;  %v4581_v13 = vpop.f32.mrf.mxu1 }
 0x272   :  { %2984 = vmatmul.msk.bf16.gmra.mxu1 %vm4089_vm3, %v5422_v34  ;;  %3061 = vmatmul.msk.bf16.gmra.mxu3 %vm1490_vm6, %v767_v55  ;;  %v768_v55 = vpack.c.bf16 %v4457_v27, %v4450_v15  ;;  %vm5467_vm3 = vnez %v5425_v28 }
 0x275   :  { %v4589_v33 = vpop.f32.mrf.mxu3 }
 0x277   :  { %v4591_v24 = vpop.f32.mrf.mxu0  ;;  %v4593_v59 = vpop.f32.mrf.mxu1 }
 0x27a   :  { %3016 = vmatmul.msk.bf16.gmra.mxu0 %vm1490_vm6, %v5458_v57 }
 0x27d   :  { %v4601_v20 = vpop.f32.mrf.mxu3 }
 0x27f   :  { %v4603_v51 = vpop.f32.mrf.mxu0  ;;  %v4605_v0 = vpop.f32.mrf.mxu1 }
 0x282   :  { %2986 = vmatmul.msk.bf16.gmra.mxu1 %vm4104_vm15, %v5422_v34  ;;  %3062 = vmatmul.msk.bf16.gmra.mxu3 %vm1490_vm6, %v768_v55  ;;  %v769_v55 = vpack.c.bf16 %v4483_v19, %v4469_v7  ;;  %vm5469_vm15 = vnez %v5428_v61 }
 0x285   :  { %v4613_v38 = vpop.f32.mrf.mxu3 }
 0x287   :  { %v4615_v31 = vpop.f32.mrf.mxu0  ;;  %v4617_v14 = vpop.f32.mrf.mxu1 }
 0x28a   :  { %3017 = vmatmul.msk.bf16.gmra.mxu0 %vm1490_vm6, %v5459_v29 }
 0x28d   :  { %v4625_v15 = vpop.f32.mrf.mxu3 }
 0x28f   :  { %v4627_v60 = vpop.f32.mrf.mxu0  ;;  %v4629_v27 = vpop.f32.mrf.mxu1 }
 0x292   :  { %2988 = vmatmul.msk.bf16.gmra.mxu1 %vm5460_vm12, %v5422_v34  ;;  %3063 = vmatmul.msk.bf16.gmra.mxu3 %vm1490_vm6, %v769_v55  ;;  %v770_v55 = vpack.c.bf16 %v4509_v32, %v4495_v54  ;;  %vm5517_vm12 = vmmov %vm5515_vm0 }
 0x295   :  { %v4637_v57 = vpop.f32.mrf.mxu3 }
 0x297   :  { %v4639_v22 = vpop.f32.mrf.mxu0  ;;  %v4641_v6 = vpop.f32.mrf.mxu1 }
 0x29a   :  { %3018 = vmatmul.msk.bf16.gmra.mxu0 %vm1490_vm6, %v5461_v49 }
 0x29d   :  { %v4649_v7 = vpop.f32.mrf.mxu3 }
 0x29f   :  { %v4651_v16 = vpop.f32.mrf.mxu0  ;;  %v4653_v19 = vpop.f32.mrf.mxu1 }
 0x2a0   :  { %5462 = vst [vmem:[#allocation26_spill] sm:$0xff] %v4653_v19 }
 0x2a2   :  { %2990 = vmatmul.msk.bf16.gmra.mxu1 %vm5463_vm13, %v5422_v34  ;;  %3064 = vmatmul.msk.bf16.gmra.mxu3 %vm1490_vm6, %v770_v55  ;;  %vm5518_vm13 = vmmov %vm5515_vm0 }
 0x2a5   :  { %v4661_v29 = vpop.f32.mrf.mxu3 }
 0x2a7   :  { %v4663_v45 = vpop.f32.mrf.mxu1  ;;  %v1596_v8 = vpop.f32.mrf.mxu0 }
 0x2a8   :  { %v1874_v54 = vadd.f32 %v1873_v1, %v1596_v8 }
 0x2aa   :  { %3019 = vmatmul.msk.bf16.gmra.mxu0 %vm1490_vm6, %v5464_v17  ;;  %v2037_v49 = vadd.f32 %v4674_v35, %v1874_v54 }
 0x2ac   :  { %v2101_v48 = vmax.f32 %v2037_v49, 0.0  ;;  %v772_v49 = vpack.c.bf16 %v4555_v39, %v4545_v9 }
 0x2ad   :  { %v4676_v32 = vpop.f32.mrf.mxu3 }
 0x2af   :  { %v4678_v55 = vpop.f32.mrf.mxu1  ;;  %v1598_v4 = vpop.f32.mrf.mxu0 }
 0x2b0   :  { %v1876_v44 = vadd.f32 %v1875_v36, %v1598_v4 }
 0x2b2   :  { %v2038_v40 = vadd.f32 %v4674_v35, %v1876_v44  ;;  %2992 = vmatmul.msk.bf16.gmra.mxu1 %vm4171_vm8, %v5422_v34  ;;  %3065 = vmatmul.msk.bf16.gmra.mxu3 %vm1490_vm6, %v771_v42  ;;  %v5465_v44 = vpack.c.bf16 %v4471_v23, %v4459_v47  ;;  %vm1108_vm8 = vcmp.eq.s32.totalorder %v3444_v58, %v1044_v41 }
 0x2b3   :  { %v5474_v41 = vpack.c.bf16 %v4617_v14, %v4605_v0 }
 0x2b4   :  { %v2102_v17 = vmax.f32 %v2038_v40, 0.0 }
 0x2b5   :  { %v4688_v1 = vpop.f32.mrf.mxu3 }
 0x2b6   :  { %v4690_v8 = vpack.c.bf16 %v2102_v17, %v2101_v48 }
 0x2b7   :  { %v4692_v19 = vpop.f32.mrf.mxu1  ;;  %v1601_v12 = vpop.f32.mrf.mxu0 }
 0x2b8   :  { %v1456_v4 = vpack.c.bf16 %v4692_v19, %v4678_v55  ;;  %v1879_v37 = vadd.f32 %v4565_v62, %v1601_v12 }
 0x2ba   :  { %3020 = vmatmul.msk.bf16.gmra.mxu0 %vm1490_vm6, %v5465_v44  ;;  %v2039_v54 = vadd.f32 %v4674_v35, %v1879_v37 }
 0x2bc   :  { %v2103_v47 = vmax.f32 %v2039_v54, 0.0 }
 0x2bd   :  { %v4701_v42 = vpop.f32.mrf.mxu3 }
 0x2bf   :  { %v4703_v53 = vpop.f32.mrf.mxu1  ;;  %v1603_v36 = vpop.f32.mrf.mxu0 }
 0x2c0   :  { %v1881_v40 = vadd.f32 %v4577_v63, %v1603_v36  ;;  %v5466_v63 = vpack.c.bf16 %v4497_v26, %v4485_v5 }
 0x2c2   :  { %v2040_v48 = vadd.f32 %v4674_v35, %v1881_v40  ;;  %2994 = vmatmul.msk.bf16.gmra.mxu1 %vm4210_vm11, %v5422_v34  ;;  %3066 = vmatmul.msk.bf16.gmra.mxu3 %vm1490_vm6, %v772_v49  ;;  %v773_v49 = vpack.c.bf16 %v4579_v21, %v4567_v11  ;;  %v5468_v21 = vpack.c.bf16 %v4523_v2, %v4511_v30 }
 0x2c4   :  { %v2104_v23 = vmax.f32 %v2040_v48, 0.0 }
 0x2c5   :  { %v4714_v62 = vpop.f32.mrf.mxu3 }
 0x2c6   :  { %v4716_v17 = vpack.c.bf16 %v2104_v23, %v2103_v47 }
 0x2c7   :  { %v4718_v12 = vpop.f32.mrf.mxu1  ;;  %v1606_v9 = vpop.f32.mrf.mxu0 }
 0x2c8   :  { %v1457_v39 = vpack.c.bf16 %v4718_v12, %v4703_v53  ;;  %v1884_v52 = vadd.f32 %v4589_v33, %v1606_v9  ;;  %v3158_v53 = vld [vmem:[%s5307_s7 + $0x18] sm:$0xff] }
 0x2c9   :  { %2333 = vmatpush.bf16.msrb.mxu2 %v3158_v53 }
 0x2ca   :  { %3021 = vmatmul.msk.bf16.gmra.mxu0 %vm1490_vm6, %v5466_v63  ;;  %v2041_v54 = vadd.f32 %v4674_v35, %v1884_v52  ;;  %v774_v52 = vpack.c.bf16 %v4603_v51, %v4591_v24 }
 0x2cc   :  { %v2105_v5 = vmax.f32 %v2041_v54, 0.0 }
 0x2cd   :  { %v4727_v44 = vpop.f32.mrf.mxu3 }
 0x2cf   :  { %v4729_v37 = vpop.f32.mrf.mxu1  ;;  %v1608_v36 = vpop.f32.mrf.mxu0 }
 0x2d0   :  { %v1886_v40 = vadd.f32 %v4601_v20, %v1608_v36 }
 0x2d2   :  { %v2042_v48 = vadd.f32 %v4674_v35, %v1886_v40  ;;  %2996 = vmatmul.msk.bf16.gmra.mxu1 %vm5467_vm3, %v5422_v34  ;;  %3067 = vmatmul.msk.bf16.gmra.mxu3 %vm1490_vm6, %v773_v49  ;;  %vm5519_vm3 = vmmov %vm5515_vm0 }
 0x2d4   :  { %v2106_v26 = vmax.f32 %v2042_v48, 0.0 }
 0x2d5   :  { %v4740_v33 = vpop.f32.mrf.mxu3 }
 0x2d6   :  { %v4742_v47 = vpack.c.bf16 %v2106_v26, %v2105_v5 }
 0x2d7   :  { %v4744_v23 = vpop.f32.mrf.mxu1  ;;  %v1611_v11 = vpop.f32.mrf.mxu0 }
 0x2d8   :  { %v1889_v20 = vadd.f32 %v4613_v38, %v1611_v11 }
 0x2da   :  { %3022 = vmatmul.msk.bf16.gmra.mxu0 %vm1490_vm6, %v5468_v21  ;;  %v2043_v36 = vadd.f32 %v4674_v35, %v1889_v20  ;;  %v775_v21 = vpack.c.bf16 %v4627_v60, %v4615_v31 }
 0x2dc   :  { %v2107_v30 = vmax.f32 %v2043_v36, 0.0 }
 0x2dd   :  { %v4751_v28 = vpop.f32.mrf.mxu3 }
 0x2df   :  { %v1383_v9 = vpop.f32.mrf.mxu1  ;;  %v1613_v63 = vpop.f32.mrf.mxu0 }
 0x2e0   :  { %v1891_v49 = vadd.f32 %v4625_v15, %v1613_v63  ;;  %v5470_v15 = vpack.c.bf16 %v4547_v43, %v4537_v18 }
 0x2e2   :  { %v2044_v54 = vadd.f32 %v4674_v35, %v1891_v49  ;;  %2998 = vmatmul.msk.bf16.gmra.mxu1 %vm5469_vm15, %v5422_v34  ;;  %3068 = vmatmul.msk.bf16.gmra.mxu3 %vm1490_vm6, %v774_v52  ;;  %v1041_v49 = vpop.permute.xlu0 %1040  ;;  %vm5520_vm15 = vmmov %vm5515_vm0 }
 0x2e3   :  { %vm1107_vm11 = vcmp.eq.s32.totalorder %v3444_v58, %v1041_v49 }
 0x2e4   :  { %v2108_v2 = vmax.f32 %v2044_v54, 0.0 }
 0x2e5   :  { %v4762_v38 = vpop.f32.mrf.mxu3 }
 0x2e6   :  { %v4764_v40 = vpack.c.bf16 %v2108_v2, %v2107_v30 }
 0x2e7   :  { %v1385_v48 = vpop.f32.mrf.mxu1  ;;  %v1616_v24 = vpop.f32.mrf.mxu0 }
 0x2e8   :  { %v1459_v51 = vpack.c.bf16 %v1385_v48, %v1383_v9  ;;  %v1894_v61 = vadd.f32 %v4637_v57, %v1616_v24  ;;  %v776_v24 = vpack.c.bf16 %v4651_v16, %v4639_v22  ;;  %v5472_v16 = vpack.c.bf16 %v4593_v59, %v4581_v13 }
 0x2ea   :  { %3023 = vmatmul.msk.bf16.gmra.mxu0 %vm1490_vm6, %v5470_v15  ;;  %3032 = vmatmul.msk.bf16.vlgmr.msra.gmra.mxu2 %vm1490_vm6, %v1459_v51  ;;  %v2045_v20 = vadd.f32 %v4674_v35, %v1894_v61 }
 0x2ec   :  { %v2109_v18 = vmax.f32 %v2045_v20, 0.0 }
 0x2ed   :  { %v4772_v5 = vpop.f32.mrf.mxu3 }
 0x2ef   :  { %v1388_v26 = vpop.f32.mrf.mxu1  ;;  %v1618_v11 = vpop.f32.mrf.mxu0 }
 0x2f0   :  { %v1896_v9 = vadd.f32 %v4649_v7, %v1618_v11  ;;  %v5471_v7 = vpack.c.bf16 %v4569_v3, %v4557_v46 }
 0x2f2   :  { %v2046_v63 = vadd.f32 %v4674_v35, %v1896_v9  ;;  %3000 = vmatmul.msk.bf16.gmra.mxu1 %vm4305_vm7, %v5422_v34  ;;  %3069 = vmatmul.msk.bf16.gmra.mxu3 %vm1490_vm6, %v775_v21  ;;  %vm3001_vm7 = vmpackc.low %vm1108_vm8, %vm1107_vm11 }
 0x2f3   :  { %vm5521_vm8 = vmmov %vm5515_vm0 }
 0x2f4   :  { %v2110_v43 = vmax.f32 %v2046_v63, 0.0  ;;  %vm5522_vm11 = vmmov %vm5515_vm0 }
 0x2f5   :  { %v4783_v57 = vpop.f32.mrf.mxu3 }
 0x2f6   :  { %v4785_v52 = vpack.c.bf16 %v2110_v43, %v2109_v18  ;;  %v5473_v43 = vpack.c.bf16 %v3853_v10, %v3833_v56 }
 0x2f7   :  { %v1390_v36 = vpop.f32.mrf.mxu1  ;;  %v1621_v31 = vpop.f32.mrf.mxu0 }
 0x2f8   :  { %v1460_v60 = vpack.c.bf16 %v1390_v36, %v1388_v26  ;;  %v1899_v54 = vadd.f32 %v4661_v29, %v1621_v31 }
 0x2fa   :  { %3024 = vmatmul.msk.bf16.gmra.mxu0 %vm1490_vm6, %v5471_v7  ;;  %3033 = vmatmul.msk.bf16.gmra.mxu2 %vm1490_vm6, %v1460_v60  ;;  %v2047_v46 = vadd.f32 %v4674_v35, %v1899_v54 }
 0x2fc   :  { %v2111_v29 = vmax.f32 %v2047_v46, 0.0 }
 0x2fd   :  { %v4793_v30 = vpop.f32.mrf.mxu3 }
 0x2ff   :  { %v1393_v2 = vpop.f32.mrf.mxu1  ;;  %v1623_v48 = vpop.f32.mrf.mxu0 }
 0x300   :  { %v1901_v3 = vadd.f32 %v4676_v32, %v1623_v48 }
 0x302   :  { %v2048_v51 = vadd.f32 %v4674_v35, %v1901_v3  ;;  %3002 = vmatmul.msk.bf16.gmra.mxu1 %vm3001_vm7, %v5422_v34  ;;  %3070 = vmatmul.msk.bf16.gmra.mxu3 %vm1490_vm6, %v776_v24  ;;  %v5475_v24 = vpack.c.bf16 %v3902_v50, %v3876_v25  ;;  %vm5523_vm7 = vmmov %vm5515_vm0 }
 0x304   :  { %v2112_v15 = vmax.f32 %v2048_v51, 0.0 }
 0x305   :  { %v4804_v61 = vpop.f32.mrf.mxu3 }
 0x306   :  { %v4806_v58 = vpack.c.bf16 %v2112_v15, %v2111_v29  ;;  %v5476_v15 = vpack.c.bf16 %v4641_v6, %v4629_v27 }
 0x307   :  { %v1395_v26 = vpop.f32.mrf.mxu1  ;;  %v1626_v11 = vpop.f32.mrf.mxu0 }
 0x308   :  { %v1461_v22 = vpack.c.bf16 %v1395_v26, %v1393_v2  ;;  %v1904_v34 = vadd.f32 %v4688_v1, %v1626_v11 }
 0x30a   :  { %3025 = vmatmul.msk.bf16.gmra.mxu0 %vm1490_vm6, %v5472_v16  ;;  %3034 = vmatmul.msk.bf16.gmra.mxu2 %vm1490_vm6, %v1461_v22  ;;  %v2049_v9 = vadd.f32 %v4674_v35, %v1904_v34  ;;  %v5477_v34 = vld [vmem:[#allocation7_spill] sm:$0xff] }
 0x30c   :  { %v2113_v13 = vmax.f32 %v2049_v9, 0.0 }
 0x30d   :  { %v4814_v32 = vpop.f32.mrf.mxu3 }
 0x30f   :  { %v1398_v21 = vpop.f32.mrf.mxu1  ;;  %v1628_v20 = vpop.f32.mrf.mxu0 }
 0x310   :  { %v1906_v63 = vadd.f32 %v4701_v42, %v1628_v20 }
 0x312   :  { %v2050_v18 = vadd.f32 %v4674_v35, %v1906_v63  ;;  %3071 = vmatmul.msk.bf16.gmra.mxu3 %vm1490_vm6, %v5473_v43  ;;  %v5480_v43 = vld [vmem:[#allocation26_spill] sm:$0xff] }
 0x314   :  { %v2114_v59 = vmax.f32 %v2050_v18, 0.0 }
 0x315   :  { %v4823_v36 = vpop.f32.mrf.mxu3 }
 0x316   :  { %v4825_v1 = vpack.c.bf16 %v2114_v59, %v2113_v13  ;;  %v5481_v13 = vpack.c.bf16 %v4663_v45, %v5480_v43 }
 0x317   :  { %v1400_v31 = vpop.f32.mrf.mxu1  ;;  %v1631_v60 = vpop.f32.mrf.mxu0 }
 0x318   :  { %v1462_v7 = vpack.c.bf16 %v1400_v31, %v1398_v21  ;;  %v1909_v56 = vadd.f32 %v4714_v62, %v1631_v60  ;;  %v5478_v21 = vld [vmem:[#allocation6_spill] sm:$0xff]  ;;  %v5482_v31 = vld [vmem:[#allocation9_spill] sm:$0xff]  ;;  %v5483_v60 = vld [vmem:[#allocation8_spill] sm:$0xff] }
 0x319   :  { %v5479_v20 = vpack.c.bf16 %v5477_v34, %v5478_v21 }
 0x31a   :  { %3026 = vmatmul.msk.bf16.gmra.mxu0 %vm1490_vm6, %v5474_v41  ;;  %3035 = vmatmul.msk.bf16.gmra.mxu2 %vm1490_vm6, %v1462_v7  ;;  %v2051_v54 = vadd.f32 %v4674_v35, %v1909_v56  ;;  %v5484_v7 = vpack.c.bf16 %v5482_v31, %v5483_v60 }
 0x31c   :  { %v2115_v0 = vmax.f32 %v2051_v54, 0.0  ;;  %v5485_v54 = vld [vmem:[#allocation11_spill] sm:$0xff] }
 0x31d   :  { %v4833_v10 = vpop.f32.mrf.mxu3 }
 0x31f   :  { %v1403_v42 = vpop.f32.mrf.mxu1  ;;  %v1633_v49 = vpop.f32.mrf.mxu0 }
 0x320   :  { %v1911_v2 = vadd.f32 %v4727_v44, %v1633_v49 }
 0x322   :  { %v2052_v48 = vadd.f32 %v4674_v35, %v1911_v2  ;;  %3072 = vmatmul.msk.bf16.gmra.mxu3 %vm1490_vm6, %v5475_v24  ;;  %v5486_v2 = vld [vmem:[#allocation10_spill] sm:$0xff] }
 0x324   :  { %v2116_v14 = vmax.f32 %v2052_v48, 0.0  ;;  %v5487_v48 = vpack.c.bf16 %v5485_v54, %v5486_v2  ;;  %v5497_v2 = vld [vmem:[#allocation19_spill] sm:$0xff] }
 0x325   :  { %v4842_v46 = vpop.f32.mrf.mxu3 }
 0x326   :  { %v4844_v62 = vpack.c.bf16 %v2116_v14, %v2115_v0 }
 0x327   :  { %v1405_v3 = vpop.f32.mrf.mxu1  ;;  %v1636_v51 = vpop.f32.mrf.mxu0 }
 0x328   :  { %v1463_v29 = vpack.c.bf16 %v1405_v3, %v1403_v42  ;;  %v1914_v25 = vadd.f32 %v4740_v33, %v1636_v51  ;;  %v5489_v3 = vld [vmem:[#allocation12_spill] sm:$0xff] }
 0x32a   :  { %3027 = vmatmul.msk.bf16.gmra.mxu0 %vm1490_vm6, %v5476_v15  ;;  %3036 = vmatmul.msk.bf16.gmra.mxu2 %vm1490_vm6, %v1463_v29  ;;  %v2053_v11 = vadd.f32 %v4674_v35, %v1914_v25  ;;  %v1458_v25 = vpack.c.bf16 %v4744_v23, %v4729_v37  ;;  %v5491_v37 = vld [vmem:[#allocation15_spill] sm:$0xff]  ;;  %v5492_v23 = vld [vmem:[#allocation14_spill] sm:$0xff] }
 0x32c   :  { %v2117_v27 = vmax.f32 %v2053_v11, 0.0 }
 0x32d   :  { %v4852_v50 = vpop.f32.mrf.mxu3 }
 0x32f   :  { %v1408_v44 = vpop.f32.mrf.mxu1  ;;  %v1638_v26 = vpop.f32.mrf.mxu0 }
 0x330   :  { %v1916_v22 = vadd.f32 %v4751_v28, %v1638_v26  ;;  %v3157_v26 = vld [vmem:[%s5307_s7 + $0x10] sm:$0xff] }
 0x331   :  { %2334 = vmatpush.bf16.msrb.mxu2 %v3157_v26 }
 0x332   :  { %v2054_v16 = vadd.f32 %v4674_v35, %v1916_v22  ;;  %3073 = vmatmul.msk.bf16.gmra.mxu3 %vm1490_vm6, %v5479_v20  ;;  %v5493_v22 = vpack.c.bf16 %v5491_v37, %v5492_v23  ;;  %v3155_v20 = vld [vmem:[%s5307_s7] sm:$0xff] }
 0x334   :  { %v2118_v6 = vmax.f32 %v2054_v16, 0.0  ;;  %v3156_v16 = vld [vmem:[%s5307_s7 + $0x8] sm:$0xff] }
 0x335   :  { %v4861_v9 = vpop.f32.mrf.mxu3  ;;  %2335 = vmatpush.bf16.msrb.mxu2 %v3156_v16 }
 0x336   :  { %v4863_v33 = vpack.c.bf16 %v2118_v6, %v2117_v27 }
 0x337   :  { %v1410_v63 = vpop.f32.mrf.mxu1 }
 0x338   :  { %v1464_v18 = vpack.c.bf16 %v1410_v63, %v1408_v44 }
 0x339   :  { %2336 = vmatpush.bf16.msrb.mxu2 %v3155_v20 }
 0x33a   :  { %3028 = vmatmul.msk.bf16.gmra.mxu0 %vm1490_vm6, %v5481_v13  ;;  %3037 = vmatmul.msk.bf16.gmra.mxu2 %vm1490_vm6, %v1464_v18  ;;  %v5494_v13 = vld [vmem:[#allocation17_spill] sm:$0xff] }
 0x33d   :  { %v4870_v28 = vpop.f32.mrf.mxu3 }
 0x33f   :  { %v1413_v59 = vpop.f32.mrf.mxu1 }
 0x342   :  { %3074 = vmatmul.msk.bf16.gmra.mxu3 %vm1490_vm6, %v5484_v7 }
 0x345   :  { %v4876_v41 = vpop.f32.mrf.mxu3 }
 0x347   :  { %v1415_v56 = vpop.f32.mrf.mxu1 }
 0x348   :  { %v1465_v42 = vpack.c.bf16 %v1415_v56, %v1413_v59  ;;  %v5495_v59 = vld [vmem:[#allocation16_spill] sm:$0xff] }
 0x349   :  { %v5496_v31 = vpack.c.bf16 %v5494_v13, %v5495_v59 }
 0x34a   :  { %3029 = vmatmul.msk.bf16.gmra.mxu0 %vm1490_vm6, %v1456_v4  ;;  %3038 = vmatmul.msk.bf16.gmra.mxu2 %vm1490_vm6, %v1465_v42  ;;  %v5488_v4 = vld [vmem:[#allocation13_spill] sm:$0xff] }
 0x34b   :  { %v5490_v51 = vpack.c.bf16 %v5488_v4, %v5489_v3 }
 0x34d   :  { %v4883_v45 = vpop.f32.mrf.mxu3 }
 0x34f   :  { %v1418_v49 = vpop.f32.mrf.mxu1 }
 0x352   :  { %3075 = vmatmul.msk.bf16.gmra.mxu3 %vm1490_vm6, %v5487_v48  ;;  %v5498_v48 = vld [vmem:[#allocation18_spill] sm:$0xff] }
 0x355   :  { %v4889_v24 = vpop.f32.mrf.mxu3 }
 0x357   :  { %v1420_v0 = vpop.f32.mrf.mxu1 }
 0x358   :  { %v1466_v14 = vpack.c.bf16 %v1420_v0, %v1418_v49  ;;  %v5499_v0 = vpack.c.bf16 %v5497_v2, %v5498_v48 }
 0x35a   :  { %3030 = vmatmul.msk.bf16.gmra.mxu0 %vm1490_vm6, %v1457_v39  ;;  %3039 = vmatmul.msk.bf16.gmra.mxu2 %vm1490_vm6, %v1466_v14 }
 0x35d   :  { %v4896_v19 = vpop.f32.mrf.mxu3 }
 0x35f   :  { %v1423_v55 = vpop.f32.mrf.mxu1 }
 0x362   :  { %3076 = vmatmul.msk.bf16.gmra.mxu3 %vm1490_vm6, %v5490_v51  ;;  %v5501_v51 = vld [vmem:[#allocation21_spill] sm:$0xff] }
 0x365   :  { %v4902_v29 = vpop.f32.mrf.mxu3 }
 0x367   :  { %v1425_v15 = vpop.f32.mrf.mxu1 }
 0x368   :  { %v1467_v44 = vpack.c.bf16 %v1425_v15, %v1423_v55  ;;  %v5502_v15 = vld [vmem:[#allocation20_spill] sm:$0xff] }
 0x36a   :  { %3031 = vmatmul.msk.bf16.gmra.mxu0 %vm1490_vm6, %v1458_v25  ;;  %3040 = vmatmul.msk.bf16.gmra.mxu2 %vm1490_vm6, %v1467_v44  ;;  %v5503_v25 = vpack.c.bf16 %v5501_v51, %v5502_v15  ;;  %v5509_v51 = vld [vmem:[#allocation25_spill] sm:$0xff]  ;;  %v5510_v15 = vld [vmem:[#allocation24_spill] sm:$0xff] }
 0x36d   :  { %v1701_v12 = vpop.f32.mrf.mxu2  ;;  %v4911_v39 = vpop.f32.mrf.mxu3 }
 0x36f   :  { %v1428_v11 = vpop.f32.mrf.mxu1 }
 0x372   :  { %3077 = vmatmul.msk.bf16.gmra.mxu3 %vm1490_vm6, %v5493_v22 }
 0x375   :  { %v1703_v34 = vpop.f32.mrf.mxu2  ;;  %v4923_v21 = vpop.f32.mrf.mxu3 }
 0x377   :  { %v1430_v27 = vpop.f32.mrf.mxu1 }
 0x378   :  { %v1468_v6 = vpack.c.bf16 %v1430_v27, %v1428_v11  ;;  %v5505_v27 = vld [vmem:[#allocation23_spill] sm:$0xff] }
 0x37a   :  { %3041 = vmatmul.msk.bf16.gmra.mxu2 %vm1490_vm6, %v1468_v6  ;;  %v5506_v6 = vld [vmem:[#allocation22_spill] sm:$0xff] }
 0x37d   :  { %v1706_v63 = vpop.f32.mrf.mxu2  ;;  %v4929_v18 = vpop.f32.mrf.mxu3 }
 0x37f   :  { %v1433_v43 = vpop.f32.mrf.mxu1 }
 0x382   :  { %3078 = vmatmul.msk.bf16.gmra.mxu3 %vm1490_vm6, %v5496_v31 }
 0x385   :  { %v1708_v60 = vpop.f32.mrf.mxu2  ;;  %v4935_v7 = vpop.f32.mrf.mxu3 }
 0x387   :  { %v1435_v56 = vpop.f32.mrf.mxu1 }
 0x388   :  { %v1469_v42 = vpack.c.bf16 %v1435_v56, %v1433_v43  ;;  %v5507_v43 = vpack.c.bf16 %v5505_v27, %v5506_v6 }
 0x38a   :  { %3042 = vmatmul.msk.bf16.gmra.mxu2 %vm1490_vm6, %v1469_v42 }
 0x38d   :  { %v1711_v49 = vpop.f32.mrf.mxu2  ;;  %v4938_v54 = vpop.f32.mrf.mxu3 }
 0x392   :  { %3079 = vmatmul.msk.bf16.gmra.mxu3 %vm1490_vm6, %v5499_v0 }
 0x395   :  { %v1713_v14 = vpop.f32.mrf.mxu2  ;;  %v4944_v55 = vpop.f32.mrf.mxu3 }
 0x39a   :  { %3099 = vmatmul.msk.bf16.vlgmr.msrb.gmra.mxu2 %vm5500_vm5, %v4690_v8  ;;  %vm5524_vm5 = vmmov %vm5515_vm0 }
 0x39d   :  { %v1716_v4 = vpop.f32.mrf.mxu2  ;;  %v4948_v3 = vpop.f32.mrf.mxu3 }
 0x3a2   :  { %3080 = vmatmul.msk.bf16.gmra.mxu3 %vm1490_vm6, %v5503_v25  ;;  %v5511_v25 = vpack.c.bf16 %v5509_v51, %v5510_v15 }
 0x3a5   :  { %v1718_v44 = vpop.f32.mrf.mxu2  ;;  %v1978_v53 = vpop.f32.mrf.mxu3 }
 0x3a6   :  { %v1979_v26 = vadd.f32 %v1978_v53, %v1701_v12 }
 0x3a8   :  { %v2079_v23 = vadd.f32 %v4674_v35, %v1979_v26 }
 0x3aa   :  { %3100 = vmatmul.msk.bf16.gmra.mxu2 %vm5504_vm2, %v4716_v17  ;;  %v2143_v16 = vmax.f32 %v2079_v23, 0.0  ;;  %vm5525_vm2 = vmmov %vm5515_vm0 }
 0x3ad   :  { %v1721_v11 = vpop.f32.mrf.mxu2  ;;  %v1980_v37 = vpop.f32.mrf.mxu3 }
 0x3ae   :  { %v1981_v22 = vadd.f32 %v1980_v37, %v1703_v34 }
 0x3b0   :  { %v2080_v8 = vadd.f32 %v4674_v35, %v1981_v22 }
 0x3b2   :  { %v2144_v20 = vmax.f32 %v2080_v8, 0.0  ;;  %3081 = vmatmul.msk.bf16.gmra.mxu3 %vm1490_vm6, %v5507_v43 }
 0x3b4   :  { %v4962_v13 = vpack.c.bf16 %v2144_v20, %v2143_v16 }
 0x3b5   :  { %v1723_v12 = vpop.f32.mrf.mxu2  ;;  %v1983_v59 = vpop.f32.mrf.mxu3 }
 0x3b6   :  { %v1984_v31 = vadd.f32 %v1983_v59, %v1706_v63 }
 0x3b8   :  { %v2081_v34 = vadd.f32 %v4674_v35, %v1984_v31 }
 0x3ba   :  { %3101 = vmatmul.msk.bf16.gmra.mxu2 %vm5508_vm14, %v4742_v47  ;;  %v2145_v48 = vmax.f32 %v2081_v34, 0.0  ;;  %vm5526_vm14 = vmmov %vm5515_vm0 }
 0x3bd   :  { %v1726_v17 = vpop.f32.mrf.mxu2  ;;  %v1985_v56 = vpop.f32.mrf.mxu3 }
 0x3be   :  { %v1986_v42 = vadd.f32 %v1985_v56, %v1708_v60 }
 0x3c0   :  { %v2082_v2 = vadd.f32 %v4674_v35, %v1986_v42 }
 0x3c2   :  { %v2146_v0 = vmax.f32 %v2082_v2, 0.0  ;;  %3082 = vmatmul.msk.bf16.gmra.mxu3 %vm1490_vm6, %v5511_v25 }
 0x3c4   :  { %v4972_v53 = vpack.c.bf16 %v2146_v0, %v2145_v48 }
 0x3c5   :  { %v1728_v63 = vpop.f32.mrf.mxu2  ;;  %v1988_v26 = vpop.f32.mrf.mxu3 }
 0x3c6   :  { %v1989_v37 = vadd.f32 %v1988_v26, %v1711_v49 }
 0x3c8   :  { %v2083_v60 = vadd.f32 %v4674_v35, %v1989_v37 }
 0x3ca   :  { %3102 = vmatmul.msk.bf16.gmra.mxu2 %vm5512_vm9, %v4764_v40  ;;  %v2147_v16 = vmax.f32 %v2083_v60, 0.0  ;;  %vm5527_vm9 = vmmov %vm5515_vm0 }
 0x3cd   :  { %v1731_v47 = vpop.f32.mrf.mxu2  ;;  %v1990_v23 = vpop.f32.mrf.mxu3 }
 0x3ce   :  { %v1991_v22 = vadd.f32 %v1990_v23, %v1713_v14  ;;  %v1641_v14 = vpop.f32.mrf.mxu0 }
 0x3d0   :  { %v2084_v8 = vadd.f32 %v4674_v35, %v1991_v22 }
 0x3d2   :  { %v2148_v20 = vmax.f32 %v2084_v8, 0.0 }
 0x3d4   :  { %v4978_v27 = vpack.c.bf16 %v2148_v20, %v2147_v16 }
 0x3d5   :  { %v1733_v6 = vpop.f32.mrf.mxu2  ;;  %v1993_v43 = vpop.f32.mrf.mxu3 }
 0x3d6   :  { %v1994_v59 = vadd.f32 %v1993_v43, %v1716_v4  ;;  %v1643_v4 = vpop.f32.mrf.mxu0 }
 0x3d8   :  { %v2085_v40 = vadd.f32 %v4674_v35, %v1994_v59 }
 0x3da   :  { %3103 = vmatmul.msk.bf16.gmra.mxu2 %vm5513_vm4, %v4785_v52  ;;  %v2149_v42 = vmax.f32 %v2085_v40, 0.0  ;;  %vm5528_vm4 = vmmov %vm5515_vm0 }
 0x3dd   :  { %v1736_v49 = vpop.f32.mrf.mxu2  ;;  %v1995_v31 = vpop.f32.mrf.mxu3 }
 0x3de   :  { %v1996_v56 = vadd.f32 %v1995_v31, %v1718_v44 }
 0x3e0   :  { %v2086_v34 = vadd.f32 %v4674_v35, %v1996_v56 }
 0x3e2   :  { %v2150_v2 = vmax.f32 %v2086_v34, 0.0 }
 0x3e4   :  { %v4984_v48 = vpack.c.bf16 %v2150_v2, %v2149_v42 }
 0x3e5   :  { %v1738_v0 = vpop.f32.mrf.mxu2  ;;  %v1998_v51 = vpop.f32.mrf.mxu3 }
 0x3e6   :  { %v1999_v15 = vadd.f32 %v1998_v51, %v1721_v11  ;;  %v1646_v11 = vpop.f32.mrf.mxu0 }
 0x3e8   :  { %v2087_v26 = vadd.f32 %v4674_v35, %v1999_v15 }
 0x3ea   :  { %3104 = vmatmul.msk.bf16.gmra.mxu2 %vm5514_vm10, %v4806_v58  ;;  %v2151_v23 = vmax.f32 %v2087_v26, 0.0  ;;  %vm5529_vm10 = vmmov %vm5515_vm0 }
 0x3ed   :  { %v4988_v52 = vpop.f32.mrf.mxu2  ;;  %v2000_v25 = vpop.f32.mrf.mxu3 }
 0x3ee   :  { %v2001_v44 = vadd.f32 %v2000_v25, %v1723_v12  ;;  %v1648_v31 = vpop.f32.mrf.mxu0 }
 0x3f0   :  { %v2088_v37 = vadd.f32 %v4674_v35, %v2001_v44 }
 0x3f2   :  { %v2152_v60 = vmax.f32 %v2088_v37, 0.0 }
 0x3f4   :  { %v4992_v22 = vpack.c.bf16 %v2152_v60, %v2151_v23 }
 0x3f5   :  { %v4994_v8 = vpop.f32.mrf.mxu2  ;;  %v2003_v16 = vpop.f32.mrf.mxu3 }
 0x3f6   :  { %v2004_v20 = vadd.f32 %v2003_v16, %v1726_v17  ;;  %v5006_v17 = vpop.f32.mrf.mxu0 }
 0x3f8   :  { %v2089_v59 = vadd.f32 %v4674_v35, %v2004_v20 }
 0x3fa   :  { %3105 = vmatmul.msk.bf16.gmra.mxu2 %vm5515_vm0, %v4825_v1  ;;  %v2153_v56 = vmax.f32 %v2089_v59, 0.0 }
 0x3fd   :  { %v4998_v58 = vpop.f32.mrf.mxu2  ;;  %v2005_v43 = vpop.f32.mrf.mxu3 }
 0x3fe   :  { %v2006_v12 = vadd.f32 %v2005_v43, %v1728_v63  ;;  %v1653_v60 = vpop.f32.mrf.mxu0 }
 0x400   :  { %v2090_v40 = vadd.f32 %v4674_v35, %v2006_v12 }
 0x402   :  { %v2154_v34 = vmax.f32 %v2090_v40, 0.0 }
 0x404   :  { %v5002_v42 = vpack.c.bf16 %v2154_v34, %v2153_v56 }
 0x405   :  { %v5004_v2 = vpop.f32.mrf.mxu2  ;;  %v2008_v51 = vpop.f32.mrf.mxu3 }
 0x406   :  { %v2009_v15 = vadd.f32 %v2008_v51, %v1731_v47  ;;  %v5022_v40 = vpop.f32.mrf.mxu0 }
 0x408   :  { %v2091_v63 = vadd.f32 %v4674_v35, %v2009_v15 }
 0x40a   :  { %3106 = vmatmul.msk.bf16.gmra.mxu2 %vm5516_vm1, %v4844_v62  ;;  %v2155_v37 = vmax.f32 %v2091_v63, 0.0  ;;  %v1921_v62 = vadd.f32 %v4772_v5, %v1643_v4  ;;  %vm5530_vm1 = vmmov %vm5515_vm0 }
 0x40c   :  { %v2056_v51 = vadd.f32 %v4674_v35, %v1921_v62 }
 0x40d   :  { %v5010_v1 = vpop.f32.mrf.mxu2  ;;  %v2010_v25 = vpop.f32.mrf.mxu3 }
 0x40e   :  { %v2011_v26 = vadd.f32 %v2010_v25, %v1733_v6  ;;  %v1919_v6 = vadd.f32 %v4762_v38, %v1641_v14  ;;  %v2120_v25 = vmax.f32 %v2056_v51, 0.0 }
 0x410   :  { %v2092_v44 = vadd.f32 %v4674_v35, %v2011_v26  ;;  %v2055_v5 = vadd.f32 %v4674_v35, %v1919_v6  ;;  %v1926_v6 = vadd.f32 %v4793_v30, %v1648_v31 }
 0x412   :  { %v2156_v23 = vmax.f32 %v2092_v44, 0.0  ;;  %v2119_v26 = vmax.f32 %v2055_v5, 0.0  ;;  %v2058_v5 = vadd.f32 %v4674_v35, %v1926_v6 }
 0x414   :  { %v5014_v16 = vpack.c.bf16 %v2156_v23, %v2155_v37  ;;  %v2174_v37 = vpack.c.bf16 %v2120_v25, %v2119_v26  ;;  %v1658_v23 = vpop.f32.mrf.mxu0 }
 0x415   :  { %v5016_v20 = vpop.f32.mrf.mxu2  ;;  %v2013_v43 = vpop.f32.mrf.mxu3 }
 0x416   :  { %v2014_v47 = vadd.f32 %v2013_v43, %v1736_v49  ;;  %v5030_v49 = vld [vmem:[%s5308_s8] ss:$0 sm:$0xff] }
 0x418   :  { %v2093_v56 = vadd.f32 %v4674_v35, %v2014_v47 }
 0x41a   :  { %3107 = vmatmul.msk.bf16.gmra.mxu2 %vm5517_vm12, %v4863_v33  ;;  %v2157_v33 = vmax.f32 %v2093_v56, 0.0  ;;  %vm5531_vm12 = vmmov %vm5515_vm0 }
 0x41d   :  { %v2015_v59 = vpop.f32.mrf.mxu3  ;;  %v2338_v12 = vpop.f32.mrf.mxu2 }
 0x41e   :  { %v2016_v34 = vadd.f32 %v2015_v59, %v1738_v0  ;;  %v2339_v14 = vadd.f32 %v5030_v49, %v2338_v12  ;;  %v1924_v12 = vadd.f32 %v4783_v57, %v1646_v11 }
 0x420   :  { %v2094_v15 = vadd.f32 %v4674_v35, %v2016_v34  ;;  %v2498_v43 = vmax.f32 %v2339_v14, 0.0 }
 0x422   :  { %v2158_v4 = vmax.f32 %v2094_v15, 0.0 }
 0x424   :  { %v5033_v38 = vpack.c.bf16 %v2158_v4, %v2157_v33  ;;  %v5048_v4 = vpop.f32.mrf.mxu0 }
 0x425   :  { %v2018_v63 = vpop.f32.mrf.mxu3  ;;  %v2340_v0 = vpop.f32.mrf.mxu2 }
 0x426   :  { %v2341_v44 = vadd.f32 %v5030_v49, %v2340_v0  ;;  %v2019_v62 = vadd.f32 %v2018_v63, %v4988_v52  ;;  %v2057_v52 = vadd.f32 %v4674_v35, %v1924_v12  ;;  %v2122_v63 = vmax.f32 %v2058_v5, 0.0 }
 0x428   :  { %v2499_v47 = vmax.f32 %v2341_v44, 0.0  ;;  %v2095_v51 = vadd.f32 %v4674_v35, %v2019_v62  ;;  %v2121_v0 = vmax.f32 %v2057_v52, 0.0  ;;  %v1931_v62 = vadd.f32 %v4814_v32, %v1653_v60 }
 0x42a   :  { %3108 = vmatmul.msk.bf16.gmra.mxu2 %vm5518_vm13, %v2174_v37  ;;  %v5039_v59 = vpack.c.bf16 %v2499_v47, %v2498_v43  ;;  %v2159_v25 = vmax.f32 %v2095_v51, 0.0  ;;  %v2175_v26 = vpack.c.bf16 %v2122_v63, %v2121_v0  ;;  %v2060_v5 = vadd.f32 %v4674_v35, %v1931_v62  ;;  %vm5532_vm13 = vmmov %vm5515_vm0 }
 0x42b   :  { %v1934_v62 = vadd.f32 %v4823_v36, %v5022_v40 }
 0x42c   :  { %v1663_v6 = vpop.f32.mrf.mxu0 }
 0x42d   :  { %v2020_v56 = vpop.f32.mrf.mxu3  ;;  %v2343_v34 = vpop.f32.mrf.mxu2 }
 0x42e   :  { %v2021_v15 = vadd.f32 %v2020_v56, %v4994_v8  ;;  %v2344_v31 = vadd.f32 %v5030_v49, %v2343_v34  ;;  %v1929_v34 = vadd.f32 %v4804_v61, %v5006_v17 }
 0x430   :  { %v2096_v33 = vadd.f32 %v4674_v35, %v2021_v15  ;;  %v2500_v44 = vmax.f32 %v2344_v31, 0.0 }
 0x432   :  { %v2160_v14 = vmax.f32 %v2096_v33, 0.0  ;;  %v2059_v33 = vadd.f32 %v4674_v35, %v1929_v34 }
 0x434   :  { %v5050_v30 = vpack.c.bf16 %v2160_v14, %v2159_v25  ;;  %v2124_v14 = vmax.f32 %v2060_v5, 0.0  ;;  %v2123_v61 = vmax.f32 %v2059_v33, 0.0 }
 0x435   :  { %v2023_v57 = vpop.f32.mrf.mxu3  ;;  %v2345_v11 = vpop.f32.mrf.mxu2 }
 0x436   :  { %v2346_v8 = vadd.f32 %v5030_v49, %v2345_v11  ;;  %v2024_v43 = vadd.f32 %v2023_v57, %v4998_v58  ;;  %v1666_v57 = vpop.f32.mrf.mxu0 }
 0x438   :  { %v2501_v37 = vmax.f32 %v2346_v8, 0.0  ;;  %v2097_v51 = vadd.f32 %v4674_v35, %v2024_v43 }
 0x43a   :  { %3109 = vmatmul.msk.bf16.gmra.mxu2 %vm5519_vm3, %v2175_v26  ;;  %v5056_v47 = vpack.c.bf16 %v2501_v37, %v2500_v44  ;;  %v2161_v52 = vmax.f32 %v2097_v51, 0.0  ;;  %v1936_v44 = vadd.f32 %v4833_v10, %v1658_v23  ;;  %vm5533_vm3 = vmmov %vm5515_vm0 }
 0x43c   :  { %v2062_v34 = vadd.f32 %v4674_v35, %v1936_v44 }
 0x43d   :  { %v2025_v56 = vpop.f32.mrf.mxu3  ;;  %v2348_v12 = vpop.f32.mrf.mxu2 }
 0x43e   :  { %v2026_v15 = vadd.f32 %v2025_v56, %v5004_v2  ;;  %v2349_v60 = vadd.f32 %v5030_v49, %v2348_v12  ;;  %v2176_v2 = vpack.c.bf16 %v2124_v14, %v2123_v61  ;;  %v2126_v33 = vmax.f32 %v2062_v34, 0.0 }
 0x440   :  { %v2098_v58 = vadd.f32 %v4674_v35, %v2026_v15  ;;  %v2502_v11 = vmax.f32 %v2349_v60, 0.0  ;;  %v2061_v15 = vadd.f32 %v4674_v35, %v1934_v62 }
 0x442   :  { %v2162_v25 = vmax.f32 %v2098_v58, 0.0  ;;  %v2125_v36 = vmax.f32 %v2061_v15, 0.0 }
 0x444   :  { %v5066_v32 = vpack.c.bf16 %v2162_v25, %v2161_v52  ;;  %v2177_v25 = vpack.c.bf16 %v2126_v33, %v2125_v36 }
 0x445   :  { %v2028_v63 = vpop.f32.mrf.mxu3  ;;  %v2350_v31 = vpop.f32.mrf.mxu2 }
 0x446   :  { %v2351_v17 = vadd.f32 %v5030_v49, %v2350_v31  ;;  %v2029_v8 = vadd.f32 %v2028_v63, %v5010_v1  ;;  %v1668_v1 = vpop.f32.mrf.mxu0  ;;  %v1941_v31 = vadd.f32 %v4852_v50, %v1663_v6  ;;  %v1944_v6 = vadd.f32 %v4861_v9, %v1666_v57 }
 0x448   :  { %v2503_v0 = vmax.f32 %v2351_v17, 0.0  ;;  %v2099_v56 = vadd.f32 %v4674_v35, %v2029_v8  ;;  %v1939_v17 = vadd.f32 %v4842_v46, %v5048_v4  ;;  %v1946_v46 = vadd.f32 %v4870_v28, %v1668_v1 }
 0x44a   :  { %3110 = vmatmul.msk.bf16.gmra.mxu2 %vm5520_vm15, %v2176_v2  ;;  %v5072_v26 = vpack.c.bf16 %v2503_v0, %v2502_v11  ;;  %v2163_v5 = vmax.f32 %v2099_v56, 0.0  ;;  %v2064_v2 = vadd.f32 %v4674_v35, %v1941_v31  ;;  %v2063_v11 = vadd.f32 %v4674_v35, %v1939_v17  ;;  %vm5534_vm15 = vmmov %vm5515_vm0 }
 0x44b   :  { %v2066_v15 = vadd.f32 %v4674_v35, %v1946_v46 }
 0x44c   :  { %v2128_v0 = vmax.f32 %v2064_v2, 0.0 }
 0x44d   :  { %v2030_v37 = vpop.f32.mrf.mxu3  ;;  %v2353_v43 = vpop.f32.mrf.mxu2 }
 0x44e   :  { %v2031_v12 = vadd.f32 %v2030_v37, %v5016_v20  ;;  %v2354_v23 = vadd.f32 %v5030_v49, %v2353_v43  ;;  %v1671_v63 = vpop.f32.mrf.mxu0  ;;  %v2127_v43 = vmax.f32 %v2063_v11, 0.0 }
 0x44f   :  { %v1949_v28 = vadd.f32 %v4876_v41, %v1671_v63 }
 0x450   :  { %v2100_v51 = vadd.f32 %v4674_v35, %v2031_v12  ;;  %v2504_v20 = vmax.f32 %v2354_v23, 0.0  ;;  %v2178_v56 = vpack.c.bf16 %v2128_v0, %v2127_v43 }
 0x451   :  { %v2067_v9 = vadd.f32 %v4674_v35, %v1949_v28 }
 0x452   :  { %v2164_v58 = vmax.f32 %v2100_v51, 0.0 }
 0x453   :  { %v2131_v31 = vmax.f32 %v2067_v9, 0.0 }
 0x454   :  { %v5082_v10 = vpack.c.bf16 %v2164_v58, %v2163_v5  ;;  %v2065_v5 = vadd.f32 %v4674_v35, %v1944_v6  ;;  %v2130_v58 = vmax.f32 %v2066_v15, 0.0 }
 0x455   :  { %v2355_v52 = vpop.f32.mrf.mxu2 }
 0x456   :  { %v2356_v40 = vadd.f32 %v5030_v49, %v2355_v52  ;;  %v1673_v44 = vpop.f32.mrf.mxu0  ;;  %v2129_v23 = vmax.f32 %v2065_v5, 0.0 }
 0x458   :  { %v2505_v14 = vmax.f32 %v2356_v40, 0.0  ;;  %v2179_v52 = vpack.c.bf16 %v2130_v58, %v2129_v23  ;;  %v1951_v40 = vadd.f32 %v4883_v45, %v1673_v44 }
 0x45a   :  { %3111 = vmatmul.msk.bf16.gmra.mxu2 %vm5521_vm8, %v2177_v25  ;;  %v5087_v60 = vpack.c.bf16 %v2505_v14, %v2504_v20  ;;  %v2068_v1 = vadd.f32 %v4674_v35, %v1951_v40  ;;  %vm5535_vm8 = vmmov %vm5515_vm0 }
 0x45c   :  { %v2132_v20 = vmax.f32 %v2068_v1, 0.0 }
 0x45d   :  { %v2358_v61 = vpop.f32.mrf.mxu2 }
 0x45e   :  { %v2359_v8 = vadd.f32 %v5030_v49, %v2358_v61  ;;  %v1676_v51 = vpop.f32.mrf.mxu0  ;;  %v2180_v61 = vpack.c.bf16 %v2132_v20, %v2131_v31 }
 0x45f   :  { %v1954_v45 = vadd.f32 %v4889_v24, %v1676_v51 }
 0x460   :  { %v2506_v12 = vmax.f32 %v2359_v8, 0.0 }
 0x461   :  { %v2069_v41 = vadd.f32 %v4674_v35, %v1954_v45 }
 0x465   :  { %v2360_v37 = vpop.f32.mrf.mxu2 }
 0x466   :  { %v2361_v62 = vadd.f32 %v5030_v49, %v2360_v37  ;;  %v1678_v36 = vpop.f32.mrf.mxu0  ;;  %v2133_v37 = vmax.f32 %v2069_v41, 0.0 }
 0x467   :  { %v1956_v17 = vadd.f32 %v4896_v19, %v1678_v36 }
 0x468   :  { %v2507_v34 = vmax.f32 %v2361_v62, 0.0 }
 0x469   :  { %v2070_v0 = vadd.f32 %v4674_v35, %v1956_v17 }
 0x46a   :  { %3112 = vmatmul.msk.bf16.gmra.mxu2 %vm5522_vm11, %v2178_v56  ;;  %v5097_v50 = vpack.c.bf16 %v2507_v34, %v2506_v12  ;;  %vm5536_vm11 = vmmov %vm5515_vm0 }
 0x46b   :  { %v2134_v63 = vmax.f32 %v2070_v0, 0.0 }
 0x46d   :  { %v2363_v4 = vpop.f32.mrf.mxu2  ;;  %v2181_v56 = vpack.c.bf16 %v2134_v63, %v2133_v37 }
 0x46e   :  { %v1681_v57 = vpop.f32.mrf.mxu0  ;;  %v2364_v1 = vadd.f32 %v5030_v49, %v2363_v4 }
 0x46f   :  { %v1959_v58 = vadd.f32 %v4902_v29, %v1681_v57 }
 0x470   :  { %v2508_v57 = vmax.f32 %v2364_v1, 0.0 }
 0x475   :  { %v2365_v33 = vpop.f32.mrf.mxu2 }
 0x476   :  { %v1683_v2 = vpop.f32.mrf.mxu0  ;;  %v2366_v36 = vadd.f32 %v5030_v49, %v2365_v33 }
 0x477   :  { %v1961_v6 = vadd.f32 %v4911_v39, %v1683_v2 }
 0x478   :  { %v2509_v39 = vmax.f32 %v2366_v36, 0.0 }
 0x47a   :  { %3113 = vmatmul.msk.bf16.gmra.mxu2 %vm5523_vm7, %v2179_v52  ;;  %v2072_v52 = vadd.f32 %v4674_v35, %v1961_v6  ;;  %vm5537_vm7 = vmmov %vm5515_vm0 }
 0x47c   :  { %v2136_v9 = vmax.f32 %v2072_v52, 0.0 }
 0x47d   :  { %v2368_v25 = vpop.f32.mrf.mxu2 }
 0x47e   :  { %v1686_v62 = vpop.f32.mrf.mxu0  ;;  %v2369_v46 = vadd.f32 %v5030_v49, %v2368_v25  ;;  %v2071_v25 = vadd.f32 %v4674_v35, %v1959_v58 }
 0x47f   :  { %v1964_v63 = vadd.f32 %v4923_v21, %v1686_v62 }
 0x480   :  { %v2510_v23 = vmax.f32 %v2369_v46, 0.0  ;;  %v2135_v29 = vmax.f32 %v2071_v25, 0.0 }
 0x482   :  { %v2182_v17 = vpack.c.bf16 %v2136_v9, %v2135_v29 }
 0x485   :  { %v2370_v14 = vpop.f32.mrf.mxu2 }
 0x486   :  { %v2371_v12 = vadd.f32 %v5030_v49, %v2370_v14  ;;  %v1688_v28 = vpop.f32.mrf.mxu0 }
 0x487   :  { %v1966_v45 = vadd.f32 %v4929_v18, %v1688_v28  ;;  %v2607_v28 = vsel %vm1490_vm6, %v5072_v26, 0 }
 0x488   :  { %v2511_v51 = vmax.f32 %v2371_v12, 0.0  ;;  %v2613_v12 = vsel %vm1490_vm6, %v5097_v50, 0 }
 0x48a   :  { %3114 = vmatmul.msk.bf16.gmra.mxu2 %vm5524_vm5, %v2180_v61  ;;  %v2569_v40 = vpack.c.bf16 %v2511_v51, %v2510_v23  ;;  %vm5538_vm5 = vmmov %vm5515_vm0 }
 0x48c   :  { %v2619_v14 = vsel %vm1490_vm6, %v2569_v40, 0 }
 0x48d   :  { %v2373_v11 = vpop.f32.mrf.mxu2 }
 0x48e   :  { %v2374_v8 = vadd.f32 %v5030_v49, %v2373_v11  ;;  %v2568_v11 = vpack.c.bf16 %v2509_v39, %v2508_v57  ;;  %v1691_v4 = vpop.f32.mrf.mxu0 }
 0x48f   :  { %v1969_v50 = vadd.f32 %v4935_v7, %v1691_v4 }
 0x490   :  { %v2512_v19 = vmax.f32 %v2374_v8, 0.0  ;;  %v2616_v0 = vsel %vm1490_vm6, %v2568_v11, 0  ;;  %v3194_v8 = vld [vmem:[%s5306_s6] ss:$0 sm:$0xff] }
 0x491   :  { %v2073_v37 = vadd.f32 %v3194_v8, %v1964_v63  ;;  %v2075_v52 = vadd.f32 %v3194_v8, %v1969_v50 }
 0x493   :  { %v2139_v1 = vmax.f32 %v2075_v52, 0.0 }
 0x495   :  { %v2375_v44 = vpop.f32.mrf.mxu2 }
 0x496   :  { %v2376_v43 = vadd.f32 %v5030_v49, %v2375_v44  ;;  %v2074_v44 = vadd.f32 %v3194_v8, %v1966_v45 }
 0x498   :  { %v2513_v34 = vmax.f32 %v2376_v43, 0.0  ;;  %v2138_v43 = vmax.f32 %v2074_v44, 0.0 }
 0x49a   :  { %v2570_v24 = vpack.c.bf16 %v2513_v34, %v2512_v19  ;;  %3115 = vmatmul.msk.bf16.gmra.mxu2 %vm5525_vm2, %v2181_v56  ;;  %v1693_v19 = vpop.f32.mrf.mxu0  ;;  %v2137_v34 = vmax.f32 %v2073_v37, 0.0  ;;  %vm5539_vm2 = vmmov %vm5515_vm0 }
 0x49b   :  { %v1971_v51 = vadd.f32 %v4938_v54, %v1693_v19 }
 0x49c   :  { %v2622_v15 = vsel %vm1490_vm6, %v2570_v24, 0  ;;  %v2183_v24 = vpack.c.bf16 %v2138_v43, %v2137_v34 }
 0x49d   :  { %v2378_v5 = vpop.f32.mrf.mxu2  ;;  %2696 = vmatpush.bf16.xpose.msra.mxu3 %v2622_v15  ;;  %v2610_v15 = vsel %vm1490_vm6, %v5087_v60, 0  ;;  %v2076_v23 = vadd.f32 %v3194_v8, %v1971_v51 }
 0x49e   :  { %v2379_v20 = vadd.f32 %v5030_v49, %v2378_v5 }
 0x49f   :  { %v2140_v36 = vmax.f32 %v2076_v23, 0.0 }
 0x4a0   :  { %v2514_v33 = vmax.f32 %v2379_v20, 0.0 }
 0x4a1   :  { %v2184_v9 = vpack.c.bf16 %v2140_v36, %v2139_v1 }
 0x4a2   :  { %v1696_v58 = vpop.f32.mrf.mxu0 }
 0x4a3   :  { %v1974_v26 = vadd.f32 %v4944_v55, %v1696_v58 }
 0x4a5   :  { %v2380_v31 = vpop.f32.mrf.mxu2  ;;  %2697 = vmatpush.bf16.xpose.msra.mxu3 %v2619_v14 }
 0x4a6   :  { %v2381_v61 = vadd.f32 %v5030_v49, %v2380_v31  ;;  %v2604_v31 = vsel %vm1490_vm6, %v5056_v47, 0 }
 0x4a8   :  { %v2515_v2 = vmax.f32 %v2381_v61, 0.0  ;;  %v2077_v61 = vadd.f32 %v3194_v8, %v1974_v26 }
 0x4aa   :  { %3116 = vmatmul.msk.bf16.gmra.mxu2 %vm5526_vm14, %v2182_v17  ;;  %v5129_v35 = vpack.c.bf16 %v2515_v2, %v2514_v33  ;;  %v1698_v20 = vpop.f32.mrf.mxu0  ;;  %v2601_v2 = vsel %vm1490_vm6, %v5039_v59, 0  ;;  %v2141_v4 = vmax.f32 %v2077_v61, 0.0 }
 0x4ab   :  { %v1976_v14 = vadd.f32 %v4948_v3, %v1698_v20 }
 0x4ad   :  { %v2383_v41 = vpop.f32.mrf.mxu2  ;;  %2698 = vmatpush.bf16.xpose.msra.mxu3 %v2616_v0  ;;  %v2078_v57 = vadd.f32 %v3194_v8, %v1976_v14 }
 0x4ae   :  { %v2384_v56 = vadd.f32 %v5030_v49, %v2383_v41 }
 0x4af   :  { %v2142_v17 = vmax.f32 %v2078_v57, 0.0 }
 0x4b0   :  { %v2516_v21 = vmax.f32 %v2384_v56, 0.0 }
 0x4b1   :  { %v2185_v45 = vpack.c.bf16 %v2142_v17, %v2141_v4 }
 0x4b5   :  { %v2385_v18 = vpop.f32.mrf.mxu2  ;;  %2699 = vmatpush.bf16.xpose.msra.mxu3 %v2613_v12 }
 0x4b6   :  { %v2386_v46 = vadd.f32 %v5030_v49, %v2385_v18 }
 0x4b8   :  { %v2517_v62 = vmax.f32 %v2386_v46, 0.0 }
 0x4ba   :  { %3117 = vmatmul.msk.bf16.gmra.mxu2 %vm5527_vm9, %v2183_v24  ;;  %v5142_v6 = vpack.c.bf16 %v2517_v62, %v2516_v21 }
 0x4bd   :  { %v2388_v5 = vpop.f32.mrf.mxu2  ;;  %2700 = vmatpush.bf16.xpose.msra.mxu3 %v2610_v15 }
 0x4be   :  { %v2389_v40 = vadd.f32 %v5030_v49, %v2388_v5 }
 0x4c0   :  { %v2518_v60 = vmax.f32 %v2389_v40, 0.0 }
 0x4c5   :  { %v2390_v25 = vpop.f32.mrf.mxu2  ;;  %2701 = vmatpush.bf16.xpose.msra.mxu3 %v2607_v28 }
 0x4c6   :  { %v2391_v54 = vadd.f32 %v5030_v49, %v2390_v25 }
 0x4c8   :  { %v2519_v39 = vmax.f32 %v2391_v54, 0.0 }
 0x4ca   :  { %3118 = vmatmul.msk.bf16.gmra.mxu2 %vm5528_vm4, %v2184_v9  ;;  %v5153_v7 = vpack.c.bf16 %v2519_v39, %v2518_v60 }
 0x4cd   :  { %v2393_v29 = vpop.f32.mrf.mxu2  ;;  %2702 = vmatpush.bf16.xpose.msra.mxu3 %v2604_v31 }
 0x4ce   :  { %v2394_v33 = vadd.f32 %v5030_v49, %v2393_v29 }
 0x4d0   :  { %v2520_v0 = vmax.f32 %v2394_v33, 0.0 }
 0x4d5   :  { %v2395_v11 = vpop.f32.mrf.mxu2  ;;  %2703 = vmatpush.bf16.xpose.msra.mxu3 %v2601_v2 }
 0x4d6   :  { %v2396_v3 = vadd.f32 %v5030_v49, %v2395_v11 }
 0x4d8   :  { %v2521_v47 = vmax.f32 %v2396_v3, 0.0  ;;  %v2631_v3 = vsel %vm1490_vm6, %v5153_v7, 0  ;;  %v2625_v7 = vsel %vm1490_vm6, %v5129_v35, 0 }
 0x4da   :  { %3119 = vmatmul.msk.bf16.gmra.mxu2 %vm5529_vm10, %v2185_v45  ;;  %v2574_v41 = vpack.c.bf16 %v2521_v47, %v2520_v0 }
 0x4dc   :  { %v2634_v2 = vsel %vm1490_vm6, %v2574_v41, 0  ;;  %v2628_v41 = vsel %vm1490_vm6, %v5142_v6, 0 }
 0x4dd   :  { %v2398_v55 = vpop.f32.mrf.mxu2 }
 0x4de   :  { %v2399_v63 = vadd.f32 %v5030_v49, %v2398_v55 }
 0x4e0   :  { %v2522_v37 = vmax.f32 %v2399_v63, 0.0 }
 0x4e5   :  { %v2400_v8 = vpop.f32.mrf.mxu2 }
 0x4e6   :  { %v2401_v44 = vadd.f32 %v5030_v49, %v2400_v8 }
 0x4e8   :  { %v2523_v43 = vmax.f32 %v2401_v44, 0.0 }
 0x4ea   :  { %3120 = vmatmul.msk.bf16.gmra.mxu2 %vm5515_vm0, %v4962_v13  ;;  %v2575_v59 = vpack.c.bf16 %v2523_v43, %v2522_v37 }
 0x4ec   :  { %v2637_v26 = vsel %vm1490_vm6, %v2575_v59, 0 }
 0x4ed   :  { %v2403_v56 = vpop.f32.mrf.mxu2 }
 0x4ee   :  { %v2404_v36 = vadd.f32 %v5030_v49, %v2403_v56 }
 0x4f0   :  { %v2524_v54 = vmax.f32 %v2404_v36, 0.0 }
 0x4f5   :  { %v2405_v12 = vpop.f32.mrf.mxu2 }
 0x4f6   :  { %v2406_v23 = vadd.f32 %v5030_v49, %v2405_v12 }
 0x4f8   :  { %v2525_v40 = vmax.f32 %v2406_v23, 0.0 }
 0x4fa   :  { %3121 = vmatmul.msk.bf16.gmra.mxu2 %vm5530_vm1, %v4972_v53  ;;  %v2576_v39 = vpack.c.bf16 %v2525_v40, %v2524_v54 }
 0x4fc   :  { %v2640_v14 = vsel %vm1490_vm6, %v2576_v39, 0 }
 0x4fd   :  { %v2408_v19 = vpop.f32.mrf.mxu2 }
 0x4fe   :  { %v2409_v15 = vadd.f32 %v5030_v49, %v2408_v19 }
 0x500   :  { %v2526_v58 = vmax.f32 %v2409_v15, 0.0 }
 0x505   :  { %v2410_v18 = vpop.f32.mrf.mxu2 }
 0x506   :  { %v2411_v62 = vadd.f32 %v5030_v49, %v2410_v18 }
 0x508   :  { %v2527_v53 = vmax.f32 %v2411_v62, 0.0 }
 0x50a   :  { %3122 = vmatmul.msk.bf16.gmra.mxu2 %vm5531_vm12, %v4978_v27  ;;  %v2577_v52 = vpack.c.bf16 %v2527_v53, %v2526_v58 }
 0x50c   :  { %v2643_v25 = vsel %vm1490_vm6, %v2577_v52, 0 }
 0x50d   :  { %v2413_v34 = vpop.f32.mrf.mxu2 }
 0x50e   :  { %v2414_v46 = vadd.f32 %v5030_v49, %v2413_v34 }
 0x510   :  { %v2528_v13 = vmax.f32 %v2414_v46, 0.0 }
 0x515   :  { %v2415_v24 = vpop.f32.mrf.mxu2 }
 0x516   :  { %v2416_v21 = vadd.f32 %v5030_v49, %v2415_v24 }
 0x518   :  { %v2529_v51 = vmax.f32 %v2416_v21, 0.0 }
 0x51a   :  { %v2578_v5 = vpack.c.bf16 %v2529_v51, %v2528_v13  ;;  %3123 = vmatmul.msk.bf16.gmra.mxu2 %vm5532_vm13, %v4984_v48 }
 0x51c   :  { %v2646_v50 = vsel %vm1490_vm6, %v2578_v5, 0 }
 0x51d   :  { %v2418_v27 = vpop.f32.mrf.mxu2  ;;  %2709 = vmatpush.bf16.xpose.msra.mxu0 %v2646_v50 }
 0x51e   :  { %v2419_v28 = vadd.f32 %v5030_v49, %v2418_v27 }
 0x520   :  { %v2530_v9 = vmax.f32 %v2419_v28, 0.0 }
 0x525   :  { %v2420_v1 = vpop.f32.mrf.mxu2  ;;  %2710 = vmatpush.bf16.xpose.msra.mxu0 %v2643_v25 }
 0x526   :  { %v2421_v48 = vadd.f32 %v5030_v49, %v2420_v1 }
 0x528   :  { %v2531_v60 = vmax.f32 %v2421_v48, 0.0 }
 0x52a   :  { %3124 = vmatmul.msk.bf16.gmra.mxu2 %vm5533_vm3, %v4992_v22  ;;  %v5186_v20 = vpack.c.bf16 %v2531_v60, %v2530_v9 }
 0x52d   :  { %v2423_v31 = vpop.f32.mrf.mxu2  ;;  %2711 = vmatpush.bf16.xpose.msra.mxu0 %v2640_v14 }
 0x52e   :  { %v2424_v29 = vadd.f32 %v5030_v49, %v2423_v31 }
 0x530   :  { %v2532_v17 = vmax.f32 %v2424_v29, 0.0 }
 0x535   :  { %v2425_v57 = vpop.f32.mrf.mxu2  ;;  %2712 = vmatpush.bf16.xpose.msra.mxu0 %v2637_v26 }
 0x536   :  { %v2426_v61 = vadd.f32 %v5030_v49, %v2425_v57 }
 0x538   :  { %v2533_v33 = vmax.f32 %v2426_v61, 0.0 }
 0x53a   :  { %3125 = vmatmul.msk.bf16.gmra.mxu2 %vm5534_vm15, %v5002_v42  ;;  %v5194_v22 = vpack.c.bf16 %v2533_v33, %v2532_v17 }
 0x53d   :  { %v2428_v11 = vpop.f32.mrf.mxu2  ;;  %2713 = vmatpush.bf16.xpose.msra.mxu0 %v2634_v2 }
 0x53e   :  { %v2429_v4 = vadd.f32 %v5030_v49, %v2428_v11 }
 0x540   :  { %v2534_v47 = vmax.f32 %v2429_v4, 0.0 }
 0x545   :  { %v2430_v45 = vpop.f32.mrf.mxu2  ;;  %2714 = vmatpush.bf16.xpose.msra.mxu0 %v2631_v3 }
 0x546   :  { %v2431_v0 = vadd.f32 %v5030_v49, %v2430_v45 }
 0x548   :  { %v2535_v55 = vmax.f32 %v2431_v0, 0.0 }
 0x54a   :  { %3126 = vmatmul.msk.bf16.gmra.mxu2 %vm5535_vm8, %v5014_v16  ;;  %v5203_v42 = vpack.c.bf16 %v2535_v55, %v2534_v47 }
 0x54c   :  { %v2655_v47 = vsel %vm1490_vm6, %v5203_v42, 0 }
 0x54d   :  { %v2433_v63 = vpop.f32.mrf.mxu2  ;;  %2715 = vmatpush.bf16.xpose.msra.mxu0 %v2628_v41 }
 0x54e   :  { %v2434_v8 = vadd.f32 %v5030_v49, %v2433_v63 }
 0x550   :  { %v2536_v43 = vmax.f32 %v2434_v8, 0.0 }
 0x555   :  { %v2435_v44 = vpop.f32.mrf.mxu2  ;;  %2716 = vmatpush.bf16.xpose.msra.mxu0 %v2625_v7 }
 0x556   :  { %v2436_v37 = vadd.f32 %v5030_v49, %v2435_v44  ;;  %v2652_v44 = vsel %vm1490_vm6, %v5194_v22, 0 }
 0x558   :  { %v2537_v59 = vmax.f32 %v2436_v37, 0.0 }
 0x55a   :  { %3127 = vmatmul.msk.bf16.gmra.mxu2 %vm5536_vm11, %v5033_v38  ;;  %v2582_v16 = vpack.c.bf16 %v2537_v59, %v2536_v43  ;;  %v2649_v59 = vsel %vm1490_vm6, %v5186_v20, 0 }
 0x55c   :  { %v2658_v3 = vsel %vm1490_vm6, %v2582_v16, 0 }
 0x55d   :  { %v2438_v56 = vpop.f32.mrf.mxu2 }
 0x55e   :  { %v2439_v6 = vadd.f32 %v5030_v49, %v2438_v56 }
 0x560   :  { %v2538_v18 = vmax.f32 %v2439_v6, 0.0 }
 0x565   :  { %v2440_v12 = vpop.f32.mrf.mxu2 }
 0x566   :  { %v2441_v19 = vadd.f32 %v5030_v49, %v2440_v12 }
 0x568   :  { %v2539_v34 = vmax.f32 %v2441_v19, 0.0 }
 0x56a   :  { %v2583_v46 = vpack.c.bf16 %v2539_v34, %v2538_v18  ;;  %3128 = vmatmul.msk.bf16.gmra.mxu2 %vm5537_vm7, %v5050_v30 }
 0x56c   :  { %v2661_v61 = vsel %vm1490_vm6, %v2583_v46, 0 }
 0x56d   :  { %v2443_v35 = vpop.f32.mrf.mxu2 }
 0x56e   :  { %v2444_v40 = vadd.f32 %v5030_v49, %v2443_v35 }
 0x570   :  { %v2540_v48 = vmax.f32 %v2444_v40, 0.0 }
 0x575   :  { %v2445_v24 = vpop.f32.mrf.mxu2 }
 0x57a   :  { %3129 = vmatmul.msk.bf16.gmra.mxu2 %vm5538_vm5, %v5066_v32 }
 0x57d   :  { %v2448_v21 = vpop.f32.mrf.mxu2 }
 0x57e   :  { %v2449_v50 = vadd.f32 %v5030_v49, %v2448_v21 }
 0x580   :  { %v2542_v52 = vmax.f32 %v2449_v50, 0.0 }
 0x585   :  { %v2450_v38 = vpop.f32.mrf.mxu2 }
 0x586   :  { %v2451_v5 = vadd.f32 %v5030_v49, %v2450_v38 }
 0x588   :  { %v2543_v58 = vmax.f32 %v2451_v5, 0.0 }
 0x58a   :  { %3130 = vmatmul.msk.bf16.gmra.mxu2 %vm5539_vm2, %v5082_v10  ;;  %v2446_v10 = vadd.f32 %v5030_v49, %v2445_v24  ;;  %v2585_v36 = vpack.c.bf16 %v2543_v58, %v2542_v52 }
 0x58c   :  { %v2541_v28 = vmax.f32 %v2446_v10, 0.0  ;;  %v2667_v1 = vsel %vm1490_vm6, %v2585_v36, 0  ;;  %v2562_v10 = vld [vmem:[%s5309_s9] sm:$0x1] }
 0x58d   :  { %v2453_v62 = vpop.f32.mrf.mxu2  ;;  %3131 = vmatmul.msk.bf16.vlgmr.msra.gmra.mxu3 %vm1490_vm6, %v2562_v10  ;;  %3132 = vmatmul.msk.bf16.vlgmr.msra.gmra.mxu0 %vm1490_vm6, %v2562_v10 }
 0x58e   :  { %v2454_v13 = vadd.f32 %v5030_v49, %v2453_v62  ;;  %v2584_v60 = vpack.c.bf16 %v2541_v28, %v2540_v48 }
 0x590   :  { %v2544_v53 = vmax.f32 %v2454_v13, 0.0  ;;  %v2664_v29 = vsel %vm1490_vm6, %v2584_v60, 0 }
 0x595   :  { %v2455_v51 = vpop.f32.mrf.mxu2 }
 0x596   :  { %v2456_v15 = vadd.f32 %v5030_v49, %v2455_v51 }
 0x598   :  { %v2545_v30 = vmax.f32 %v2456_v15, 0.0 }
 0x59a   :  { %v2586_v27 = vpack.c.bf16 %v2545_v30, %v2544_v53 }
 0x59c   :  { %v2670_v32 = vsel %vm1490_vm6, %v2586_v27, 0 }
 0x59d   :  { %v2458_v23 = vpop.f32.mrf.mxu2  ;;  %2722 = vmatpush.bf16.xpose.msra.mxu1 %v2670_v32 }
 0x59e   :  { %v2459_v25 = vadd.f32 %v5030_v49, %v2458_v23 }
 0x5a0   :  { %v2546_v39 = vmax.f32 %v2459_v25, 0.0 }
 0x5a5   :  { %v2460_v54 = vpop.f32.mrf.mxu2  ;;  %2723 = vmatpush.bf16.xpose.msra.mxu1 %v2667_v1 }
 0x5a6   :  { %v2461_v9 = vadd.f32 %v5030_v49, %v2460_v54 }
 0x5a8   :  { %v2547_v14 = vmax.f32 %v2461_v9, 0.0 }
 0x5aa   :  { %v5231_v31 = vpack.c.bf16 %v2547_v14, %v2546_v39 }
 0x5ad   :  { %v2463_v26 = vpop.f32.mrf.mxu2  ;;  %2724 = vmatpush.bf16.xpose.msra.mxu1 %v2664_v29  ;;  %v2673_v29 = vsel %vm1490_vm6, %v5231_v31, 0 }
 0x5ae   :  { %v2464_v57 = vadd.f32 %v5030_v49, %v2463_v26 }
 0x5b0   :  { %v2548_v2 = vmax.f32 %v2464_v57, 0.0 }
 0x5b5   :  { %v2465_v17 = vpop.f32.mrf.mxu2  ;;  %2725 = vmatpush.bf16.xpose.msra.mxu1 %v2661_v61 }
 0x5b6   :  { %v2466_v33 = vadd.f32 %v5030_v49, %v2465_v17 }
 0x5b8   :  { %v2549_v11 = vmax.f32 %v2466_v33, 0.0 }
 0x5ba   :  { %v5237_v4 = vpack.c.bf16 %v2549_v11, %v2548_v2  ;;  %v2596_v11 = vstv %s5310_s10  ;;  %s3224_s10 = smov [#allocation3]  }
 0x5bb   :  { %s2848_s13 = sshll.u32 %s3224_s10, 4  ;;  %s2849_s13 = int_to_ptr.vmem [resolvable:$true] %s2848_s13 }
 0x5bd   :  { %v2468_v45 = vpop.f32.mrf.mxu2  ;;  %2726 = vmatpush.bf16.xpose.msra.mxu1 %v2658_v3 }
 0x5be   :  { %v2469_v0 = vadd.f32 %v5030_v49, %v2468_v45 }
 0x5c0   :  { %v2550_v63 = vmax.f32 %v2469_v0, 0.0 }
 0x5c5   :  { %v2470_v55 = vpop.f32.mrf.mxu2  ;;  %2727 = vmatpush.bf16.xpose.msra.mxu1 %v2655_v47 }
 0x5c6   :  { %v2471_v41 = vadd.f32 %v5030_v49, %v2470_v55 }
 0x5c8   :  { %v2551_v8 = vmax.f32 %v2471_v41, 0.0 }
 0x5ca   :  { %v2589_v7 = vpack.c.bf16 %v2551_v8, %v2550_v63 }
 0x5cc   :  { %v2679_v14 = vsel %vm1490_vm6, %v2589_v7, 0 }
 0x5cd   :  { %v2473_v37 = vpop.f32.mrf.mxu2  ;;  %2728 = vmatpush.bf16.xpose.msra.mxu1 %v2652_v44 }
 0x5ce   :  { %v2474_v43 = vadd.f32 %v5030_v49, %v2473_v37 }
 0x5d0   :  { %v2552_v56 = vmax.f32 %v2474_v43, 0.0 }
 0x5d5   :  { %v2475_v16 = vpop.f32.mrf.mxu2  ;;  %2729 = vmatpush.bf16.xpose.msra.mxu1 %v2649_v59 }
 0x5d6   :  { %v2476_v42 = vadd.f32 %v5030_v49, %v2475_v16 }
 0x5d8   :  { %v2553_v6 = vmax.f32 %v2476_v42, 0.0 }
 0x5da   :  { %v2590_v12 = vpack.c.bf16 %v2553_v6, %v2552_v56 }
 0x5dc   :  { %3133 = vmatmul.msk.bf16.vlgmr.msra.gmra.mxu1 %vm1490_vm6, %v2562_v10  ;;  %v2682_v39 = vsel %vm1490_vm6, %v2590_v12, 0 }
 0x5dd   :  { %v2478_v19 = vpop.f32.mrf.mxu2 }
 0x5de   :  { %v2479_v18 = vadd.f32 %v5030_v49, %v2478_v19 }
 0x5e0   :  { %v2554_v46 = vmax.f32 %v2479_v18, 0.0 }
 0x5e5   :  { %v2480_v34 = vpop.f32.mrf.mxu2 }
 0x5e6   :  { %v2481_v22 = vadd.f32 %v5030_v49, %v2480_v34 }
 0x5e8   :  { %v2555_v35 = vmax.f32 %v2481_v22, 0.0 }
 0x5ea   :  { %v2591_v24 = vpack.c.bf16 %v2555_v35, %v2554_v46 }
 0x5ec   :  { %v2685_v60 = vsel %vm1490_vm6, %v2591_v24, 0 }
 0x5ed   :  { %v2483_v21 = vpop.f32.mrf.mxu2 }
 0x5ee   :  { %v2484_v28 = vadd.f32 %v5030_v49, %v2483_v21 }
 0x5f0   :  { %v2556_v54 = vmax.f32 %v2484_v28, 0.0 }
 0x5f5   :  { %v2485_v38 = vpop.f32.mrf.mxu2 }
 0x5f6   :  { %v2486_v36 = vadd.f32 %v5030_v49, %v2485_v38 }
 0x5f8   :  { %v2557_v25 = vmax.f32 %v2486_v36, 0.0 }
 0x5fa   :  { %v2592_v48 = vpack.c.bf16 %v2557_v25, %v2556_v54 }
 0x5fc   :  { %v2688_v9 = vsel %vm1490_vm6, %v2592_v48, 0 }
 0x5fd   :  { %v2488_v62 = vpop.f32.mrf.mxu2 }
 0x5fe   :  { %v2489_v27 = vadd.f32 %v5030_v49, %v2488_v62 }
 0x600   :  { %v2558_v52 = vmax.f32 %v2489_v27, 0.0 }
 0x605   :  { %v2490_v20 = vpop.f32.mrf.mxu2 }
 0x606   :  { %v2491_v53 = vadd.f32 %v5030_v49, %v2490_v20 }
 0x608   :  { %v2559_v32 = vmax.f32 %v2491_v53, 0.0 }
 0x60a   :  { %v2593_v40 = vpack.c.bf16 %v2559_v32, %v2558_v52  ;;  %v2718_v26 = vpop.f32.mrf.mxu0 }
 0x60b   :  { %v2719_v3 = vadd.f32 %v2718_v26, %v2596_v11 }
 0x60c   :  { %v2691_v1 = vsel %vm1490_vm6, %v2593_v40, 0 }
 0x60d   :  { %v2493_v13 = vpop.f32.mrf.mxu2  ;;  %v3136_v0 = vmul.f32 -1.442695, %v2719_v3  ;;  %v5546_v3 = vlaneseq }
 0x60e   :  { %v2494_v51 = vadd.f32 %v5030_v49, %v2493_v13 }
 0x60f   :  { %3178 = vpow2.f32 %v3136_v0 }
 0x610   :  { %v2560_v30 = vmax.f32 %v2494_v51, 0.0  ;;  %v2705_v61 = vpop.f32.mrf.mxu3 }
 0x612   :  { %v2720_v17 = vpop.f32.mrf.mxu0 }
 0x615   :  { %v2495_v15 = vpop.f32.mrf.mxu2  ;;  %v3179_v31 = vpop.eup %3178 }
 0x616   :  { %v2496_v5 = vadd.f32 %v5030_v49, %v2495_v15  ;;  %v2676_v49 = vsel %vm1490_vm6, %v5237_v4, 0  ;;  %v2706_v4 = vadd.f32 %v2705_v61, %v2596_v11  ;;  %v2761_v8 = vadd.f32 1.0, %v3179_v31 }
 0x618   :  { %v2561_v50 = vmax.f32 %v2496_v5, 0.0  ;;  %v2707_v2 = vpop.f32.mrf.mxu3  ;;  %v3135_v55 = vmul.f32 -1.442695, %v2706_v4  ;;  %v2790_v62 = vand.u32 2147483648, %v2761_v8  ;;  %v2788_v51 = vand.u32 2147483647, %v2761_v8 }
 0x61a   :  { %v2594_v58 = vpack.c.bf16 %v2561_v50, %v2560_v30  ;;  %v2791_v52 = vor.u32 1.1754944e-38, %v2790_v62  ;;  %vm2789_vm13 = vcmp.eq.f32.partialorder %v2788_v51, 8.507059e+37 }
 0x61c   :  { %v2694_v23 = vsel %vm1490_vm6, %v2594_v58, 0 }
 0x61d   :  { %2735 = vmatpush.bf16.xpose.msrb.mxu3 %v2694_v23 }
 0x625   :  { %2736 = vmatpush.bf16.xpose.msrb.mxu3 %v2691_v1 }
 0x62d   :  { %2737 = vmatpush.bf16.xpose.msrb.mxu3 %v2688_v9 }
 0x635   :  { %2738 = vmatpush.bf16.xpose.msrb.mxu3 %v2685_v60 }
 0x63d   :  { %2739 = vmatpush.bf16.xpose.msrb.mxu3 %v2682_v39 }
 0x645   :  { %2740 = vmatpush.bf16.xpose.msrb.mxu3 %v2679_v14 }
 0x64d   :  { %2741 = vmatpush.bf16.xpose.msrb.mxu3 %v2676_v49 }
 0x655   :  { %2742 = vmatpush.bf16.xpose.msrb.mxu3 %v2673_v29 }
 0x659   :  { %v2731_v57 = vpop.f32.mrf.mxu1 }
 0x65a   :  { %v2732_v45 = vadd.f32 %v2731_v57, %v2596_v11 }
 0x65c   :  { %3134 = vmatmul.msk.bf16.vlgmr.msrb.gmra.mxu3 %vm1490_vm6, %v2562_v10  ;;  %v3137_v47 = vmul.f32 -1.442695, %v2732_v45  ;;  %vm2784_vm6 = vweird.f32 %v2761_v8 }
 0x65e   :  { %3180 = vpow2.f32 %v3137_v47 }
 0x65f   :  { %3182 = vpow2.f32 %v3135_v55 }
 0x660   :  { %3184 = vrcp.f32 %v2761_v8 }
 0x661   :  { %v2733_v33 = vpop.f32.mrf.mxu1 }
 0x664   :  { %v3181_v41 = vpop.eup %3180 }
 0x665   :  { %v3183_v63 = vpop.eup %3182  ;;  %v2762_v7 = vadd.f32 1.0, %v3181_v41 }
 0x666   :  { %v2760_v44 = vadd.f32 1.0, %v3183_v63  ;;  %v3185_v16 = vpop.eup %3184 }
 0x667   :  { %3186 = vrcp.f32 %v2762_v7  ;;  %v2780_v6 = vmul.f32 %v3185_v16, %v2761_v8  ;;  %vm2785_vm14 = vweird.f32 %v3185_v16  ;;  %vm2799_vm9 = vweird.f32 %v2762_v7 }
 0x668   :  { %3188 = vrcp.f32 %v2760_v44  ;;  %v2805_v5 = vand.u32 2147483648, %v2762_v7  ;;  %vm5278_vm10 = vmor %vm2784_vm6, %vm2785_vm14  ;;  %vm2769_vm0 = vweird.f32 %v2760_v44  ;;  %v2803_v58 = vand.u32 2147483647, %v2762_v7 }
 0x669   :  { %v2781_v22 = vsub.f32 1.0, %v2780_v6  ;;  %v2775_v23 = vand.u32 2147483648, %v2760_v44  ;;  %v2773_v36 = vand.u32 2147483647, %v2760_v44  ;;  %vm2831_vm6 = vcmask 1040384  }
 0x66a   :  { %v2806_v54 = vor.u32 1.1754944e-38, %v2805_v5  ;;  %vm2804_vm15 = vcmp.eq.f32.partialorder %v2803_v58, 8.507059e+37  ;;  %vm2833_vm14 = vcmask 1042434  }
 0x66b   :  { %v2782_v21 = vmul.f32 %v3185_v16, %v2781_v22  ;;  %v2776_v60 = vor.u32 1.1754944e-38, %v2775_v23  ;;  %vm2774_vm7 = vcmp.eq.f32.partialorder %v2773_v36, 8.507059e+37 }
 0x66d   :  { %v3187_v42 = vpop.eup %3186  ;;  %v2783_v13 = vadd.f32 %v3185_v16, %v2782_v21 }
 0x66e   :  { %v3189_v56 = vpop.eup %3188  ;;  %v2795_v12 = vmul.f32 %v3187_v42, %v2762_v7  ;;  %vm2800_vm4 = vweird.f32 %v3187_v42 }
 0x66f   :  { %v2765_v18 = vmul.f32 %v3189_v56, %v2760_v44  ;;  %vm2770_vm1 = vweird.f32 %v3189_v56  ;;  %vm5282_vm12 = vmor %vm2799_vm9, %vm2800_vm4  ;;  %v2787_v40 = vsel %vm5278_vm10, %v3185_v16, %v2783_v13  ;;  %vm2835_vm9 = vcmask 1041408  }
 0x670   :  { %v2796_v46 = vsub.f32 1.0, %v2795_v12  ;;  %vm5288_vm3 = vmor %vm2769_vm0, %vm2770_vm1  ;;  %v2792_v39 = vsel %vm2789_vm13, %v2791_v52, %v2787_v40  ;;  %vm2840_vm4 = vcmp.lt.s32.totalorder %v5546_v3, 512 }
 0x671   :  { %v2766_v24 = vsub.f32 1.0, %v2765_v18  ;;  %v2828_v61 = vrot.slane %v2792_v39, 7 }
 0x672   :  { %v2797_v38 = vmul.f32 %v3187_v42, %v2796_v46 }
 0x673   :  { %v2767_v20 = vmul.f32 %v3189_v56, %v2766_v24 }
 0x674   :  { %v2798_v30 = vadd.f32 %v3187_v42, %v2797_v38 }
 0x675   :  { %v2768_v32 = vadd.f32 %v3189_v56, %v2767_v20 }
 0x676   :  { %v2802_v1 = vsel %vm5282_vm12, %v3187_v42, %v2798_v30 }
 0x677   :  { %v2772_v14 = vsel %vm5288_vm3, %v3189_v56, %v2768_v32  ;;  %v2807_v29 = vsel %vm2804_vm15, %v2806_v54, %v2802_v1 }
 0x678   :  { %v2777_v17 = vsel %vm2774_vm7, %v2776_v60, %v2772_v14  ;;  %v2829_v2 = vrot.slane %v2807_v29, 6 }
 0x679   :  { %v2832_v45 = vsel %vm2831_vm6, %v2777_v17, %v2828_v61 }
 0x6df   :  { %v2744_v37 = vpop.f32.mrf.mxu3 }
 0x6e0   :  { %v2745_v43 = vadd.f32 %v2744_v37, %v2596_v11 }
 0x6e2   :  { %v3138_v59 = vmul.f32 -1.442695, %v2745_v43 }
 0x6e4   :  { %3190 = vpow2.f32 %v3138_v59 }
 0x6e7   :  { %v2746_v19 = vpop.f32.mrf.mxu3 }
 0x6ea   :  { %v3191_v34 = vpop.eup %3190 }
 0x6eb   :  { %v2763_v35 = vadd.f32 1.0, %v3191_v34 }
 0x6ed   :  { %3192 = vrcp.f32 %v2763_v35  ;;  %v2820_v28 = vand.u32 2147483648, %v2763_v35  ;;  %v2818_v9 = vand.u32 2147483647, %v2763_v35  ;;  %vm2814_vm11 = vweird.f32 %v2763_v35 }
 0x6ef   :  { %v2821_v26 = vor.u32 1.1754944e-38, %v2820_v28  ;;  %vm2819_vm2 = vcmp.eq.f32.partialorder %v2818_v9, 8.507059e+37 }
 0x6f3   :  { %v3193_v15 = vpop.eup %3192 }
 0x6f4   :  { %v2810_v50 = vmul.f32 %v3193_v15, %v2763_v35  ;;  %vm2815_vm8 = vweird.f32 %v3193_v15 }
 0x6f5   :  { %vm2816_vm5 = vmor %vm2814_vm11, %vm2815_vm8 }
 0x6f6   :  { %v2811_v10 = vsub.f32 1.0, %v2810_v50 }
 0x6f8   :  { %v2812_v48 = vmul.f32 %v3193_v15, %v2811_v10 }
 0x6fa   :  { %v2813_v49 = vadd.f32 %v3193_v15, %v2812_v48 }
 0x6fc   :  { %v2817_v57 = vsel %vm2816_vm5, %v3193_v15, %v2813_v49 }
 0x6fd   :  { %v2822_v33 = vsel %vm2819_vm2, %v2821_v26, %v2817_v57 }
 0x6fe   :  { %v2830_v11 = vrot.slane %v2822_v33, 5 }
 0x700   :  { %v2834_v4 = vsel %vm2833_vm14, %v2829_v2, %v2830_v11 }
 0x701   :  { %v2836_v0 = vsel %vm2835_vm9, %v2832_v45, %v2834_v4 }
 0x702   :  { %2842 = vst.msk [vmem:[#allocation3] sm:$0xf] %vm2840_vm4, %v2836_v0 }
 0x703   :  { %2853 = dma.vmem_to_hbm [thread:$0]  %s2849_s13, 64, %s2851_s1, [#allocation4]  }
 0x704   :  { %3219 = dma.done.wait [#allocation4], 64  }
 0x705   :  { %3220 = vsyncadd [#allocation4], 4294967232 }
 0x706   :  { %2858 = vsyncpa [#allocation4], 1 }

</bundles_post_ra>
